<compile_context>
chip_gen: v7x
topology: tpu7x:2x2x1
jax: 0.10.0
libtpu: 0.0.40
codegen_flags: <defaults>
</compile_context>

<pallas_src>
import functools

import numpy as np

import jax
import jax.numpy as jnp
from jax.experimental import pallas as pl
from jax.experimental.pallas import tpu as pltpu


# Architecture constants (fixed by Net: 32x32 input -> 16*5*5 flatten).
IMG = 32         # spatial size
C_IN, C1, C2 = 3, 6, 16
K = 5            # conv kernel size
N_F1, N_F2, N_F3 = 120, 84, 10


# ---------------------------------------------------------------------------
# Init-time weight preparation (done ONCE, outside the jitted forward)
# ---------------------------------------------------------------------------
def _band_matrix(w_conv, width, dilation):
    """Banded lane-mixing matrix for a 'valid' KxK conv on row-layout data.

    Activations: rows = (image, h), lanes = w*IC + c, at full resolution.
    Returns B (K, width*IC, width*OC) with
        B[i, win*IC + c, wout*OC + o] = w_conv[o, c, i, j],  win = wout + dilation*j
    so that    out_row(h) = sum_i  in_row(h + dilation*i) @ B[i].
    """
    OC, IC, KK, _ = w_conv.shape
    w = np.asarray(w_conv, np.float32)
    B = np.zeros((KK, width * IC, width * OC), np.float32)
    for i in range(KK):
        for j in range(KK):
            blk = w[:, :, i, j].T                       # (IC, OC)
            for wout in range(width):
                win = wout + dilation * j
                if win < width:
                    B[i, win * IC:(win + 1) * IC, wout * OC:(wout + 1) * OC] = blk
    return B


def prepare_params(p):
    """Convert torch-layout params into kernel-ready, pre-transposed constants."""
    c1w, c1b = np.asarray(p["conv1_w"]), np.asarray(p["conv1_b"])
    c2w, c2b = np.asarray(p["conv2_w"]), np.asarray(p["conv2_b"])
    f1w, f1b = np.asarray(p["fc1_w"]), np.asarray(p["fc1_b"])
    f2w, f2b = np.asarray(p["fc2_w"]), np.asarray(p["fc2_b"])
    f3w, f3b = np.asarray(p["fc3_w"]), np.asarray(p["fc3_b"])

    B1 = _band_matrix(c1w, IMG, 1)                      # (5,  96, 192)
    B2 = _band_matrix(c2w, IMG, 2)                      # (5, 192, 512) (dilation-2)
    b1_lane = np.tile(c1b.astype(np.float32), IMG)[None, :]   # (1, 192), lane w*6+o
    b2_lane = np.tile(c2b.astype(np.float32), IMG)[None, :]   # (1, 512), lane w*16+o

    # fc1 with the flatten / pool-position selection folded in.  The pooled
    # feature (o, ph, pw) of image n lives at full-res row n*32 + 4*ph,
    # lane 64*pw + o.  The kernel gathers the 5 rows (ph = 0..4) of each image
    # into one (5*512)-lane feature, so fc1 becomes ONE (2560, 120) weight
    # where block ph occupies rows [ph*512, (ph+1)*512) and unused lanes are
    # zero.
    L2 = IMG * C2
    W1 = np.zeros((K * L2, N_F1), np.float32)
    for ph in range(K):
        base = ph * L2
        for pw in range(K):
            for o in range(C2):
                W1[base + 4 * C2 * pw + o, :] = f1w[:, o * 25 + ph * 5 + pw]

    as_j = jnp.asarray
    return {
        "B1": as_j(B1), "b1": as_j(b1_lane),
        "B2": as_j(B2), "b2": as_j(b2_lane),
        "W1": as_j(W1), "fb1": as_j(f1b.astype(np.float32)[None, :]),
        "W2": as_j(np.ascontiguousarray(f2w.T, np.float32)),
        "fb2": as_j(f2b.astype(np.float32)[None, :]),
        "W3": as_j(np.ascontiguousarray(f3w.T, np.float32)),
        "fb3": as_j(f3b.astype(np.float32)[None, :]),
    }


# ---------------------------------------------------------------------------
# The single fused Pallas kernel (whole network)
# ---------------------------------------------------------------------------
def _net_kernel(x_ref, b1w_ref, b1b_ref, b2w_ref, b2b_ref,
                w1_ref, w1b_ref, w2_ref, w2b_ref, w3_ref, w3b_ref,
                out_ref, o1_ref, m1_ref, o2_ref, m2_ref, feat_ref,
                *, num_images):
    f32 = jnp.float32
    R = num_images * IMG          # total rows = N * 32
    L1 = IMG * C1                 # 192 lanes after conv1
    L2 = IMG * C2                 # 512 lanes after conv2

    # Zero the scratches: their halo/padding regions feed later matmuls (with
    # zero weights) and max ops, so they must be finite (never stale NaNs).
    o1_ref[...] = jnp.zeros(o1_ref.shape, f32)
    m1_ref[...] = jnp.zeros(m1_ref.shape, f32)
    o2_ref[...] = jnp.zeros(o2_ref.shape, f32)

    # ---- conv1 (5x5 valid) + bias + ReLU: 5 row-shifted lane-dense GEMMs ----
    acc = jnp.zeros((R, L1), f32)
    for i in range(K):
        acc = acc + jnp.dot(x_ref[i:i + R, :], b1w_ref[i],
                            preferred_element_type=f32)
    o1_ref[0:R, 0:L1] = jnp.maximum(acc + b1b_ref[...], 0.0)

    # ---- maxpool 2x2 #1 (window max at full resolution, no subsample) ----
    m1_ref[0:R, :] = jnp.maximum(
        jnp.maximum(o1_ref[0:R, 0:L1], o1_ref[1:R + 1, 0:L1]),
        jnp.maximum(o1_ref[0:R, C1:L1 + C1], o1_ref[1:R + 1, C1:L1 + C1]))

    # ---- conv2: dilation-2 on the full-res grid == conv on the pooled grid ----
    acc = jnp.zeros((R, L2), f32)
    for i in range(K):
        acc = acc + jnp.dot(m1_ref[2 * i:2 * i + R, :], b2w_ref[i],
                            preferred_element_type=f32)
    o2_ref[0:R, 0:L2] = jnp.maximum(acc + b2b_ref[...], 0.0)

    # ---- maxpool 2x2 #2 (stride-2 grid -> shifts of 2 rows / 2 lane-groups) ----
    m2_ref[...] = jnp.maximum(
        jnp.maximum(o2_ref[0:R, 0:L2], o2_ref[2:R + 2, 0:L2]),
        jnp.maximum(o2_ref[0:R, 2 * C2:L2 + 2 * C2],
                    o2_ref[2:R + 2, 2 * C2:L2 + 2 * C2]))

    # ---- fc head: gather the 5 pooled rows per image into one lane-dense
    #      (N, 5*512) slab (pure lane-aligned VMEM copies), then 3 batched
    #      MXU GEMMs with fused bias/ReLU and a single output store. ----
    for n in range(num_images):
        for ph in range(K):
            feat_ref[n:n + 1, ph * L2:(ph + 1) * L2] = \
                m2_ref[n * IMG + 4 * ph:n * IMG + 4 * ph + 1, :]

    h = jnp.maximum(
        jnp.dot(feat_ref[...], w1_ref[...], preferred_element_type=f32)
        + w1b_ref[...], 0.0)                                          # (N, 120)
    h = jnp.maximum(
        jnp.dot(h, w2_ref[...], preferred_element_type=f32)
        + w2b_ref[...], 0.0)                                          # (N, 84)
    out_ref[...] = (jnp.dot(h, w3_ref[...], preferred_element_type=f32)
                    + w3b_ref[...])                                   # (N, 10)


# ---------------------------------------------------------------------------
# Wrapper
# ---------------------------------------------------------------------------
def net_forward(x_nchw, kp):
    n_imgs = x_nchw.shape[0]
    R = n_imgs * IMG
    L1, L2 = IMG * C1, IMG * C2

    # Only input-layout glue stays in XLA (one tiny transpose/reshape/pad).
    x = jnp.transpose(x_nchw, (0, 2, 3, 1)).astype(jnp.float32)   # NHWC
    x = x.reshape(R, IMG * C_IN)                                  # rows=(n,h), lanes=w*3+c
    x = jnp.pad(x, ((0, K - 1), (0, 0)))                          # halo rows for conv1 shifts

    vmem = pl.BlockSpec(memory_space=pltpu.MemorySpace.VMEM)
    kernel = functools.partial(_net_kernel, num_images=n_imgs)
    return pl.pallas_call(
        kernel,
        out_shape=jax.ShapeDtypeStruct((n_imgs, N_F3), jnp.float32),
        in_specs=[vmem] * 11,
        out_specs=vmem,
        scratch_shapes=[
            pltpu.VMEM((R + 1, L1 + C1), jnp.float32),           # conv1 out (+pool halo)
            pltpu.VMEM((R + 2 * (K - 1), L1), jnp.float32),      # pool1 out (+conv2 row halo)
            pltpu.VMEM((R + 2, L2 + 2 * C2), jnp.float32),       # conv2 out (+pool halo)
            pltpu.VMEM((R, L2), jnp.float32),                    # pool2 out
            pltpu.VMEM((n_imgs, K * L2), jnp.float32),           # gathered fc1 features
        ],
    )(x, kp["B1"], kp["b1"], kp["B2"], kp["b2"],
      kp["W1"], kp["fb1"], kp["W2"], kp["fb2"], kp["W3"], kp["fb3"])


# ---------------------------------------------------------------------------
# Parameters (torch layout, deterministic) and a plain-XLA reference
# ---------------------------------------------------------------------------
def init_params(key):
    ks = jax.random.split(key, 10)

    def w(k, shape, fan_in):
        return (jax.random.normal(k, shape, jnp.float32) / jnp.sqrt(fan_in)).astype(jnp.float32)

    return {
        "conv1_w": w(ks[0], (6, 3, 5, 5), 3 * 5 * 5),
        "conv1_b": w(ks[1], (6,), 3 * 5 * 5),
        "conv2_w": w(ks[2], (16, 6, 5, 5), 6 * 5 * 5),
        "conv2_b": w(ks[3], (16,), 6 * 5 * 5),
        "fc1_w": w(ks[4], (120, 400), 400),
        "fc1_b": w(ks[5], (120,), 400),
        "fc2_w": w(ks[6], (84, 120), 120),
        "fc2_b": w(ks[7], (84,), 120),
        "fc3_w": w(ks[8], (10, 84), 84),
        "fc3_b": w(ks[9], (10,), 84),
    }


def reference_forward(x_nchw, p):
    """Plain-XLA reference with the exact PyTorch Net.forward semantics."""
    x = jnp.transpose(x_nchw, (0, 2, 3, 1)).astype(jnp.float32)

    def conv_relu(x, w, b):
        N, H, W, C = x.shape
        OC, IC, KH, KW = w.shape
        OH, OW = H - KH + 1, W - KW + 1
        cols = jnp.stack([x[:, i:i + OH, j:j + OW, :]
                          for i in range(KH) for j in range(KW)], axis=3)
        cols = cols.reshape(N * OH * OW, KH * KW * IC)
        wmat = jnp.transpose(w, (2, 3, 1, 0)).reshape(KH * KW * IC, OC)
        y = cols @ wmat + b
        return jnp.maximum(y, 0.0).reshape(N, OH, OW, OC)

    def pool(x):
        N, H, W, C = x.shape
        return jnp.max(x.reshape(N, H // 2, 2, W // 2, 2, C), axis=(2, 4))

    x = pool(conv_relu(x, p["conv1_w"], p["conv1_b"]))
    x = pool(conv_relu(x, p["conv2_w"], p["conv2_b"]))
    x = jnp.transpose(x, (0, 3, 1, 2)).reshape(x.shape[0], -1)    # torch view(-1, 400)
    x = jnp.maximum(x @ p["fc1_w"].T + p["fc1_b"], 0.0)
    x = jnp.maximum(x @ p["fc2_w"].T + p["fc2_b"], 0.0)
    return x @ p["fc3_w"].T + p["fc3_b"]


if __name__ == "__main__":
    key = jax.random.PRNGKey(0)
    k_x, k_p = jax.random.split(key)
    x = jax.random.normal(k_x, (2, 3, 32, 32), jnp.float32)   # Net needs 32x32 input
    torch_params = init_params(k_p)
    kparams = prepare_params(torch_params)                    # one-time weight re-layout

    fwd = jax.jit(net_forward)
    out = jax.block_until_ready(fwd(x, kparams))

    assert out.shape == (2, 10), out.shape
    assert out.dtype == jnp.float32

    ref = jax.block_until_ready(reference_forward(x, torch_params))
    np.testing.assert_allclose(np.asarray(out), np.asarray(ref), rtol=2e-3, atol=2e-3)

    print("KERNEL_OK")
</pallas_src>

<mosaic_0001>
module attributes {stable_mosaic.version = 11 : i64} {
  func.func @_net_kernel(%arg0: memref<68x96xf32, #tpu.memory_space<vmem>>, %arg1: memref<5x96x192xf32, #tpu.memory_space<vmem>>, %arg2: memref<1x192xf32, #tpu.memory_space<vmem>>, %arg3: memref<5x192x512xf32, #tpu.memory_space<vmem>>, %arg4: memref<1x512xf32, #tpu.memory_space<vmem>>, %arg5: memref<2560x120xf32, #tpu.memory_space<vmem>>, %arg6: memref<1x120xf32, #tpu.memory_space<vmem>>, %arg7: memref<120x84xf32, #tpu.memory_space<vmem>>, %arg8: memref<1x84xf32, #tpu.memory_space<vmem>>, %arg9: memref<84x10xf32, #tpu.memory_space<vmem>>, %arg10: memref<1x10xf32, #tpu.memory_space<vmem>>, %arg11: memref<2x10xf32, #tpu.memory_space<vmem>>, %arg12: memref<65x198xf32, #tpu.memory_space<vmem>>, %arg13: memref<72x192xf32, #tpu.memory_space<vmem>>, %arg14: memref<66x544xf32, #tpu.memory_space<vmem>>, %arg15: memref<64x512xf32, #tpu.memory_space<vmem>>, %arg16: memref<2x2560xf32, #tpu.memory_space<vmem>>) attributes {dimension_semantics = [], scalar_prefetch = 0 : i64, scratch_operands = 5 : i64, tpu.core_type = #tpu.core_type<tc>} {
    %cst = arith.constant 0.000000e+00 : f32
    %0 = vector.broadcast %cst : f32 to vector<65x198xf32>
    %c0 = arith.constant 0 : index
    %c0_0 = arith.constant 0 : index
    %1 = vector.load %arg12[%c0, %c0_0] : memref<65x198xf32, #tpu.memory_space<vmem>>, vector<65x198xf32>
    tpu.vector_store %arg12[%c0, %c0_0], %0 {strides = array<i32>} : memref<65x198xf32, #tpu.memory_space<vmem>>, vector<65x198xf32>,
    %cst_1 = arith.constant 0.000000e+00 : f32
    %2 = vector.broadcast %cst_1 : f32 to vector<72x192xf32>
    %c0_2 = arith.constant 0 : index
    %c0_3 = arith.constant 0 : index
    %3 = vector.load %arg13[%c0_2, %c0_3] : memref<72x192xf32, #tpu.memory_space<vmem>>, vector<72x192xf32>
    tpu.vector_store %arg13[%c0_2, %c0_3], %2 {strides = array<i32>} : memref<72x192xf32, #tpu.memory_space<vmem>>, vector<72x192xf32>,
    %cst_4 = arith.constant 0.000000e+00 : f32
    %4 = vector.broadcast %cst_4 : f32 to vector<66x544xf32>
    %c0_5 = arith.constant 0 : index
    %c0_6 = arith.constant 0 : index
    %5 = vector.load %arg14[%c0_5, %c0_6] : memref<66x544xf32, #tpu.memory_space<vmem>>, vector<66x544xf32>
    tpu.vector_store %arg14[%c0_5, %c0_6], %4 {strides = array<i32>} : memref<66x544xf32, #tpu.memory_space<vmem>>, vector<66x544xf32>,
    %cst_7 = arith.constant 0.000000e+00 : f32
    %6 = vector.broadcast %cst_7 : f32 to vector<64x192xf32>
    %c0_8 = arith.constant 0 : index
    %c0_9 = arith.constant 0 : index
    %7 = vector.load %arg0[%c0_8, %c0_9] : memref<68x96xf32, #tpu.memory_space<vmem>>, vector<64x96xf32>
    %c0_10 = arith.constant 0 : index
    %c0_11 = arith.constant 0 : index
    %c0_12 = arith.constant 0 : index
    %8 = vector.load %arg1[%c0_10, %c0_11, %c0_12] : memref<5x96x192xf32, #tpu.memory_space<vmem>>, vector<1x96x192xf32>
    %9 = vector.shape_cast %8 : vector<1x96x192xf32> to vector<96x192xf32>
    %cst_13 = arith.constant dense<0.000000e+00> : vector<64x192xf32>
    %10 = tpu.matmul %7, %9, %cst_13 {dimension_numbers = #tpu.dot_dimension_numbers<[1], [0], [0], [1], [0, 0, 1, 1], [], []>} : vector<64x96xf32>, vector<96x192xf32>, vector<64x192xf32> -> vector<64x192xf32>
    %11 = arith.addf %6, %10 : vector<64x192xf32>
    %c1 = arith.constant 1 : index
    %c0_14 = arith.constant 0 : index
    %12 = vector.load %arg0[%c1, %c0_14] : memref<68x96xf32, #tpu.memory_space<vmem>>, vector<64x96xf32>
    %c1_15 = arith.constant 1 : index
    %c0_16 = arith.constant 0 : index
    %c0_17 = arith.constant 0 : index
    %13 = vector.load %arg1[%c1_15, %c0_16, %c0_17] : memref<5x96x192xf32, #tpu.memory_space<vmem>>, vector<1x96x192xf32>
    %14 = vector.shape_cast %13 : vector<1x96x192xf32> to vector<96x192xf32>
    %cst_18 = arith.constant dense<0.000000e+00> : vector<64x192xf32>
    %15 = tpu.matmul %12, %14, %cst_18 {dimension_numbers = #tpu.dot_dimension_numbers<[1], [0], [0], [1], [0, 0, 1, 1], [], []>} : vector<64x96xf32>, vector<96x192xf32>, vector<64x192xf32> -> vector<64x192xf32>
    %16 = arith.addf %11, %15 : vector<64x192xf32>
    %c2 = arith.constant 2 : index
    %c0_19 = arith.constant 0 : index
    %17 = vector.load %arg0[%c2, %c0_19] : memref<68x96xf32, #tpu.memory_space<vmem>>, vector<64x96xf32>
    %c2_20 = arith.constant 2 : index
    %c0_21 = arith.constant 0 : index
    %c0_22 = arith.constant 0 : index
    %18 = vector.load %arg1[%c2_20, %c0_21, %c0_22] : memref<5x96x192xf32, #tpu.memory_space<vmem>>, vector<1x96x192xf32>
    %19 = vector.shape_cast %18 : vector<1x96x192xf32> to vector<96x192xf32>
    %cst_23 = arith.constant dense<0.000000e+00> : vector<64x192xf32>
    %20 = tpu.matmul %17, %19, %cst_23 {dimension_numbers = #tpu.dot_dimension_numbers<[1], [0], [0], [1], [0, 0, 1, 1], [], []>} : vector<64x96xf32>, vector<96x192xf32>, vector<64x192xf32> -> vector<64x192xf32>
    %21 = arith.addf %16, %20 : vector<64x192xf32>
    %c3 = arith.constant 3 : index
    %c0_24 = arith.constant 0 : index
    %22 = vector.load %arg0[%c3, %c0_24] : memref<68x96xf32, #tpu.memory_space<vmem>>, vector<64x96xf32>
    %c3_25 = arith.constant 3 : index
    %c0_26 = arith.constant 0 : index
    %c0_27 = arith.constant 0 : index
    %23 = vector.load %arg1[%c3_25, %c0_26, %c0_27] : memref<5x96x192xf32, #tpu.memory_space<vmem>>, vector<1x96x192xf32>
    %24 = vector.shape_cast %23 : vector<1x96x192xf32> to vector<96x192xf32>
    %cst_28 = arith.constant dense<0.000000e+00> : vector<64x192xf32>
    %25 = tpu.matmul %22, %24, %cst_28 {dimension_numbers = #tpu.dot_dimension_numbers<[1], [0], [0], [1], [0, 0, 1, 1], [], []>} : vector<64x96xf32>, vector<96x192xf32>, vector<64x192xf32> -> vector<64x192xf32>
    %26 = arith.addf %21, %25 : vector<64x192xf32>
    %c4 = arith.constant 4 : index
    %c0_29 = arith.constant 0 : index
    %27 = vector.load %arg0[%c4, %c0_29] : memref<68x96xf32, #tpu.memory_space<vmem>>, vector<64x96xf32>
    %c4_30 = arith.constant 4 : index
    %c0_31 = arith.constant 0 : index
    %c0_32 = arith.constant 0 : index
    %28 = vector.load %arg1[%c4_30, %c0_31, %c0_32] : memref<5x96x192xf32, #tpu.memory_space<vmem>>, vector<1x96x192xf32>
    %29 = vector.shape_cast %28 : vector<1x96x192xf32> to vector<96x192xf32>
    %cst_33 = arith.constant dense<0.000000e+00> : vector<64x192xf32>
    %30 = tpu.matmul %27, %29, %cst_33 {dimension_numbers = #tpu.dot_dimension_numbers<[1], [0], [0], [1], [0, 0, 1, 1], [], []>} : vector<64x96xf32>, vector<96x192xf32>, vector<64x192xf32> -> vector<64x192xf32>
    %31 = arith.addf %26, %30 : vector<64x192xf32>
    %c0_34 = arith.constant 0 : index
    %c0_35 = arith.constant 0 : index
    %32 = vector.load %arg2[%c0_34, %c0_35] : memref<1x192xf32, #tpu.memory_space<vmem>>, vector<1x192xf32>
    %33 = vector.broadcast %32 : vector<1x192xf32> to vector<64x192xf32>
    %34 = arith.addf %31, %33 : vector<64x192xf32>
    %cst_36 = arith.constant 0.000000e+00 : f32
    %35 = vector.broadcast %cst_36 : f32 to vector<64x192xf32>
    %36 = arith.maximumf %34, %35 : vector<64x192xf32>
    %c0_37 = arith.constant 0 : index
    %c0_38 = arith.constant 0 : index
    %37 = vector.load %arg12[%c0_37, %c0_38] : memref<65x198xf32, #tpu.memory_space<vmem>>, vector<64x192xf32>
    tpu.vector_store %arg12[%c0_37, %c0_38], %36 {strides = array<i32>} : memref<65x198xf32, #tpu.memory_space<vmem>>, vector<64x192xf32>,
    %c0_39 = arith.constant 0 : index
    %c0_40 = arith.constant 0 : index
    %38 = vector.load %arg12[%c0_39, %c0_40] : memref<65x198xf32, #tpu.memory_space<vmem>>, vector<64x192xf32>
    %c1_41 = arith.constant 1 : index
    %c0_42 = arith.constant 0 : index
    %39 = vector.load %arg12[%c1_41, %c0_42] : memref<65x198xf32, #tpu.memory_space<vmem>>, vector<64x192xf32>
    %40 = arith.maximumf %38, %39 : vector<64x192xf32>
    %c0_43 = arith.constant 0 : index
    %c6 = arith.constant 6 : index
    %41 = vector.load %arg12[%c0_43, %c6] : memref<65x198xf32, #tpu.memory_space<vmem>>, vector<64x192xf32>
    %c1_44 = arith.constant 1 : index
    %c6_45 = arith.constant 6 : index
    %42 = vector.load %arg12[%c1_44, %c6_45] : memref<65x198xf32, #tpu.memory_space<vmem>>, vector<64x192xf32>
    %43 = arith.maximumf %41, %42 : vector<64x192xf32>
    %44 = arith.maximumf %40, %43 : vector<64x192xf32>
    %c0_46 = arith.constant 0 : index
    %c0_47 = arith.constant 0 : index
    %45 = vector.load %arg13[%c0_46, %c0_47] : memref<72x192xf32, #tpu.memory_space<vmem>>, vector<64x192xf32>
    tpu.vector_store %arg13[%c0_46, %c0_47], %44 {strides = array<i32>} : memref<72x192xf32, #tpu.memory_space<vmem>>, vector<64x192xf32>,
    %cst_48 = arith.constant 0.000000e+00 : f32
    %46 = vector.broadcast %cst_48 : f32 to vector<64x512xf32>
    %c0_49 = arith.constant 0 : index
    %c0_50 = arith.constant 0 : index
    %47 = vector.load %arg13[%c0_49, %c0_50] : memref<72x192xf32, #tpu.memory_space<vmem>>, vector<64x192xf32>
    %c0_51 = arith.constant 0 : index
    %c0_52 = arith.constant 0 : index
    %c0_53 = arith.constant 0 : index
    %48 = vector.load %arg3[%c0_51, %c0_52, %c0_53] : memref<5x192x512xf32, #tpu.memory_space<vmem>>, vector<1x192x512xf32>
    %49 = vector.shape_cast %48 : vector<1x192x512xf32> to vector<192x512xf32>
    %cst_54 = arith.constant dense<0.000000e+00> : vector<64x512xf32>
    %50 = tpu.matmul %47, %49, %cst_54 {dimension_numbers = #tpu.dot_dimension_numbers<[1], [0], [0], [1], [0, 0, 1, 1], [], []>} : vector<64x192xf32>, vector<192x512xf32>, vector<64x512xf32> -> vector<64x512xf32>
    %51 = arith.addf %46, %50 : vector<64x512xf32>
    %c2_55 = arith.constant 2 : index
    %c0_56 = arith.constant 0 : index
    %52 = vector.load %arg13[%c2_55, %c0_56] : memref<72x192xf32, #tpu.memory_space<vmem>>, vector<64x192xf32>
    %c1_57 = arith.constant 1 : index
    %c0_58 = arith.constant 0 : index
    %c0_59 = arith.constant 0 : index
    %53 = vector.load %arg3[%c1_57, %c0_58, %c0_59] : memref<5x192x512xf32, #tpu.memory_space<vmem>>, vector<1x192x512xf32>
    %54 = vector.shape_cast %53 : vector<1x192x512xf32> to vector<192x512xf32>
    %cst_60 = arith.constant dense<0.000000e+00> : vector<64x512xf32>
    %55 = tpu.matmul %52, %54, %cst_60 {dimension_numbers = #tpu.dot_dimension_numbers<[1], [0], [0], [1], [0, 0, 1, 1], [], []>} : vector<64x192xf32>, vector<192x512xf32>, vector<64x512xf32> -> vector<64x512xf32>
    %56 = arith.addf %51, %55 : vector<64x512xf32>
    %c4_61 = arith.constant 4 : index
    %c0_62 = arith.constant 0 : index
    %57 = vector.load %arg13[%c4_61, %c0_62] : memref<72x192xf32, #tpu.memory_space<vmem>>, vector<64x192xf32>
    %c2_63 = arith.constant 2 : index
    %c0_64 = arith.constant 0 : index
    %c0_65 = arith.constant 0 : index
    %58 = vector.load %arg3[%c2_63, %c0_64, %c0_65] : memref<5x192x512xf32, #tpu.memory_space<vmem>>, vector<1x192x512xf32>
    %59 = vector.shape_cast %58 : vector<1x192x512xf32> to vector<192x512xf32>
    %cst_66 = arith.constant dense<0.000000e+00> : vector<64x512xf32>
    %60 = tpu.matmul %57, %59, %cst_66 {dimension_numbers = #tpu.dot_dimension_numbers<[1], [0], [0], [1], [0, 0, 1, 1], [], []>} : vector<64x192xf32>, vector<192x512xf32>, vector<64x512xf32> -> vector<64x512xf32>
    %61 = arith.addf %56, %60 : vector<64x512xf32>
    %c6_67 = arith.constant 6 : index
    %c0_68 = arith.constant 0 : index
    %62 = vector.load %arg13[%c6_67, %c0_68] : memref<72x192xf32, #tpu.memory_space<vmem>>, vector<64x192xf32>
    %c3_69 = arith.constant 3 : index
    %c0_70 = arith.constant 0 : index
    %c0_71 = arith.constant 0 : index
    %63 = vector.load %arg3[%c3_69, %c0_70, %c0_71] : memref<5x192x512xf32, #tpu.memory_space<vmem>>, vector<1x192x512xf32>
    %64 = vector.shape_cast %63 : vector<1x192x512xf32> to vector<192x512xf32>
    %cst_72 = arith.constant dense<0.000000e+00> : vector<64x512xf32>
    %65 = tpu.matmul %62, %64, %cst_72 {dimension_numbers = #tpu.dot_dimension_numbers<[1], [0], [0], [1], [0, 0, 1, 1], [], []>} : vector<64x192xf32>, vector<192x512xf32>, vector<64x512xf32> -> vector<64x512xf32>
    %66 = arith.addf %61, %65 : vector<64x512xf32>
    %c8 = arith.constant 8 : index
    %c0_73 = arith.constant 0 : index
    %67 = vector.load %arg13[%c8, %c0_73] : memref<72x192xf32, #tpu.memory_space<vmem>>, vector<64x192xf32>
    %c4_74 = arith.constant 4 : index
    %c0_75 = arith.constant 0 : index
    %c0_76 = arith.constant 0 : index
    %68 = vector.load %arg3[%c4_74, %c0_75, %c0_76] : memref<5x192x512xf32, #tpu.memory_space<vmem>>, vector<1x192x512xf32>
    %69 = vector.shape_cast %68 : vector<1x192x512xf32> to vector<192x512xf32>
    %cst_77 = arith.constant dense<0.000000e+00> : vector<64x512xf32>
    %70 = tpu.matmul %67, %69, %cst_77 {dimension_numbers = #tpu.dot_dimension_numbers<[1], [0], [0], [1], [0, 0, 1, 1], [], []>} : vector<64x192xf32>, vector<192x512xf32>, vector<64x512xf32> -> vector<64x512xf32>
    %71 = arith.addf %66, %70 : vector<64x512xf32>
    %c0_78 = arith.constant 0 : index
    %c0_79 = arith.constant 0 : index
    %72 = vector.load %arg4[%c0_78, %c0_79] : memref<1x512xf32, #tpu.memory_space<vmem>>, vector<1x512xf32>
    %73 = vector.broadcast %72 : vector<1x512xf32> to vector<64x512xf32>
    %74 = arith.addf %71, %73 : vector<64x512xf32>
    %cst_80 = arith.constant 0.000000e+00 : f32
    %75 = vector.broadcast %cst_80 : f32 to vector<64x512xf32>
    %76 = arith.maximumf %74, %75 : vector<64x512xf32>
    %c0_81 = arith.constant 0 : index
    %c0_82 = arith.constant 0 : index
    %77 = vector.load %arg14[%c0_81, %c0_82] : memref<66x544xf32, #tpu.memory_space<vmem>>, vector<64x512xf32>
    tpu.vector_store %arg14[%c0_81, %c0_82], %76 {strides = array<i32>} : memref<66x544xf32, #tpu.memory_space<vmem>>, vector<64x512xf32>,
    %c0_83 = arith.constant 0 : index
    %c0_84 = arith.constant 0 : index
    %78 = vector.load %arg14[%c0_83, %c0_84] : memref<66x544xf32, #tpu.memory_space<vmem>>, vector<64x512xf32>
    %c2_85 = arith.constant 2 : index
    %c0_86 = arith.constant 0 : index
    %79 = vector.load %arg14[%c2_85, %c0_86] : memref<66x544xf32, #tpu.memory_space<vmem>>, vector<64x512xf32>
    %80 = arith.maximumf %78, %79 : vector<64x512xf32>
    %c0_87 = arith.constant 0 : index
    %c32 = arith.constant 32 : index
    %81 = vector.load %arg14[%c0_87, %c32] : memref<66x544xf32, #tpu.memory_space<vmem>>, vector<64x512xf32>
    %c2_88 = arith.constant 2 : index
    %c32_89 = arith.constant 32 : index
    %82 = vector.load %arg14[%c2_88, %c32_89] : memref<66x544xf32, #tpu.memory_space<vmem>>, vector<64x512xf32>
    %83 = arith.maximumf %81, %82 : vector<64x512xf32>
    %84 = arith.maximumf %80, %83 : vector<64x512xf32>
    %c0_90 = arith.constant 0 : index
    %c0_91 = arith.constant 0 : index
    %85 = vector.load %arg15[%c0_90, %c0_91] : memref<64x512xf32, #tpu.memory_space<vmem>>, vector<64x512xf32>
    tpu.vector_store %arg15[%c0_90, %c0_91], %84 {strides = array<i32>} : memref<64x512xf32, #tpu.memory_space<vmem>>, vector<64x512xf32>,
    %c0_92 = arith.constant 0 : index
    %c0_93 = arith.constant 0 : index
    %86 = vector.load %arg15[%c0_92, %c0_93] : memref<64x512xf32, #tpu.memory_space<vmem>>, vector<1x512xf32>
    %c0_94 = arith.constant 0 : index
    %c0_95 = arith.constant 0 : index
    %87 = vector.load %arg16[%c0_94, %c0_95] : memref<2x2560xf32, #tpu.memory_space<vmem>>, vector<1x512xf32>
    tpu.vector_store %arg16[%c0_94, %c0_95], %86 {strides = array<i32>} : memref<2x2560xf32, #tpu.memory_space<vmem>>, vector<1x512xf32>,
    %c4_96 = arith.constant 4 : index
    %c0_97 = arith.constant 0 : index
    %88 = vector.load %arg15[%c4_96, %c0_97] : memref<64x512xf32, #tpu.memory_space<vmem>>, vector<1x512xf32>
    %c0_98 = arith.constant 0 : index
    %c512 = arith.constant 512 : index
    %89 = vector.load %arg16[%c0_98, %c512] : memref<2x2560xf32, #tpu.memory_space<vmem>>, vector<1x512xf32>
    tpu.vector_store %arg16[%c0_98, %c512], %88 {strides = array<i32>} : memref<2x2560xf32, #tpu.memory_space<vmem>>, vector<1x512xf32>,
    %c8_99 = arith.constant 8 : index
    %c0_100 = arith.constant 0 : index
    %90 = vector.load %arg15[%c8_99, %c0_100] : memref<64x512xf32, #tpu.memory_space<vmem>>, vector<1x512xf32>
    %c0_101 = arith.constant 0 : index
    %c1024 = arith.constant 1024 : index
    %91 = vector.load %arg16[%c0_101, %c1024] : memref<2x2560xf32, #tpu.memory_space<vmem>>, vector<1x512xf32>
    tpu.vector_store %arg16[%c0_101, %c1024], %90 {strides = array<i32>} : memref<2x2560xf32, #tpu.memory_space<vmem>>, vector<1x512xf32>,
    %c12 = arith.constant 12 : index
    %c0_102 = arith.constant 0 : index
    %92 = vector.load %arg15[%c12, %c0_102] : memref<64x512xf32, #tpu.memory_space<vmem>>, vector<1x512xf32>
    %c0_103 = arith.constant 0 : index
    %c1536 = arith.constant 1536 : index
    %93 = vector.load %arg16[%c0_103, %c1536] : memref<2x2560xf32, #tpu.memory_space<vmem>>, vector<1x512xf32>
    tpu.vector_store %arg16[%c0_103, %c1536], %92 {strides = array<i32>} : memref<2x2560xf32, #tpu.memory_space<vmem>>, vector<1x512xf32>,
    %c16 = arith.constant 16 : index
    %c0_104 = arith.constant 0 : index
    %94 = vector.load %arg15[%c16, %c0_104] : memref<64x512xf32, #tpu.memory_space<vmem>>, vector<1x512xf32>
    %c0_105 = arith.constant 0 : index
    %c2048 = arith.constant 2048 : index
    %95 = vector.load %arg16[%c0_105, %c2048] : memref<2x2560xf32, #tpu.memory_space<vmem>>, vector<1x512xf32>
    tpu.vector_store %arg16[%c0_105, %c2048], %94 {strides = array<i32>} : memref<2x2560xf32, #tpu.memory_space<vmem>>, vector<1x512xf32>,
    %c32_106 = arith.constant 32 : index
    %c0_107 = arith.constant 0 : index
    %96 = vector.load %arg15[%c32_106, %c0_107] : memref<64x512xf32, #tpu.memory_space<vmem>>, vector<1x512xf32>
    %c1_108 = arith.constant 1 : index
    %c0_109 = arith.constant 0 : index
    %97 = vector.load %arg16[%c1_108, %c0_109] : memref<2x2560xf32, #tpu.memory_space<vmem>>, vector<1x512xf32>
    tpu.vector_store %arg16[%c1_108, %c0_109], %96 {strides = array<i32>} : memref<2x2560xf32, #tpu.memory_space<vmem>>, vector<1x512xf32>,
    %c36 = arith.constant 36 : index
    %c0_110 = arith.constant 0 : index
    %98 = vector.load %arg15[%c36, %c0_110] : memref<64x512xf32, #tpu.memory_space<vmem>>, vector<1x512xf32>
    %c1_111 = arith.constant 1 : index
    %c512_112 = arith.constant 512 : index
    %99 = vector.load %arg16[%c1_111, %c512_112] : memref<2x2560xf32, #tpu.memory_space<vmem>>, vector<1x512xf32>
    tpu.vector_store %arg16[%c1_111, %c512_112], %98 {strides = array<i32>} : memref<2x2560xf32, #tpu.memory_space<vmem>>, vector<1x512xf32>,
    %c40 = arith.constant 40 : index
    %c0_113 = arith.constant 0 : index
    %100 = vector.load %arg15[%c40, %c0_113] : memref<64x512xf32, #tpu.memory_space<vmem>>, vector<1x512xf32>
    %c1_114 = arith.constant 1 : index
    %c1024_115 = arith.constant 1024 : index
    %101 = vector.load %arg16[%c1_114, %c1024_115] : memref<2x2560xf32, #tpu.memory_space<vmem>>, vector<1x512xf32>
    tpu.vector_store %arg16[%c1_114, %c1024_115], %100 {strides = array<i32>} : memref<2x2560xf32, #tpu.memory_space<vmem>>, vector<1x512xf32>,
    %c44 = arith.constant 44 : index
    %c0_116 = arith.constant 0 : index
    %102 = vector.load %arg15[%c44, %c0_116] : memref<64x512xf32, #tpu.memory_space<vmem>>, vector<1x512xf32>
    %c1_117 = arith.constant 1 : index
    %c1536_118 = arith.constant 1536 : index
    %103 = vector.load %arg16[%c1_117, %c1536_118] : memref<2x2560xf32, #tpu.memory_space<vmem>>, vector<1x512xf32>
    tpu.vector_store %arg16[%c1_117, %c1536_118], %102 {strides = array<i32>} : memref<2x2560xf32, #tpu.memory_space<vmem>>, vector<1x512xf32>,
    %c48 = arith.constant 48 : index
    %c0_119 = arith.constant 0 : index
    %104 = vector.load %arg15[%c48, %c0_119] : memref<64x512xf32, #tpu.memory_space<vmem>>, vector<1x512xf32>
    %c1_120 = arith.constant 1 : index
    %c2048_121 = arith.constant 2048 : index
    %105 = vector.load %arg16[%c1_120, %c2048_121] : memref<2x2560xf32, #tpu.memory_space<vmem>>, vector<1x512xf32>
    tpu.vector_store %arg16[%c1_120, %c2048_121], %104 {strides = array<i32>} : memref<2x2560xf32, #tpu.memory_space<vmem>>, vector<1x512xf32>,
    %c0_122 = arith.constant 0 : index
    %c0_123 = arith.constant 0 : index
    %106 = vector.load %arg16[%c0_122, %c0_123] : memref<2x2560xf32, #tpu.memory_space<vmem>>, vector<2x2560xf32>
    %c0_124 = arith.constant 0 : index
    %c0_125 = arith.constant 0 : index
    %107 = vector.load %arg5[%c0_124, %c0_125] : memref<2560x120xf32, #tpu.memory_space<vmem>>, vector<2560x120xf32>
    %cst_126 = arith.constant dense<0.000000e+00> : vector<2x120xf32>
    %108 = tpu.matmul %106, %107, %cst_126 {dimension_numbers = #tpu.dot_dimension_numbers<[1], [0], [0], [1], [0, 0, 1, 1], [], []>} : vector<2x2560xf32>, vector<2560x120xf32>, vector<2x120xf32> -> vector<2x120xf32>
    %c0_127 = arith.constant 0 : index
    %c0_128 = arith.constant 0 : index
    %109 = vector.load %arg6[%c0_127, %c0_128] : memref<1x120xf32, #tpu.memory_space<vmem>>, vector<1x120xf32>
    %110 = vector.broadcast %109 : vector<1x120xf32> to vector<2x120xf32>
    %111 = arith.addf %108, %110 : vector<2x120xf32>
    %cst_129 = arith.constant 0.000000e+00 : f32
    %112 = vector.broadcast %cst_129 : f32 to vector<2x120xf32>
    %113 = arith.maximumf %111, %112 : vector<2x120xf32>
    %c0_130 = arith.constant 0 : index
    %c0_131 = arith.constant 0 : index
    %114 = vector.load %arg7[%c0_130, %c0_131] : memref<120x84xf32, #tpu.memory_space<vmem>>, vector<120x84xf32>
    %cst_132 = arith.constant dense<0.000000e+00> : vector<2x84xf32>
    %115 = tpu.matmul %113, %114, %cst_132 {dimension_numbers = #tpu.dot_dimension_numbers<[1], [0], [0], [1], [0, 0, 1, 1], [], []>} : vector<2x120xf32>, vector<120x84xf32>, vector<2x84xf32> -> vector<2x84xf32>
    %c0_133 = arith.constant 0 : index
    %c0_134 = arith.constant 0 : index
    %116 = vector.load %arg8[%c0_133, %c0_134] : memref<1x84xf32, #tpu.memory_space<vmem>>, vector<1x84xf32>
    %117 = vector.broadcast %116 : vector<1x84xf32> to vector<2x84xf32>
    %118 = arith.addf %115, %117 : vector<2x84xf32>
    %cst_135 = arith.constant 0.000000e+00 : f32
    %119 = vector.broadcast %cst_135 : f32 to vector<2x84xf32>
    %120 = arith.maximumf %118, %119 : vector<2x84xf32>
    %c0_136 = arith.constant 0 : index
    %c0_137 = arith.constant 0 : index
    %121 = vector.load %arg9[%c0_136, %c0_137] : memref<84x10xf32, #tpu.memory_space<vmem>>, vector<84x10xf32>
    %cst_138 = arith.constant dense<0.000000e+00> : vector<2x10xf32>
    %122 = tpu.matmul %120, %121, %cst_138 {dimension_numbers = #tpu.dot_dimension_numbers<[1], [0], [0], [1], [0, 0, 1, 1], [], []>} : vector<2x84xf32>, vector<84x10xf32>, vector<2x10xf32> -> vector<2x10xf32>
    %c0_139 = arith.constant 0 : index
    %c0_140 = arith.constant 0 : index
    %123 = vector.load %arg10[%c0_139, %c0_140] : memref<1x10xf32, #tpu.memory_space<vmem>>, vector<1x10xf32>
    %124 = vector.broadcast %123 : vector<1x10xf32> to vector<2x10xf32>
    %125 = arith.addf %122, %124 : vector<2x10xf32>
    %c0_141 = arith.constant 0 : index
    %c0_142 = arith.constant 0 : index
    %126 = vector.load %arg11[%c0_141, %c0_142] : memref<2x10xf32, #tpu.memory_space<vmem>>, vector<2x10xf32>
    tpu.vector_store %arg11[%c0_141, %c0_142], %125 {strides = array<i32>} : memref<2x10xf32, #tpu.memory_space<vmem>>, vector<2x10xf32>,
    return
  }
}

</mosaic_0001>

<bundles_post_ra>
// kernel: net_forward.1
= control target key start
LH: loop header
LB: loop body
LE: loop exit
PB: predicated region body
PF: predicated region fallthrough
CT: control target
= control target key end

     0   :  { %v7524_v7 = vmov 0.0   ;;  %vm190_vm0 = vcmask 785408   ;;  %s11836_s0 = inlined_call_operand.vmem [shape: f32[68,96], index: 0, kind: input, shape index: {}]   ;;  %s11837_s1 = inlined_call_operand.vmem [shape: f32[5,96,192], index: 1, kind: input, shape index: {}]   ;;  %s11838_s2 = inlined_call_operand.vmem [shape: f32[1,192], index: 2, kind: input, shape index: {}]   ;;  %s11839_s3 = inlined_call_operand.vmem [shape: f32[5,192,512], index: 3, kind: input, shape index: {}]   ;;  %s11840_s4 = inlined_call_operand.vmem [shape: f32[1,512], index: 4, kind: input, shape index: {}]   ;;  %s11841_s5 = inlined_call_operand.vmem [shape: f32[2560,120], index: 5, kind: input, shape index: {}]   ;;  %s11842_s6 = inlined_call_operand.vmem [shape: f32[1,120], index: 6, kind: input, shape index: {}]   ;;  %s11843_s7 = inlined_call_operand.vmem [shape: f32[120,84], index: 7, kind: input, shape index: {}]   ;;  %s11844_s8 = inlined_call_operand.vmem [shape: f32[1,84], index: 8, kind: input, shape index: {}]   ;;  %s11845_s9 = inlined_call_operand.vmem [shape: f32[84,10], index: 9, kind: input, shape index: {}]   ;;  %s11846_s10 = inlined_call_operand.vmem [shape: f32[1,10], index: 10, kind: input, shape index: {}]   ;;  %s11847_s11 = inlined_call_operand.hbm [shape: f32[2,10], index: 11, kind: output, shape index: {}]  }
   0x1   :  { %v5276_v0 = vld [vmem:[%s11837_s1 + $0xc8] sm:$0xff]  ;;  %v5278_v1 = vld [vmem:[%s11837_s1 + $0xd8] sm:$0xff]  ;;  %v5275_v2 = vld [vmem:[%s11837_s1 + $0xc0] sm:$0xff]  ;;  %279 = vmatprep.mubr.f32.mxu0 %v7524_v7  ;;  %56 = vst [vmem:[#allocation2 + $0x80] sm:$0x1] %v7524_v7 }
   0x2   :  { %v6317_v3 = vpack.c.bf16 %v5278_v1, %v5276_v0  ;;  %v5277_v4 = vld [vmem:[%s11837_s1 + $0xd0] sm:$0xff]  ;;  %v5280_v5 = vld [vmem:[%s11837_s1 + $0xe8] sm:$0xff]  ;;  %v5282_v6 = vld [vmem:[%s11837_s1 + $0xf8] sm:$0xff]  ;;  %76 = vst [vmem:[#allocation3 + $0x80] sm:$0xff] %v7524_v7 }
   0x3   :  { %119 = vst [vmem:[#allocation4 + $0x140] sm:$0x3] %v7524_v7  ;;  %120 = vst [vmem:[#allocation4 + $0x148] sm:$0x3] %v7524_v7  ;;  %v6319_v8 = vpack.c.bf16 %v5277_v4, %v5275_v2  ;;  %v6321_v9 = vpack.c.bf16 %v5282_v6, %v5280_v5  ;;  %v5279_v10 = vld [vmem:[%s11837_s1 + $0xe0] sm:$0xff]  ;;  %v5281_v11 = vld [vmem:[%s11837_s1 + $0xf0] sm:$0xff] }
   0x4   :  { %121 = vst [vmem:[#allocation4 + $0x150] sm:$0x3] %v7524_v7  ;;  %122 = vst [vmem:[#allocation4 + $0x158] sm:$0x3] %v7524_v7  ;;  %v5284_v12 = vld [vmem:[%s11837_s1 + $0x108] sm:$0xff]  ;;  %6318 = vmatprep.subr.bf16.mxu0 %v6317_v3  ;;  %v5286_v13 = vld [vmem:[%s11837_s1 + $0x118] sm:$0xff]  ;;  %v6323_v14 = vpack.c.bf16 %v5281_v11, %v5279_v10 }
   0x5   :  { %6320 = vmatpush1.bf16.msra.mxu0 %v6319_v8  ;;  %v6325_v15 = vpack.c.bf16 %v5286_v13, %v5284_v12  ;;  %v5283_v16 = vld [vmem:[%s11837_s1 + $0x100] sm:$0xff]  ;;  %v5285_v17 = vld [vmem:[%s11837_s1 + $0x110] sm:$0xff]  ;;  %v5288_v18 = vld [vmem:[%s11837_s1 + $0x128] sm:$0xff] }
   0x6   :  { %6322 = vmatprep.subr.bf16.mxu0 %v6321_v9  ;;  %v5290_v19 = vld [vmem:[%s11837_s1 + $0x138] sm:$0xff]  ;;  %v6327_v20 = vpack.c.bf16 %v5285_v17, %v5283_v16  ;;  %v5287_v22 = vld [vmem:[%s11837_s1 + $0x120] sm:$0xff]  ;;  %v5289_v23 = vld [vmem:[%s11837_s1 + $0x130] sm:$0xff] }
   0x7   :  { %v6329_v21 = vpack.c.bf16 %v5290_v19, %v5288_v18  ;;  %v5292_v24 = vld [vmem:[%s11837_s1 + $0x148] sm:$0xff]  ;;  %v5294_v25 = vld [vmem:[%s11837_s1 + $0x158] sm:$0xff]  ;;  %v6331_v26 = vpack.c.bf16 %v5289_v23, %v5287_v22  ;;  %v5291_v28 = vld [vmem:[%s11837_s1 + $0x140] sm:$0xff] }
   0x8   :  { %v6333_v27 = vpack.c.bf16 %v5294_v25, %v5292_v24  ;;  %v5293_v29 = vld [vmem:[%s11837_s1 + $0x150] sm:$0xff]  ;;  %v5296_v30 = vld [vmem:[%s11837_s1 + $0x168] sm:$0xff]  ;;  %v5298_v31 = vld [vmem:[%s11837_s1 + $0x178] sm:$0xff] }
   0x9   :  { %6324 = vmatpush1.bf16.msra.mxu0 %v6323_v14  ;;  %v6335_v32 = vpack.c.bf16 %v5293_v29, %v5291_v28  ;;  %v6337_v33 = vpack.c.bf16 %v5298_v31, %v5296_v30  ;;  %v5295_v34 = vld [vmem:[%s11837_s1 + $0x160] sm:$0xff]  ;;  %v5297_v35 = vld [vmem:[%s11837_s1 + $0x170] sm:$0xff]  ;;  %v134_v36 = vld [vmem:[%s11837_s1 + $0x8] sm:$0xff] }
   0xa   :  { %6326 = vmatprep.subr.bf16.mxu0 %v6325_v15  ;;  %v136_v37 = vld [vmem:[%s11837_s1 + $0x18] sm:$0xff]  ;;  %v6339_v38 = vpack.c.bf16 %v5297_v35, %v5295_v34  ;;  %v133_v40 = vld [vmem:[%s11837_s1] sm:$0xff]  ;;  %v135_v41 = vld [vmem:[%s11837_s1 + $0x10] sm:$0xff] }
   0xb   :  { %v6341_v39 = vpack.c.bf16 %v136_v37, %v134_v36  ;;  %v138_v42 = vld [vmem:[%s11837_s1 + $0x28] sm:$0xff]  ;;  %v140_v43 = vld [vmem:[%s11837_s1 + $0x38] sm:$0xff]  ;;  %v6343_v45 = vpack.c.bf16 %v135_v41, %v133_v40  ;;  %v137_v47 = vld [vmem:[%s11837_s1 + $0x20] sm:$0xff] }
   0xc   :  { %v157_v44 = vld [vmem:[%s11836_s0 + $0x1] sm:$0xff]  ;;  %v6345_v46 = vpack.c.bf16 %v140_v43, %v138_v42  ;;  %v139_v48 = vld [vmem:[%s11837_s1 + $0x30] sm:$0xff]  ;;  %v144_v50 = vld [vmem:[%s11837_s1 + $0x58] sm:$0xff] }
   0xd   :  { %6328 = vmatpush1.bf16.msra.mxu0 %v6327_v20  ;;  %v142_v49 = vld [vmem:[%s11837_s1 + $0x48] sm:$0xff]  ;;  %v6347_v52 = vpack.c.bf16 %v139_v48, %v137_v47  ;;  %v141_v54 = vld [vmem:[%s11837_s1 + $0x40] sm:$0xff]  ;;  %v143_v55 = vld [vmem:[%s11837_s1 + $0x50] sm:$0xff] }
   0xe   :  { %6330 = vmatprep.subr.bf16.mxu0 %v6329_v21  ;;  %v158_v51 = vld [vmem:[%s11836_s0 + $0x9] sm:$0xff]  ;;  %v6349_v53 = vpack.c.bf16 %v144_v50, %v142_v49  ;;  %v148_v57 = vld [vmem:[%s11837_s1 + $0x78] sm:$0xff]  ;;  %v6351_v59 = vpack.c.bf16 %v143_v55, %v141_v54  ;;  %v145_v61 = vld [vmem:[%s11837_s1 + $0x60] sm:$0xff] }
   0xf   :  { %v146_v56 = vld [vmem:[%s11837_s1 + $0x68] sm:$0xff]  ;;  %v159_v58 = vld [vmem:[%s11836_s0 + $0x11] sm:$0xff]  ;;  %v160_v1 = vld [vmem:[%s11836_s0 + $0x19] sm:$0xff] }
  0x10   :  { %v6353_v60 = vpack.c.bf16 %v148_v57, %v146_v56  ;;  %v147_v62 = vld [vmem:[%s11837_s1 + $0x70] sm:$0xff]  ;;  %v150_v63 = vld [vmem:[%s11837_s1 + $0x88] sm:$0xff]  ;;  %v152_v0 = vld [vmem:[%s11837_s1 + $0x98] sm:$0xff] }
  0x11   :  { %6332 = vmatpush1.bf16.msra.mxu0 %v6331_v26  ;;  %v6355_v2 = vpack.c.bf16 %v147_v62, %v145_v61  ;;  %v6357_v3 = vpack.c.bf16 %v152_v0, %v150_v63  ;;  %v149_v4 = vld [vmem:[%s11837_s1 + $0x80] sm:$0xff]  ;;  %v151_v5 = vld [vmem:[%s11837_s1 + $0x90] sm:$0xff]  ;;  %v154_v6 = vld [vmem:[%s11837_s1 + $0xa8] sm:$0xff] }
  0x12   :  { %6334 = vmatprep.subr.bf16.mxu0 %v6333_v27  ;;  %v156_v8 = vld [vmem:[%s11837_s1 + $0xb8] sm:$0xff]  ;;  %v161_v9 = vld [vmem:[%s11836_s0 + $0x21] sm:$0xff]  ;;  %v6359_v10 = vpack.c.bf16 %v151_v5, %v149_v4  ;;  %v155_v13 = vld [vmem:[%s11837_s1 + $0xb0] sm:$0xff] }
  0x13   :  { %v6361_v11 = vpack.c.bf16 %v156_v8, %v154_v6  ;;  %v153_v12 = vld [vmem:[%s11837_s1 + $0xa0] sm:$0xff]  ;;  %v5316_v14 = vld [vmem:[%s11837_s1 + $0x188] sm:$0xff]  ;;  %v5318_v15 = vld [vmem:[%s11837_s1 + $0x198] sm:$0xff] }
  0x14   :  { %v162_v16 = vld [vmem:[%s11836_s0 + $0x29] sm:$0xff]  ;;  %v6363_v17 = vpack.c.bf16 %v155_v13, %v153_v12  ;;  %v6365_v18 = vpack.c.bf16 %v5318_v15, %v5316_v14  ;;  %v163_v19 = vld [vmem:[%s11836_s0 + $0x31] sm:$0xff]  ;;  %v164_v20 = vld [vmem:[%s11836_s0 + $0x39] sm:$0xff] }
  0x15   :  { %6336 = vmatpush1.bf16.msra.mxu0 %v6335_v32  ;;  %v5315_v21 = vld [vmem:[%s11837_s1 + $0x180] sm:$0xff]  ;;  %v5317_v22 = vld [vmem:[%s11837_s1 + $0x190] sm:$0xff] }
  0x16   :  { %6338 = vmatprep.subr.bf16.mxu0 %v6337_v33 }
  0x19   :  { %6340 = vmatpush1.bf16.msra.mxu0 %v6339_v38 }
  0x1a   :  { %6342 = vmatprep.subr.bf16.mxu0 %v6341_v39 }
  0x1c   :  { %5299 = vmatmul.mubr.msk.f32.vlgmr.msra.gmra.mrb[0].mxu0 %vm190_vm0, %v157_v44 }
  0x1d   :  { %6344 = vmatpush1.bf16.msra.mxu0 %v6343_v45  ;;  %285 = vmatprep.mubr.f32.mxu0 %v7524_v7 }
  0x1e   :  { %6346 = vmatprep.subr.bf16.mxu0 %v6345_v46 }
  0x20   :  { %5300 = vmatmul.mubr.msk.f32.gmra.mrb[2].mxu0 %vm190_vm0, %v158_v51 }
  0x21   :  { %291 = vmatprep.mubr.f32.mxu0 %v7524_v7  ;;  %6348 = vmatpush1.bf16.msra.mxu0 %v6347_v52 }
  0x22   :  { %6350 = vmatprep.subr.bf16.mxu0 %v6349_v53 }
  0x24   :  { %5301 = vmatmul.mubr.msk.f32.gmra.mrb[4].mxu0 %vm190_vm0, %v159_v58 }
  0x25   :  { %297 = vmatprep.mubr.f32.mxu0 %v7524_v7  ;;  %6352 = vmatpush1.bf16.msra.mxu0 %v6351_v59 }
  0x26   :  { %6354 = vmatprep.subr.bf16.mxu0 %v6353_v60 }
  0x28   :  { %5302 = vmatmul.mubr.msk.f32.gmra.mrb[6].mxu0 %vm190_vm0, %v160_v1 }
  0x29   :  { %303 = vmatprep.mubr.f32.mxu0 %v7524_v7  ;;  %6356 = vmatpush1.bf16.msra.mxu0 %v6355_v2 }
  0x2a   :  { %6358 = vmatprep.subr.bf16.mxu0 %v6357_v3 }
  0x2c   :  { %5303 = vmatmul.mubr.msk.f32.gmra.mrb[8].mxu0 %vm190_vm0, %v161_v9 }
  0x2d   :  { %309 = vmatprep.mubr.f32.mxu0 %v7524_v7  ;;  %6360 = vmatpush1.bf16.msra.mxu0 %v6359_v10 }
  0x2e   :  { %6362 = vmatprep.subr.bf16.mxu0 %v6361_v11 }
  0x30   :  { %5304 = vmatmul.mubr.msk.f32.gmra.mrb[10].mxu0 %vm190_vm0, %v162_v16 }
  0x31   :  { %315 = vmatprep.mubr.f32.mxu0 %v7524_v7  ;;  %6364 = vmatpush1.bf16.msra.mxu0 %v6363_v17 }
  0x32   :  { %6366 = vmatprep.subr.bf16.mxu0 %v6365_v18 }
  0x34   :  { %5305 = vmatmul.mubr.msk.f32.gmra.mrb[12].mxu0 %vm190_vm0, %v163_v19 }
  0x35   :  { %321 = vmatprep.mubr.f32.mxu0 %v7524_v7 }
  0x36   :  { %16 = vsyncpa [#allocation8], 0  ;;  %v5320_v23 = vld [vmem:[%s11837_s1 + $0x1a8] sm:$0xff]  ;;  %v5322_v24 = vld [vmem:[%s11837_s1 + $0x1b8] sm:$0xff]  ;;  %v6367_v26 = vpack.c.bf16 %v5317_v22, %v5315_v21  ;;  %vm40_vm1 = vcmask 572416   ;;  %vm60_vm2 = vcmask 523264  }
  0x37   :  { %v125_v25 = vld [vmem:[%s11836_s0] sm:$0xff]  ;;  %v6369_v27 = vpack.c.bf16 %v5322_v24, %v5320_v23  ;;  %v5321_v29 = vld [vmem:[%s11837_s1 + $0x1b0] sm:$0xff]  ;;  %v5324_v30 = vld [vmem:[%s11837_s1 + $0x1c8] sm:$0xff]  ;;  %41 = vst.msk [vmem:[#allocation2 + $0x8] sm:$0xff] %vm40_vm1, %v7524_v7  ;;  %vm57_vm3 = vcmask 565248   ;;  %vm1121_vm4 = vcmask 1046528  }
  0x38   :  { %5306 = vmatmul.mubr.msk.f32.gmra.mrb[14].mxu0 %vm190_vm0, %v164_v20  ;;  %v5319_v28 = vld [vmem:[%s11837_s1 + $0x1a0] sm:$0xff]  ;;  %v5326_v31 = vld [vmem:[%s11837_s1 + $0x1d8] sm:$0xff]  ;;  %v126_v32 = vld [vmem:[%s11836_s0 + $0x8] sm:$0xff]  ;;  %43 = vst.msk [vmem:[#allocation2 + $0x18] sm:$0xff] %vm40_vm1, %v7524_v7  ;;  %s7525_s15 = smov 122   ;;  %vm1236_vm5 = vcmask 998400  }
  0x39   :  { %416 = vmatprep.mubr.f32.mxu0 %v7524_v7  ;;  %v6371_v33 = vpack.c.bf16 %v5321_v29, %v5319_v28  ;;  %v6373_v34 = vpack.c.bf16 %v5326_v31, %v5324_v30  ;;  %v5323_v35 = vld [vmem:[%s11837_s1 + $0x1c0] sm:$0xff]  ;;  %v5325_v36 = vld [vmem:[%s11837_s1 + $0x1d0] sm:$0xff]  ;;  %v5328_v37 = vld [vmem:[%s11837_s1 + $0x1e8] sm:$0xff]  ;;  %45 = vst.msk [vmem:[#allocation2 + $0x28] sm:$0xff] %vm40_vm1, %v7524_v7  ;;  %vm1524_vm6 = vcmask 1045504   ;;  %vm2157_vm7 = vcmask 1043456  }
  0x3a   :  { %v5330_v38 = vld [vmem:[%s11837_s1 + $0x1f8] sm:$0xff]  ;;  %v127_v39 = vld [vmem:[%s11836_s0 + $0x10] sm:$0xff]  ;;  %v6375_v40 = vpack.c.bf16 %v5325_v36, %v5323_v35  ;;  %v5327_v42 = vld [vmem:[%s11837_s1 + $0x1e0] sm:$0xff]  ;;  %47 = vst.msk [vmem:[#allocation2 + $0x38] sm:$0xff] %vm40_vm1, %v7524_v7  ;;  %vm2579_vm8 = vcmask 1041408   ;;  %vm82_vm9 = vcmask 261120  }
  0x3b   :  { %v6377_v41 = vpack.c.bf16 %v5330_v38, %v5328_v37  ;;  %v5329_v43 = vld [vmem:[%s11837_s1 + $0x1f0] sm:$0xff]  ;;  %v5332_v44 = vld [vmem:[%s11837_s1 + $0x208] sm:$0xff]  ;;  %v5334_v45 = vld [vmem:[%s11837_s1 + $0x218] sm:$0xff]  ;;  %49 = vst.msk [vmem:[#allocation2 + $0x48] sm:$0xff] %vm40_vm1, %v7524_v7  ;;  %vm123_vm10 = vcmask 254976   ;;  %vm7529_vm12 = vmmov 0  }
  0x3c   :  { %5307 = vmatmul.mubr.msk.f32.vlgmr.msra.gmra.mrb[0].mxu0 %vm190_vm0, %v125_v25  ;;  %v128_v46 = vld [vmem:[%s11836_s0 + $0x18] sm:$0xff]  ;;  %v6379_v47 = vpack.c.bf16 %v5329_v43, %v5327_v42  ;;  %v6381_v48 = vpack.c.bf16 %v5334_v45, %v5332_v44  ;;  %v5331_v49 = vld [vmem:[%s11837_s1 + $0x200] sm:$0xff]  ;;  %v5333_v50 = vld [vmem:[%s11837_s1 + $0x210] sm:$0xff]  ;;  %51 = vst.msk [vmem:[#allocation2 + $0x58] sm:$0xff] %vm40_vm1, %v7524_v7  ;;  %vm5089_vm13 = vcmask 982016   ;;  %vm5182_vm14 = vcmask 687104  }
  0x3d   :  { %6368 = vmatpush1.bf16.msra.mxu0 %v6367_v26  ;;  %422 = vmatprep.mubr.f32.mxu0 %v7524_v7  ;;  %v5336_v51 = vld [vmem:[%s11837_s1 + $0x228] sm:$0xff]  ;;  %v5338_v52 = vld [vmem:[%s11837_s1 + $0x238] sm:$0xff]  ;;  %v129_v53 = vld [vmem:[%s11836_s0 + $0x20] sm:$0xff]  ;;  %v6383_v54 = vpack.c.bf16 %v5333_v50, %v5331_v49  ;;  %53 = vst.msk [vmem:[#allocation2 + $0x68] sm:$0xff] %vm40_vm1, %v7524_v7  ;;  %s7530_s27 = smov [#allocation7]   ;;  %vm5259_vm15 = vcmask 74752  }
  0x3e   :  { %6370 = vmatprep.subr.bf16.mxu0 %v6369_v27  ;;  %v6385_v55 = vpack.c.bf16 %v5338_v52, %v5336_v51  ;;  %v5335_v56 = vld [vmem:[%s11837_s1 + $0x220] sm:$0xff]  ;;  %v5337_v57 = vld [vmem:[%s11837_s1 + $0x230] sm:$0xff]  ;;  %v5348_v58 = vld [vmem:[%s11837_s1 + $0x248] sm:$0xff]  ;;  %55 = vst.msk [vmem:[#allocation2 + $0x78] sm:$0xff] %vm40_vm1, %v7524_v7  ;;  %s5267_s28 = sshll.u32 %s7530_s27, 4  ;;  %s5268_s28 = int_to_ptr.vmem [resolvable:$true] %s5267_s28 }
  0x3f   :  { %v5350_v59 = vld [vmem:[%s11837_s1 + $0x258] sm:$0xff]  ;;  %v130_v60 = vld [vmem:[%s11836_s0 + $0x28] sm:$0xff]  ;;  %v6387_v61 = vpack.c.bf16 %v5337_v57, %v5335_v56  ;;  %v131_v63 = vld [vmem:[%s11836_s0 + $0x30] sm:$0xff]  ;;  %61 = vst.msk [vmem:[#allocation3 + $0x8] sm:$0xff] %vm60_vm2, %v7524_v7  ;;  %p7505_p1 = scmp.lt.s32.totalorder %s5268_s28, %s5268_s28 }
  0x40   :  { %5308 = vmatmul.mubr.msk.f32.gmra.mrb[2].mxu0 %vm190_vm0, %v126_v32  ;;  %v6389_v62 = vpack.c.bf16 %v5350_v59, %v5348_v58  ;;  %v132_v0 = vld [vmem:[%s11836_s0 + $0x38] sm:$0xff]  ;;  %v5347_v1 = vld [vmem:[%s11837_s1 + $0x240] sm:$0xff]  ;;  %v5349_v2 = vld [vmem:[%s11837_s1 + $0x250] sm:$0xff]  ;;  %63 = vst.msk [vmem:[#allocation3 + $0x18] sm:$0xff] %vm60_vm2, %v7524_v7 }
  0x41   :  { %428 = vmatprep.mubr.f32.mxu0 %v7524_v7  ;;  %6372 = vmatpush1.bf16.msra.mxu0 %v6371_v33  ;;  %v5352_v3 = vld [vmem:[%s11837_s1 + $0x268] sm:$0xff]  ;;  %v5354_v4 = vld [vmem:[%s11837_s1 + $0x278] sm:$0xff]  ;;  %v6391_v6 = vpack.c.bf16 %v5349_v2, %v5347_v1  ;;  %v5351_v9 = vld [vmem:[%s11837_s1 + $0x260] sm:$0xff]  ;;  %65 = vst.msk [vmem:[#allocation3 + $0x28] sm:$0xff] %vm60_vm2, %v7524_v7 }
  0x42   :  { %6374 = vmatprep.subr.bf16.mxu0 %v6373_v34  ;;  %v465_v5 = vld [vmem:[%s11836_s0 + $0x2] sm:$0xff]  ;;  %v6393_v8 = vpack.c.bf16 %v5354_v4, %v5352_v3  ;;  %v5353_v10 = vld [vmem:[%s11837_s1 + $0x270] sm:$0xff]  ;;  %v5358_v12 = vld [vmem:[%s11837_s1 + $0x298] sm:$0xff]  ;;  %67 = vst.msk [vmem:[#allocation3 + $0x38] sm:$0xff] %vm60_vm2, %v7524_v7 }
  0x43   :  { %v5356_v11 = vld [vmem:[%s11837_s1 + $0x288] sm:$0xff]  ;;  %v6395_v14 = vpack.c.bf16 %v5353_v10, %v5351_v9  ;;  %v5355_v16 = vld [vmem:[%s11837_s1 + $0x280] sm:$0xff]  ;;  %v5357_v17 = vld [vmem:[%s11837_s1 + $0x290] sm:$0xff]  ;;  %69 = vst.msk [vmem:[#allocation3 + $0x48] sm:$0xff] %vm60_vm2, %v7524_v7 }
  0x44   :  { %5309 = vmatmul.mubr.msk.f32.gmra.mrb[4].mxu0 %vm190_vm0, %v127_v39  ;;  %v466_v13 = vld [vmem:[%s11836_s0 + $0xa] sm:$0xff]  ;;  %v6397_v15 = vpack.c.bf16 %v5358_v12, %v5356_v11  ;;  %v5362_v19 = vld [vmem:[%s11837_s1 + $0x2b8] sm:$0xff]  ;;  %v6399_v21 = vpack.c.bf16 %v5357_v17, %v5355_v16  ;;  %v5359_v23 = vld [vmem:[%s11837_s1 + $0x2a0] sm:$0xff]  ;;  %71 = vst.msk [vmem:[#allocation3 + $0x58] sm:$0xff] %vm60_vm2, %v7524_v7 }
  0x45   :  { %434 = vmatprep.mubr.f32.mxu0 %v7524_v7  ;;  %6376 = vmatpush1.bf16.msra.mxu0 %v6375_v40  ;;  %v5360_v18 = vld [vmem:[%s11837_s1 + $0x2a8] sm:$0xff]  ;;  %v467_v20 = vld [vmem:[%s11836_s0 + $0x12] sm:$0xff]  ;;  %v468_v27 = vld [vmem:[%s11836_s0 + $0x1a] sm:$0xff]  ;;  %73 = vst.msk [vmem:[#allocation3 + $0x68] sm:$0xff] %vm60_vm2, %v7524_v7 }
  0x46   :  { %6378 = vmatprep.subr.bf16.mxu0 %v6377_v41  ;;  %v6401_v22 = vpack.c.bf16 %v5362_v19, %v5360_v18  ;;  %v5361_v24 = vld [vmem:[%s11837_s1 + $0x2b0] sm:$0xff]  ;;  %v5364_v25 = vld [vmem:[%s11837_s1 + $0x2c8] sm:$0xff]  ;;  %v5366_v26 = vld [vmem:[%s11837_s1 + $0x2d8] sm:$0xff]  ;;  %75 = vst.msk [vmem:[#allocation3 + $0x78] sm:$0xff] %vm60_vm2, %v7524_v7 }
  0x47   :  { %v6403_v28 = vpack.c.bf16 %v5361_v24, %v5359_v23  ;;  %v6405_v29 = vpack.c.bf16 %v5366_v26, %v5364_v25  ;;  %v5363_v30 = vld [vmem:[%s11837_s1 + $0x2c0] sm:$0xff]  ;;  %v5365_v31 = vld [vmem:[%s11837_s1 + $0x2d0] sm:$0xff]  ;;  %v5368_v32 = vld [vmem:[%s11837_s1 + $0x2e8] sm:$0xff]  ;;  %77 = vst.msk [vmem:[#allocation3 + $0x88] sm:$0xff] %vm60_vm2, %v7524_v7 }
  0x48   :  { %5310 = vmatmul.mubr.msk.f32.gmra.mrb[6].mxu0 %vm190_vm0, %v128_v46  ;;  %v5370_v33 = vld [vmem:[%s11837_s1 + $0x2f8] sm:$0xff]  ;;  %v469_v34 = vld [vmem:[%s11836_s0 + $0x22] sm:$0xff]  ;;  %v6407_v35 = vpack.c.bf16 %v5365_v31, %v5363_v30  ;;  %v5369_v38 = vld [vmem:[%s11837_s1 + $0x2f0] sm:$0xff]  ;;  %58 = vst.msk [vmem:[#allocation2 + $0x88] sm:$0x1] %vm57_vm3, %v7524_v7 }
  0x49   :  { %440 = vmatprep.mubr.f32.mxu0 %v7524_v7  ;;  %6380 = vmatpush1.bf16.msra.mxu0 %v6379_v47  ;;  %v6409_v36 = vpack.c.bf16 %v5370_v33, %v5368_v32  ;;  %v5367_v37 = vld [vmem:[%s11837_s1 + $0x2e0] sm:$0xff]  ;;  %v5380_v39 = vld [vmem:[%s11837_s1 + $0x308] sm:$0xff]  ;;  %v5382_v40 = vld [vmem:[%s11837_s1 + $0x318] sm:$0xff] }
  0x4a   :  { %6382 = vmatprep.subr.bf16.mxu0 %v6381_v48  ;;  %v470_v41 = vld [vmem:[%s11836_s0 + $0x2a] sm:$0xff]  ;;  %v6411_v42 = vpack.c.bf16 %v5369_v38, %v5367_v37  ;;  %v6413_v43 = vpack.c.bf16 %v5382_v40, %v5380_v39  ;;  %v471_v44 = vld [vmem:[%s11836_s0 + $0x32] sm:$0xff]  ;;  %v472_v45 = vld [vmem:[%s11836_s0 + $0x3a] sm:$0xff] }
  0x4b   :  { %v5379_v46 = vld [vmem:[%s11837_s1 + $0x300] sm:$0xff]  ;;  %v5381_v47 = vld [vmem:[%s11837_s1 + $0x310] sm:$0xff]  ;;  %v5384_v48 = vld [vmem:[%s11837_s1 + $0x328] sm:$0xff] }
  0x4c   :  { %5311 = vmatmul.mubr.msk.f32.gmra.mrb[8].mxu0 %vm190_vm0, %v129_v53  ;;  %v5386_v49 = vld [vmem:[%s11837_s1 + $0x338] sm:$0xff]  ;;  %v651_v50 = vld [vmem:[%s11836_s0 + $0x3] sm:$0xff]  ;;  %v6415_v51 = vpack.c.bf16 %v5381_v47, %v5379_v46  ;;  %v652_v57 = vld [vmem:[%s11836_s0 + $0xb] sm:$0xff] }
  0x4d   :  { %446 = vmatprep.mubr.f32.mxu0 %v7524_v7  ;;  %6384 = vmatpush1.bf16.msra.mxu0 %v6383_v54  ;;  %v6417_v52 = vpack.c.bf16 %v5386_v49, %v5384_v48  ;;  %v5383_v53 = vld [vmem:[%s11837_s1 + $0x320] sm:$0xff]  ;;  %v5385_v54 = vld [vmem:[%s11837_s1 + $0x330] sm:$0xff]  ;;  %v5390_v56 = vld [vmem:[%s11837_s1 + $0x358] sm:$0xff] }
  0x4e   :  { %6386 = vmatprep.subr.bf16.mxu0 %v6385_v55  ;;  %v5388_v55 = vld [vmem:[%s11837_s1 + $0x348] sm:$0xff]  ;;  %v6419_v58 = vpack.c.bf16 %v5385_v54, %v5383_v53  ;;  %v5391_v3 = vld [vmem:[%s11837_s1 + $0x360] sm:$0xff]  ;;  %v5393_v4 = vld [vmem:[%s11837_s1 + $0x370] sm:$0xff] }
  0x4f   :  { %v6421_v59 = vpack.c.bf16 %v5390_v56, %v5388_v55  ;;  %v6427_v9 = vpack.c.bf16 %v5393_v4, %v5391_v3  ;;  %v5395_v11 = vld [vmem:[%s11837_s1 + $0x380] sm:$0xff]  ;;  %v5397_v12 = vld [vmem:[%s11837_s1 + $0x390] sm:$0xff]  ;;  %v5412_v32 = vld [vmem:[%s11839_s3 + $0x308] sm:$0xff] }
  0x50   :  { %5312 = vmatmul.mubr.msk.f32.gmra.mrb[10].mxu0 %vm190_vm0, %v130_v60  ;;  %v5387_v60 = vld [vmem:[%s11837_s1 + $0x340] sm:$0xff]  ;;  %v6431_v16 = vpack.c.bf16 %v5397_v12, %v5395_v11  ;;  %v5401_v19 = vld [vmem:[%s11837_s1 + $0x3b0] sm:$0xff]  ;;  %v5416_v33 = vld [vmem:[%s11839_s3 + $0x328] sm:$0xff] }
  0x51   :  { %452 = vmatprep.mubr.f32.mxu0 %v7524_v7  ;;  %6388 = vmatpush1.bf16.msra.mxu0 %v6387_v61  ;;  %v5389_v61 = vld [vmem:[%s11837_s1 + $0x350] sm:$0xff]  ;;  %v5399_v18 = vld [vmem:[%s11837_s1 + $0x3a0] sm:$0xff]  ;;  %v5424_v37 = vld [vmem:[%s11839_s3 + $0x368] sm:$0xff] }
  0x52   :  { %6390 = vmatprep.subr.bf16.mxu0 %v6389_v62  ;;  %v5392_v62 = vld [vmem:[%s11837_s1 + $0x368] sm:$0xff]  ;;  %v6423_v1 = vpack.c.bf16 %v5389_v61, %v5387_v60  ;;  %v658_v23 = vld [vmem:[%s11836_s0 + $0x3b] sm:$0xff] }
  0x53   :  { %v837_v24 = vld [vmem:[%s11836_s0 + $0x4] sm:$0xff]  ;;  %v838_v25 = vld [vmem:[%s11836_s0 + $0xc] sm:$0xff]  ;;  %v839_v26 = vld [vmem:[%s11836_s0 + $0x14] sm:$0xff] }
  0x54   :  { %5313 = vmatmul.mubr.msk.f32.gmra.mrb[12].mxu0 %vm190_vm0, %v131_v63  ;;  %v5394_v63 = vld [vmem:[%s11837_s1 + $0x378] sm:$0xff]  ;;  %v5419_v40 = vld [vmem:[%s11839_s3 + $0x340] sm:$0xff]  ;;  %v5436_v48 = vld [vmem:[%s11839_s3 + $0x3c8] sm:$0xff] }
  0x55   :  { %458 = vmatprep.mubr.f32.mxu0 %v7524_v7  ;;  %v6425_v2 = vpack.c.bf16 %v5394_v63, %v5392_v62  ;;  %v843_v30 = vld [vmem:[%s11836_s0 + $0x34] sm:$0xff]  ;;  %v844_v31 = vld [vmem:[%s11836_s0 + $0x3c] sm:$0xff]  ;;  %v5440_v49 = vld [vmem:[%s11839_s3 + $0x3e8] sm:$0xff] }
  0x56   :  { %v5427_v46 = vld [vmem:[%s11839_s3 + $0x380] sm:$0xff]  ;;  %v5444_v54 = vld [vmem:[%s11839_s3 + $0x408] sm:$0xff] }
  0x57   :  { %v5431_v47 = vld [vmem:[%s11839_s3 + $0x3a0] sm:$0xff]  ;;  %v5448_v55 = vld [vmem:[%s11839_s3 + $0x428] sm:$0xff] }
  0x58   :  { %5314 = vmatmul.mubr.msk.f32.gmra.mrb[14].mxu0 %vm190_vm0, %v132_v0  ;;  %v653_v0 = vld [vmem:[%s11836_s0 + $0x13] sm:$0xff]  ;;  %v5439_v53 = vld [vmem:[%s11839_s3 + $0x3e0] sm:$0xff]  ;;  %v5452_v60 = vld [vmem:[%s11839_s3 + $0x448] sm:$0xff] }
  0x59   :  { %586 = vmatprep.mubr.f32.mxu0 %v7524_v7  ;;  %v5456_v61 = vld [vmem:[%s11839_s3 + $0x468] sm:$0xff] }
  0x5a   :  { %v6457_v63 = vpack.c.bf16 %v5456_v61, %v5452_v60  ;;  %v5464_v3 = vld [vmem:[%s11839_s3 + $0x4a8] sm:$0xff] }
  0x5c   :  { %5339 = vmatmul.mubr.msk.f32.vlgmr.msra.gmra.mrb[0].mxu0 %vm190_vm0, %v465_v5  ;;  %v5396_v5 = vld [vmem:[%s11837_s1 + $0x388] sm:$0xff] }
  0x5d   :  { %6392 = vmatpush1.bf16.msra.mxu0 %v6391_v6  ;;  %592 = vmatprep.mubr.f32.mxu0 %v7524_v7  ;;  %v5398_v6 = vld [vmem:[%s11837_s1 + $0x398] sm:$0xff] }
  0x5e   :  { %6394 = vmatprep.subr.bf16.mxu0 %v6393_v8  ;;  %v654_v8 = vld [vmem:[%s11836_s0 + $0x1b] sm:$0xff]  ;;  %v6429_v10 = vpack.c.bf16 %v5398_v6, %v5396_v5 }
  0x5f   :  { %v5459_v6 = vld [vmem:[%s11839_s3 + $0x480] sm:$0xff] }
  0x60   :  { %5340 = vmatmul.mubr.msk.f32.gmra.mrb[2].mxu0 %vm190_vm0, %v466_v13  ;;  %v5400_v13 = vld [vmem:[%s11837_s1 + $0x3a8] sm:$0xff] }
  0x61   :  { %598 = vmatprep.mubr.f32.mxu0 %v7524_v7  ;;  %6396 = vmatpush1.bf16.msra.mxu0 %v6395_v14  ;;  %v5402_v14 = vld [vmem:[%s11837_s1 + $0x3b8] sm:$0xff] }
  0x62   :  { %6398 = vmatprep.subr.bf16.mxu0 %v6397_v15  ;;  %v655_v15 = vld [vmem:[%s11836_s0 + $0x23] sm:$0xff]  ;;  %v6433_v17 = vpack.c.bf16 %v5402_v14, %v5400_v13  ;;  %v1023_v13 = vld [vmem:[%s11838_s2] sm:$0x3] }
  0x64   :  { %5341 = vmatmul.mubr.msk.f32.gmra.mrb[4].mxu0 %vm190_vm0, %v467_v20  ;;  %v656_v20 = vld [vmem:[%s11836_s0 + $0x2b] sm:$0xff] }
  0x65   :  { %604 = vmatprep.mubr.f32.mxu0 %v7524_v7  ;;  %6400 = vmatpush1.bf16.msra.mxu0 %v6399_v21  ;;  %v6435_v21 = vpack.c.bf16 %v5401_v19, %v5399_v18 }
  0x66   :  { %6402 = vmatprep.subr.bf16.mxu0 %v6401_v22  ;;  %v657_v22 = vld [vmem:[%s11836_s0 + $0x33] sm:$0xff] }
  0x68   :  { %5342 = vmatmul.mubr.msk.f32.gmra.mrb[6].mxu0 %vm190_vm0, %v468_v27  ;;  %v840_v27 = vld [vmem:[%s11836_s0 + $0x1c] sm:$0xff] }
  0x69   :  { %610 = vmatprep.mubr.f32.mxu0 %v7524_v7  ;;  %6404 = vmatpush1.bf16.msra.mxu0 %v6403_v28  ;;  %v841_v28 = vld [vmem:[%s11836_s0 + $0x24] sm:$0xff] }
  0x6a   :  { %6406 = vmatprep.subr.bf16.mxu0 %v6405_v29  ;;  %v842_v29 = vld [vmem:[%s11836_s0 + $0x2c] sm:$0xff] }
  0x6c   :  { %5343 = vmatmul.mubr.msk.f32.gmra.mrb[8].mxu0 %vm190_vm0, %v469_v34  ;;  %v5411_v34 = vld [vmem:[%s11839_s3 + $0x300] sm:$0xff] }
  0x6d   :  { %616 = vmatprep.mubr.f32.mxu0 %v7524_v7  ;;  %6408 = vmatpush1.bf16.msra.mxu0 %v6407_v35  ;;  %v6437_v35 = vpack.c.bf16 %v5416_v33, %v5412_v32 }
  0x6e   :  { %6410 = vmatprep.subr.bf16.mxu0 %v6409_v36  ;;  %v5415_v36 = vld [vmem:[%s11839_s3 + $0x320] sm:$0xff] }
  0x6f   :  { %v6439_v38 = vpack.c.bf16 %v5415_v36, %v5411_v34  ;;  %6438 = vmatprep.subr.bf16.mxu1 %v6437_v35  ;;  %v5476_v36 = vld [vmem:[%s11839_s3 + $0x508] sm:$0xff] }
  0x70   :  { %5344 = vmatmul.mubr.msk.f32.gmra.mrb[10].mxu0 %vm190_vm0, %v470_v41  ;;  %v5423_v41 = vld [vmem:[%s11839_s3 + $0x360] sm:$0xff] }
  0x71   :  { %622 = vmatprep.mubr.f32.mxu0 %v7524_v7  ;;  %6412 = vmatpush1.bf16.msra.mxu0 %v6411_v42  ;;  %v5428_v42 = vld [vmem:[%s11839_s3 + $0x388] sm:$0xff] }
  0x72   :  { %6414 = vmatprep.subr.bf16.mxu0 %v6413_v43  ;;  %v5432_v43 = vld [vmem:[%s11839_s3 + $0x3a8] sm:$0xff]  ;;  %6440 = vmatpush1.bf16.msra.mxu1 %v6439_v38 }
  0x74   :  { %5345 = vmatmul.mubr.msk.f32.gmra.mrb[12].mxu0 %vm190_vm0, %v471_v44  ;;  %v6443_v44 = vpack.c.bf16 %v5423_v41, %v5419_v40  ;;  %v5475_v40 = vld [vmem:[%s11839_s3 + $0x500] sm:$0xff] }
  0x75   :  { %628 = vmatprep.mubr.f32.mxu0 %v7524_v7  ;;  %v5479_v41 = vld [vmem:[%s11839_s3 + $0x520] sm:$0xff] }
  0x78   :  { %5346 = vmatmul.mubr.msk.f32.gmra.mrb[14].mxu0 %vm190_vm0, %v472_v45  ;;  %v6445_v45 = vpack.c.bf16 %v5432_v43, %v5428_v42  ;;  %v6471_v43 = vpack.c.bf16 %v5479_v41, %v5475_v40 }
  0x79   :  { %772 = vmatprep.mubr.f32.mxu0 %v7524_v7 }
  0x7c   :  { %5371 = vmatmul.mubr.msk.f32.vlgmr.msra.gmra.mrb[0].mxu0 %vm190_vm0, %v651_v50  ;;  %v6447_v50 = vpack.c.bf16 %v5431_v47, %v5427_v46 }
  0x7d   :  { %6416 = vmatpush1.bf16.msra.mxu0 %v6415_v51  ;;  %778 = vmatprep.mubr.f32.mxu0 %v7524_v7  ;;  %v6449_v51 = vpack.c.bf16 %v5440_v49, %v5436_v48  ;;  %v5484_v49 = vld [vmem:[%s11839_s3 + $0x548] sm:$0xff] }
  0x7e   :  { %6418 = vmatprep.subr.bf16.mxu0 %v6417_v52  ;;  %v5435_v52 = vld [vmem:[%s11839_s3 + $0x3c0] sm:$0xff] }
  0x7f   :  { %v6451_v56 = vpack.c.bf16 %v5439_v53, %v5435_v52 }
  0x80   :  { %5372 = vmatmul.mubr.msk.f32.gmra.mrb[2].mxu0 %vm190_vm0, %v652_v57  ;;  %v6453_v57 = vpack.c.bf16 %v5448_v55, %v5444_v54 }
  0x81   :  { %784 = vmatprep.mubr.f32.mxu0 %v7524_v7  ;;  %6420 = vmatpush1.bf16.msra.mxu0 %v6419_v58  ;;  %v5443_v58 = vld [vmem:[%s11839_s3 + $0x400] sm:$0xff] }
  0x82   :  { %6422 = vmatprep.subr.bf16.mxu0 %v6421_v59  ;;  %v5447_v59 = vld [vmem:[%s11839_s3 + $0x420] sm:$0xff] }
  0x83   :  { %v6455_v62 = vpack.c.bf16 %v5447_v59, %v5443_v58  ;;  %v5487_v58 = vld [vmem:[%s11839_s3 + $0x560] sm:$0xff] }
  0x84   :  { %5373 = vmatmul.mubr.msk.f32.gmra.mrb[4].mxu0 %vm190_vm0, %v653_v0  ;;  %v5451_v0 = vld [vmem:[%s11839_s3 + $0x440] sm:$0xff] }
  0x85   :  { %790 = vmatprep.mubr.f32.mxu0 %v7524_v7  ;;  %6424 = vmatpush1.bf16.msra.mxu0 %v6423_v1  ;;  %v5455_v1 = vld [vmem:[%s11839_s3 + $0x460] sm:$0xff] }
  0x86   :  { %6426 = vmatprep.subr.bf16.mxu0 %v6425_v2  ;;  %v5460_v2 = vld [vmem:[%s11839_s3 + $0x488] sm:$0xff]  ;;  %v6459_v4 = vpack.c.bf16 %v5455_v1, %v5451_v0 }
  0x87   :  { %v6461_v5 = vpack.c.bf16 %v5464_v3, %v5460_v2 }
  0x88   :  { %5374 = vmatmul.mubr.msk.f32.gmra.mrb[6].mxu0 %vm190_vm0, %v654_v8  ;;  %v5463_v8 = vld [vmem:[%s11839_s3 + $0x4a0] sm:$0xff] }
  0x89   :  { %796 = vmatprep.mubr.f32.mxu0 %v7524_v7  ;;  %6428 = vmatpush1.bf16.msra.mxu0 %v6427_v9  ;;  %v6463_v9 = vpack.c.bf16 %v5463_v8, %v5459_v6 }
  0x8a   :  { %6430 = vmatprep.subr.bf16.mxu0 %v6429_v10  ;;  %v1025_v10 = vlaneseq }
  0x8c   :  { %5375 = vmatmul.mubr.msk.f32.gmra.mrb[8].mxu0 %vm190_vm0, %v655_v15  ;;  %v8269_v11 = vshrl.u32 %v1025_v10, 7  ;;  %vm10720_vm11 = vcmp.lt.s32.totalorder %v1025_v10, 512 }
  0x8d   :  { %802 = vmatprep.mubr.f32.mxu0 %v7524_v7  ;;  %6432 = vmatpush1.bf16.msra.mxu0 %v6431_v16 }
  0x8e   :  { %6434 = vmatprep.subr.bf16.mxu0 %v6433_v17  ;;  %v1027_v12 = vsub.s32 0, %v8269_v11  ;;  %v1031_v14 = vsub.s32 1, %v8269_v11 }
  0x90   :  { %5376 = vmatmul.mubr.msk.f32.gmra.mrb[10].mxu0 %vm190_vm0, %v656_v20  ;;  %v8278_v15 = vrot.slane %v1023_v13, %v1027_v12  ;;  %v8282_v16 = vrot.slane %v1023_v13, %v1031_v14 }
  0x91   :  { %808 = vmatprep.mubr.f32.mxu0 %v7524_v7  ;;  %6436 = vmatpush1.bf16.msra.mxu0 %v6435_v21 }
  0x94   :  { %5377 = vmatmul.mubr.msk.f32.gmra.mrb[12].mxu0 %vm190_vm0, %v657_v22 }
  0x95   :  { %814 = vmatprep.mubr.f32.mxu0 %v7524_v7 }
  0x98   :  { %5378 = vmatmul.mubr.msk.f32.gmra.mrb[14].mxu0 %vm190_vm0, %v658_v23 }
  0x99   :  { %958 = vmatprep.mubr.f32.mxu0 %v7524_v7 }
  0x9c   :  { %5403 = vmatmul.mubr.msk.f32.vlgmr.msra.gmra.mrb[0].mxu0 %vm190_vm0, %v837_v24  ;;  %v5468_v24 = vld [vmem:[%s11839_s3 + $0x4c8] sm:$0xff] }
  0x9d   :  { %964 = vmatprep.mubr.f32.mxu0 %v7524_v7 }
  0xa0   :  { %5404 = vmatmul.mubr.msk.f32.gmra.mrb[2].mxu0 %vm190_vm0, %v838_v25  ;;  %v5472_v25 = vld [vmem:[%s11839_s3 + $0x4e8] sm:$0xff] }
  0xa1   :  { %970 = vmatprep.mubr.f32.mxu0 %v7524_v7 }
  0xa4   :  { %5405 = vmatmul.mubr.msk.f32.gmra.mrb[4].mxu0 %vm190_vm0, %v839_v26  ;;  %v5467_v26 = vld [vmem:[%s11839_s3 + $0x4c0] sm:$0xff] }
  0xa5   :  { %976 = vmatprep.mubr.f32.mxu0 %v7524_v7 }
  0xa8   :  { %5406 = vmatmul.mubr.msk.f32.gmra.mrb[6].mxu0 %vm190_vm0, %v840_v27 }
  0xa9   :  { %982 = vmatprep.mubr.f32.mxu0 %v7524_v7 }
  0xac   :  { %5407 = vmatmul.mubr.msk.f32.gmra.mrb[8].mxu0 %vm190_vm0, %v841_v28 }
  0xad   :  { %988 = vmatprep.mubr.f32.mxu0 %v7524_v7 }
  0xb0   :  { %5408 = vmatmul.mubr.msk.f32.gmra.mrb[10].mxu0 %vm190_vm0, %v842_v29  ;;  %v6465_v29 = vpack.c.bf16 %v5472_v25, %v5468_v24 }
  0xb1   :  { %994 = vmatprep.mubr.f32.mxu0 %v7524_v7 }
  0xb4   :  { %5409 = vmatmul.mubr.msk.f32.gmra.mrb[12].mxu0 %vm190_vm0, %v843_v30  ;;  %v5471_v30 = vld [vmem:[%s11839_s3 + $0x4e0] sm:$0xff] }
  0xb5   :  { %1000 = vmatprep.mubr.f32.mxu0 %v7524_v7  ;;  %v5420_v7 = vld [vmem:[%s11839_s3 + $0x348] sm:$0xff]  ;;  %v6467_v32 = vpack.c.bf16 %v5471_v30, %v5467_v26 }
  0xb6   :  { %v6441_v39 = vpack.c.bf16 %v5424_v37, %v5420_v7  ;;  %v5480_v7 = vld [vmem:[%s11839_s3 + $0x528] sm:$0xff] }
  0xb8   :  { %5410 = vmatmul.mubr.msk.f32.gmra.mrb[14].mxu0 %vm190_vm0, %v844_v31  ;;  %6442 = vmatprep.subr.bf16.mxu1 %v6441_v39  ;;  %v6469_v39 = vpack.c.bf16 %v5480_v7, %v5476_v36 }
  0xb9   :  { %6444 = vmatpush1.bf16.msra.mxu1 %v6443_v44 }
  0xba   :  { %6446 = vmatprep.subr.bf16.mxu1 %v6445_v45 }
  0xbd   :  { %6448 = vmatpush1.bf16.msra.mxu1 %v6447_v50  ;;  %v5488_v50 = vld [vmem:[%s11839_s3 + $0x568] sm:$0xff] }
  0xbe   :  { %6450 = vmatprep.subr.bf16.mxu1 %v6449_v51  ;;  %v6473_v55 = vpack.c.bf16 %v5488_v50, %v5484_v49  ;;  %v5414_v49 = vld [vmem:[%s11839_s3 + $0x318] sm:$0xff] }
  0xbf   :  { %v5418_v50 = vld [vmem:[%s11839_s3 + $0x338] sm:$0xff] }
  0xc1   :  { %6452 = vmatpush1.bf16.msra.mxu1 %v6451_v56 }
  0xc2   :  { %6454 = vmatprep.subr.bf16.mxu1 %v6453_v57  ;;  %v5483_v57 = vld [vmem:[%s11839_s3 + $0x540] sm:$0xff] }
  0xc5   :  { %6456 = vmatpush1.bf16.msra.mxu1 %v6455_v62 }
  0xc6   :  { %6458 = vmatprep.subr.bf16.mxu1 %v6457_v63  ;;  %v6475_v63 = vpack.c.bf16 %v5487_v58, %v5483_v57 }
  0xc9   :  { %6460 = vmatpush1.bf16.msra.mxu1 %v6459_v4  ;;  %v5492_v4 = vld [vmem:[%s11839_s3 + $0x588] sm:$0xff] }
  0xca   :  { %6462 = vmatprep.subr.bf16.mxu1 %v6461_v5  ;;  %v5496_v5 = vld [vmem:[%s11839_s3 + $0x5a8] sm:$0xff] }
  0xcd   :  { %6464 = vmatpush1.bf16.msra.mxu1 %v6463_v9 }
  0xce   :  { %6466 = vmatprep.subr.bf16.mxu1 %v6465_v29 }
  0xd1   :  { %6468 = vmatpush1.bf16.msra.mxu1 %v6467_v32  ;;  %v5504_v32 = vld [vmem:[%s11839_s3 + $0x5e8] sm:$0xff] }
  0xd2   :  { %6470 = vmatprep.subr.bf16.mxu1 %v6469_v39  ;;  %v5503_v39 = vld [vmem:[%s11839_s3 + $0x5e0] sm:$0xff] }
  0xd5   :  { %6472 = vmatpush1.bf16.msra.mxu1 %v6471_v43 }
  0xd6   :  { %6474 = vmatprep.subr.bf16.mxu1 %v6473_v55 }
  0xd9   :  { %6476 = vmatpush1.bf16.msra.mxu1 %v6475_v63 }
 0x16f   :  { %v960_v17 = vpop.f32.mrb[0].mxu0 }
 0x170   :  { %v1035_v18 = vadd.f32 %v8278_v15, %v960_v17  ;;  %v962_v19 = vpop.f32.mrb[1].mxu0  ;;  %v6477_v17 = vpack.c.bf16 %v5496_v5, %v5492_v4 }
 0x171   :  { %v1036_v20 = vadd.f32 %v8282_v16, %v962_v19  ;;  %v5495_v19 = vld [vmem:[%s11839_s3 + $0x5a0] sm:$0xff] }
 0x172   :  { %v1051_v21 = vmax.f32 %v1035_v18, 0.0  ;;  %v5491_v18 = vld [vmem:[%s11839_s3 + $0x580] sm:$0xff]  ;;  %6478 = vmatprep.subr.bf16.mxu1 %v6477_v17 }
 0x173   :  { %v1052_v22 = vmax.f32 %v1036_v20, 0.0  ;;  %v966_v23 = vpop.f32.mrb[2].mxu0 }
 0x174   :  { %1067 = vst [vmem:[#allocation2] sm:$0xff] %v1051_v21  ;;  %v1037_v27 = vadd.f32 %v8278_v15, %v966_v23  ;;  %v968_v28 = vpop.f32.mrb[3].mxu0  ;;  %v6479_v23 = vpack.c.bf16 %v5495_v19, %v5491_v18 }
 0x175   :  { %1068 = vst.msk [vmem:[#allocation2 + $0x8] sm:$0xff] %vm60_vm2, %v1052_v22  ;;  %v1038_v31 = vadd.f32 %v8282_v16, %v968_v28 }
 0x176   :  { %v1053_v33 = vmax.f32 %v1037_v27, 0.0  ;;  %6480 = vmatpush1.bf16.msra.mxu1 %v6479_v23 }
 0x177   :  { %v1054_v34 = vmax.f32 %v1038_v31, 0.0  ;;  %v972_v35 = vpop.f32.mrb[4].mxu0  ;;  %v5500_v31 = vld [vmem:[%s11839_s3 + $0x5c8] sm:$0xff] }
 0x178   :  { %v8308_v37 = vadd.f32 %v8278_v15, %v972_v35  ;;  %v974_v38 = vpop.f32.mrb[5].mxu0  ;;  %v1123_v45 = vrot.slane %v1053_v33, 1 }
 0x179   :  { %1070 = vst.msk [vmem:[#allocation2 + $0x18] sm:$0xff] %vm60_vm2, %v1054_v34  ;;  %v1040_v42 = vadd.f32 %v8282_v16, %v974_v38  ;;  %v5499_v38 = vld [vmem:[%s11839_s3 + $0x5c0] sm:$0xff] }
 0x17a   :  { %v1055_v44 = vmax.f32 %v8308_v37, 0.0  ;;  %v6481_v37 = vpack.c.bf16 %v5504_v32, %v5500_v31 }
 0x17b   :  { %v1056_v46 = vmax.f32 %v1040_v42, 0.0  ;;  %v978_v47 = vpop.f32.mrb[6].mxu0  ;;  %v1099_v48 = vld [vmem:[#allocation2] sm:$0xfe]  ;;  %v6483_v42 = vpack.c.bf16 %v5503_v39, %v5499_v38 }
 0x17c   :  { %v8326_v51 = vadd.f32 %v8278_v15, %v978_v47  ;;  %v980_v52 = vpop.f32.mrb[7].mxu0  ;;  %v1122_v53 = vrot.slane %v1099_v48, 1  ;;  %v1128_v54 = vrot.slane %v1055_v44, 1  ;;  %v1100_v62 = vld [vmem:[#allocation2 + $0x8] sm:$0xfe]  ;;  %6482 = vmatprep.subr.bf16.mxu1 %v6481_v37 }
 0x17d   :  { %1072 = vst.msk [vmem:[#allocation2 + $0x28] sm:$0xff] %vm60_vm2, %v1056_v46  ;;  %v1042_v56 = vadd.f32 %v8282_v16, %v980_v52  ;;  %v1084_v28 = vld [vmem:[#allocation2 + $0x8] sm:$0xff]  ;;  %6484 = vmatpush1.bf16.msra.mxu1 %v6483_v42 }
 0x17e   :  { %v1057_v59 = vmax.f32 %v8326_v51, 0.0  ;;  %v1124_v60 = vsel %vm1121_vm4, %v1122_v53, %v1123_v45  ;;  %v1129_v61 = vsel %vm1121_vm4, %v1123_v45, %v1128_v54 }
 0x17f   :  { %v1058_v0 = vmax.f32 %v1042_v56, 0.0  ;;  %v984_v1 = vpop.f32.mrb[8].mxu0  ;;  %v8339_v2 = vmax.f32 %v1051_v21, %v1124_v60  ;;  %v8341_v3 = vmax.f32 %v1053_v33, %v1129_v61  ;;  %v1125_v21 = vrot.slane %v1100_v62, 1 }
 0x180   :  { %v8350_v6 = vadd.f32 %v8278_v15, %v984_v1  ;;  %v986_v8 = vpop.f32.mrb[9].mxu0  ;;  %v1086_v9 = vld [vmem:[#allocation2 + $0x18] sm:$0xff]  ;;  %v1132_v13 = vrot.slane %v1057_v59, 1  ;;  %v6485_v56 = vpack.c.bf16 %v5418_v50, %v5414_v49 }
 0x181   :  { %1074 = vst.msk [vmem:[#allocation2 + $0x38] sm:$0xff] %vm60_vm2, %v1058_v0  ;;  %v1044_v20 = vadd.f32 %v8282_v16, %v986_v8  ;;  %1204 = vrot.lane.b32.xlu0 %v8339_v2, %s7525_s15  ;;  %1208 = vrot.lane.b32.xlu1 %v8341_v3, %s7525_s15  ;;  %v1126_v22 = vrot.slane %v1086_v9, 1 }
 0x182   :  { %v1059_v24 = vmax.f32 %v8350_v6, 0.0  ;;  %v1133_v25 = vsel %vm1121_vm4, %v1128_v54, %v1132_v13  ;;  %6486 = vmatprep.subr.bf16.mxu1 %v6485_v56 }
 0x183   :  { %v1060_v26 = vmax.f32 %v1044_v20, 0.0  ;;  %v990_v27 = vpop.f32.mrb[10].mxu0  ;;  %v1127_v29 = vsel %vm1121_vm4, %v1125_v21, %v1126_v22  ;;  %v8367_v30 = vmax.f32 %v1055_v44, %v1133_v25  ;;  %v1101_v25 = vld [vmem:[#allocation2 + $0x80] sm:$0x1] }
 0x184   :  { %v1045_v33 = vadd.f32 %v8278_v15, %v990_v27  ;;  %v992_v34 = vpop.f32.mrb[11].mxu0  ;;  %v8376_v35 = vmax.f32 %v1084_v28, %v1127_v29  ;;  %v1088_v36 = vld [vmem:[#allocation2 + $0x28] sm:$0xff]  ;;  %v1136_v7 = vrot.slane %v1059_v24, 1  ;;  %v1152_v32 = vrot.slane %v1101_v25, 1  ;;  %v5421_v25 = vld [vmem:[%s11839_s3 + $0x350] sm:$0xff] }
 0x185   :  { %1076 = vst.msk [vmem:[#allocation2 + $0x48] sm:$0xff] %vm60_vm2, %v1060_v26  ;;  %v1046_v40 = vadd.f32 %v8282_v16, %v992_v34  ;;  %v1130_v41 = vrot.slane %v1088_v36, 1 }
 0x186   :  { %v1061_v43 = vmax.f32 %v1045_v33, 0.0  ;;  %1206 = vrot.lane.b32.xlu0 %v8376_v35, %s7525_s15  ;;  %v1137_v44 = vsel %vm1121_vm4, %v1132_v13, %v1136_v7  ;;  %v1102_v33 = vld [vmem:[#allocation2 + $0x88] sm:$0x1] }
 0x187   :  { %v1062_v45 = vmax.f32 %v1046_v40, 0.0  ;;  %v996_v46 = vpop.f32.mrb[12].mxu0  ;;  %v1131_v47 = vsel %vm1121_vm4, %v1126_v22, %v1130_v41  ;;  %v8390_v48 = vmax.f32 %v1057_v59, %v1137_v44  ;;  %v1154_v39 = vrot.slane %v1102_v33, 1  ;;  %v5430_v33 = vld [vmem:[%s11839_s3 + $0x398] sm:$0xff] }
 0x188   :  { %v1047_v51 = vadd.f32 %v8278_v15, %v996_v46  ;;  %v998_v52 = vpop.f32.mrb[13].mxu0  ;;  %v8399_v53 = vmax.f32 %v1086_v9, %v1131_v47  ;;  %v1090_v54 = vld [vmem:[#allocation2 + $0x38] sm:$0xff]  ;;  %v1140_v55 = vrot.slane %v1061_v43, 1 }
 0x189   :  { %1078 = vst.msk [vmem:[#allocation2 + $0x58] sm:$0xff] %vm60_vm2, %v1062_v45  ;;  %v1048_v57 = vadd.f32 %v8282_v16, %v998_v52  ;;  %v1134_v58 = vrot.slane %v1090_v54, 1 }
 0x18a   :  { %v1063_v59 = vmax.f32 %v1047_v51, 0.0  ;;  %1210 = vrot.lane.b32.xlu1 %v8399_v53, %s7525_s15  ;;  %1212 = vrot.lane.b32.xlu0 %v8367_v30, %s7525_s15  ;;  %v1141_v60 = vsel %vm1121_vm4, %v1136_v7, %v1140_v55 }
 0x18b   :  { %v1064_v61 = vmax.f32 %v1048_v57, 0.0  ;;  %v1002_v62 = vpop.f32.mrb[14].mxu0  ;;  %v1135_v63 = vsel %vm1121_vm4, %v1130_v41, %v1134_v58  ;;  %v8409_v0 = vmax.f32 %v1059_v24, %v1141_v60 }
 0x18c   :  { %v1049_v1 = vadd.f32 %v8278_v15, %v1002_v62  ;;  %v1004_v4 = vpop.f32.mrb[15].mxu0  ;;  %v8412_v5 = vmax.f32 %v1088_v36, %v1135_v63  ;;  %v1092_v6 = vld [vmem:[#allocation2 + $0x48] sm:$0xff]  ;;  %v1144_v8 = vrot.slane %v1063_v59, 1 }
 0x18d   :  { %1080 = vst.msk [vmem:[#allocation2 + $0x68] sm:$0xff] %vm60_vm2, %v1064_v61  ;;  %v1050_v9 = vadd.f32 %v8282_v16, %v1004_v4  ;;  %v1138_v13 = vrot.slane %v1092_v6, 1  ;;  %v5413_v4 = vld [vmem:[%s11839_s3 + $0x310] sm:$0xff] }
 0x18e   :  { %v1065_v17 = vmax.f32 %v1049_v1, 0.0  ;;  %1214 = vrot.lane.b32.xlu1 %v8412_v5, %s7525_s15  ;;  %1216 = vrot.lane.b32.xlu0 %v8390_v48, %s7525_s15  ;;  %v1145_v18 = vsel %vm1121_vm4, %v1140_v55, %v1144_v8 }
 0x18f   :  { %v1066_v15 = vmax.f32 %v1050_v9, 0.0  ;;  %v1139_v19 = vsel %vm1121_vm4, %v1134_v58, %v1138_v13  ;;  %v8422_v20 = vmax.f32 %v1061_v43, %v1145_v18  ;;  %v5422_v9 = vld [vmem:[%s11839_s3 + $0x358] sm:$0xff] }
 0x190   :  { %v8424_v21 = vmax.f32 %v1090_v54, %v1139_v19  ;;  %v1094_v22 = vld [vmem:[#allocation2 + $0x58] sm:$0xff]  ;;  %v1148_v23 = vrot.slane %v1065_v17, 1 }
 0x191   :  { %1082 = vst.msk [vmem:[#allocation2 + $0x78] sm:$0xff] %vm60_vm2, %v1066_v15  ;;  %v1142_v16 = vrot.slane %v1094_v22, 1 }
 0x192   :  { %1218 = vrot.lane.b32.xlu1 %v8424_v21, %s7525_s15  ;;  %1220 = vrot.lane.b32.xlu0 %v8409_v0, %s7525_s15  ;;  %v1149_v24 = vsel %vm1121_vm4, %v1144_v8, %v1148_v23  ;;  %v1153_v38 = vsel %vm1121_vm4, %v1148_v23, %v1152_v32 }
 0x193   :  { %v1143_v26 = vsel %vm1121_vm4, %v1138_v13, %v1142_v16  ;;  %v8433_v27 = vmax.f32 %v1063_v59, %v1149_v24  ;;  %v8452_v42 = vmax.f32 %v1065_v17, %v1153_v38  ;;  %v5426_v13 = vld [vmem:[%s11839_s3 + $0x378] sm:$0xff] }
 0x194   :  { %v8435_v28 = vmax.f32 %v1092_v6, %v1143_v26  ;;  %v1096_v29 = vld [vmem:[#allocation2 + $0x68] sm:$0xff]  ;;  %v6489_v24 = vpack.c.bf16 %v5426_v13, %v5422_v9  ;;  %v5425_v26 = vld [vmem:[%s11839_s3 + $0x370] sm:$0xff] }
 0x195   :  { %v1146_v31 = vrot.slane %v1096_v29, 1 }
 0x196   :  { %1222 = vrot.lane.b32.xlu1 %v8435_v28, %s7525_s15  ;;  %1224 = vrot.lane.b32.xlu0 %v8422_v20, %s7525_s15 }
 0x197   :  { %v1147_v34 = vsel %vm1121_vm4, %v1142_v16, %v1146_v31 }
 0x198   :  { %v8442_v36 = vmax.f32 %v1094_v22, %v1147_v34  ;;  %v1098_v7 = vld [vmem:[#allocation2 + $0x78] sm:$0xff] }
 0x199   :  { %v1150_v37 = vrot.slane %v1098_v7, 1  ;;  %v5434_v34 = vld [vmem:[%s11839_s3 + $0x3b8] sm:$0xff] }
 0x19a   :  { %1226 = vrot.lane.b32.xlu1 %v8442_v36, %s7525_s15  ;;  %1228 = vrot.lane.b32.xlu0 %v8433_v27, %s7525_s15 }
 0x19b   :  { %v1151_v40 = vsel %vm1121_vm4, %v1146_v31, %v1150_v37  ;;  %v1155_v43 = vsel %vm1121_vm4, %v1150_v37, %v1154_v39  ;;  %v6491_v37 = vpack.c.bf16 %v5425_v26, %v5421_v25  ;;  %v5454_v25 = vld [vmem:[%s11839_s3 + $0x458] sm:$0xff] }
 0x19c   :  { %v8450_v41 = vmax.f32 %v1096_v29, %v1151_v40  ;;  %v8459_v44 = vmax.f32 %v1098_v7, %v1155_v43  ;;  %v6493_v43 = vpack.c.bf16 %v5434_v34, %v5430_v33  ;;  %v5458_v26 = vld [vmem:[%s11839_s3 + $0x478] sm:$0xff] }
 0x19d   :  { %v6505_v34 = vpack.c.bf16 %v5458_v26, %v5454_v25  ;;  %v5477_v26 = vld [vmem:[%s11839_s3 + $0x510] sm:$0xff] }
 0x19e   :  { %1230 = vrot.lane.b32.xlu1 %v8450_v41, %s7525_s15  ;;  %1232 = vrot.lane.b32.xlu0 %v8452_v42, %s7525_s15 }
 0x1a2   :  { %1234 = vrot.lane.b32.xlu1 %v8459_v44, %s7525_s15 }
 0x1f3   :  { %v1205_v45 = vpop.permute.xlu0 %1204  ;;  %v1209_v46 = vpop.permute.xlu1 %1208 }
 0x1f8   :  { %v1207_v47 = vpop.permute.xlu0 %1206 }
 0x1f9   :  { %v1237_v49 = vsel %vm1236_vm5, %v1205_v45, %v1207_v47  ;;  %v1262_v50 = vmax.f32 %v8376_v35, %v1207_v47  ;;  %v5429_v45 = vld [vmem:[%s11839_s3 + $0x390] sm:$0xff] }
 0x1fa   :  { %v8466_v51 = vmax.f32 %v8339_v2, %v1237_v49 }
 0x1fb   :  { %1278 = vst.msk [vmem:[#allocation3 + $0x8] sm:$0xff] %vm60_vm2, %v1262_v50 }
 0x1fc   :  { %1277 = vst [vmem:[#allocation3] sm:$0xff] %v8466_v51  ;;  %v1211_v52 = vpop.permute.xlu1 %1210  ;;  %v1213_v54 = vpop.permute.xlu0 %1212 }
 0x1fd   :  { %v1238_v55 = vsel %vm1236_vm5, %v1209_v46, %v1211_v52  ;;  %v1264_v56 = vmax.f32 %v8399_v53, %v1211_v52  ;;  %v5433_v46 = vld [vmem:[%s11839_s3 + $0x3b0] sm:$0xff] }
 0x1fe   :  { %v8473_v57 = vmax.f32 %v8341_v3, %v1238_v55 }
 0x1ff   :  { %1280 = vst.msk [vmem:[#allocation3 + $0x18] sm:$0xff] %vm60_vm2, %v1264_v56 }
 0x200   :  { %1279 = vst [vmem:[#allocation3 + $0x10] sm:$0xff] %v8473_v57  ;;  %v1215_v35 = vpop.permute.xlu1 %1214  ;;  %v1217_v2 = vpop.permute.xlu0 %1216  ;;  %v1526_v19 = vrot.slane %v8473_v57, 2 }
 0x201   :  { %v1239_v58 = vsel %vm1236_vm5, %v1213_v54, %v1215_v35  ;;  %v1266_v59 = vmax.f32 %v8412_v5, %v1215_v35  ;;  %v5438_v54 = vld [vmem:[%s11839_s3 + $0x3d8] sm:$0xff]  ;;  %v6495_v35 = vpack.c.bf16 %v5433_v46, %v5429_v45 }
 0x202   :  { %v8480_v60 = vmax.f32 %v8367_v30, %v1239_v58  ;;  %v1406_v62 = vld [vmem:[#allocation3 + $0x8] sm:$0xfc]  ;;  %v5417_v30 = vld [vmem:[%s11839_s3 + $0x330] sm:$0xff] }
 0x203   :  { %1282 = vst.msk [vmem:[#allocation3 + $0x28] sm:$0xff] %vm60_vm2, %v1266_v59  ;;  %v1405_v61 = vld [vmem:[#allocation3] sm:$0xfc]  ;;  %v1528_v17 = vrot.slane %v1406_v62, 2  ;;  %v5466_v45 = vld [vmem:[%s11839_s3 + $0x4b8] sm:$0xff] }
 0x204   :  { %1281 = vst [vmem:[#allocation3 + $0x20] sm:$0xff] %v8480_v60  ;;  %v1219_v3 = vpop.permute.xlu1 %1218  ;;  %v1221_v53 = vpop.permute.xlu0 %1220  ;;  %v1525_v8 = vrot.slane %v1405_v61, 2  ;;  %v1531_v32 = vrot.slane %v8480_v60, 2 }
 0x205   :  { %v1240_v63 = vsel %vm1236_vm5, %v1217_v2, %v1219_v3  ;;  %v1268_v1 = vmax.f32 %v8424_v21, %v1219_v3  ;;  %v6487_v21 = vpack.c.bf16 %v5417_v30, %v5413_v4  ;;  %v5437_v3 = vld [vmem:[%s11839_s3 + $0x3d0] sm:$0xff]  ;;  %v5446_v4 = vld [vmem:[%s11839_s3 + $0x418] sm:$0xff] }
 0x206   :  { %v8493_v5 = vmax.f32 %v8390_v48, %v1240_v63  ;;  %v8495_v6 = vld [vmem:[#allocation3 + $0x18] sm:$0xff]  ;;  %v5450_v30 = vld [vmem:[%s11839_s3 + $0x438] sm:$0xff] }
 0x207   :  { %1284 = vst.msk [vmem:[#allocation3 + $0x38] sm:$0xff] %vm60_vm2, %v1268_v1  ;;  %v1529_v18 = vrot.slane %v8495_v6, 2 }
 0x208   :  { %1283 = vst [vmem:[#allocation3 + $0x30] sm:$0xff] %v8493_v5  ;;  %v1223_v48 = vpop.permute.xlu1 %1222  ;;  %v1225_v15 = vpop.permute.xlu0 %1224  ;;  %v1535_v52 = vrot.slane %v8493_v5, 2 }
 0x209   :  { %v1241_v22 = vsel %vm1236_vm5, %v1221_v53, %v1223_v48  ;;  %v1270_v23 = vmax.f32 %v8435_v28, %v1223_v48  ;;  %v8510_v16 = vsel %vm1524_vm6, %v1528_v17, %v1529_v18  ;;  %v8524_v28 = vsel %vm1524_vm6, %v1525_v8, %v1526_v19  ;;  %v5441_v53 = vld [vmem:[%s11839_s3 + $0x3f0] sm:$0xff] }
 0x20a   :  { %v8519_v29 = vmax.f32 %v8409_v0, %v1241_v22  ;;  %5507 = vmatprep.mubr.msk.f32.mxu1 %vm60_vm2, %v8510_v16  ;;  %v8526_v31 = vld [vmem:[#allocation3 + $0x28] sm:$0xff]  ;;  %v6499_v13 = vpack.c.bf16 %v5441_v53, %v5437_v3 }
 0x20b   :  { %1286 = vst.msk [vmem:[#allocation3 + $0x48] sm:$0xff] %vm60_vm2, %v1270_v23  ;;  %1648 = vmatmul.mubr.f32.vlgmr.msra.gmra.mrb[0].mxu1 %v8524_v28  ;;  %v1533_v0 = vrot.slane %v8526_v31, 2  ;;  %v5474_v3 = vld [vmem:[%s11839_s3 + $0x4f8] sm:$0xff] }
 0x20c   :  { %1285 = vst [vmem:[#allocation3 + $0x40] sm:$0xff] %v8519_v29  ;;  %6488 = vmatpush1.bf16.msra.mxu1 %v6487_v21  ;;  %v1227_v7 = vpop.permute.xlu1 %1226  ;;  %v1229_v49 = vpop.permute.xlu0 %1228  ;;  %v1539_v1 = vrot.slane %v8519_v29, 2  ;;  %v5449_v21 = vld [vmem:[%s11839_s3 + $0x430] sm:$0xff] }
 0x20d   :  { %v1242_v38 = vsel %vm1236_vm5, %v1225_v15, %v1227_v7  ;;  %v1272_v39 = vmax.f32 %v8442_v36, %v1227_v7  ;;  %v8542_v40 = vsel %vm1524_vm6, %v1529_v18, %v1533_v0  ;;  %6490 = vmatprep.subr.bf16.mxu1 %v6489_v24  ;;  %v8556_v36 = vsel %vm1524_vm6, %v1526_v19, %v1531_v32  ;;  %v5445_v19 = vld [vmem:[%s11839_s3 + $0x410] sm:$0xff] }
 0x20e   :  { %v8551_v47 = vmax.f32 %v8422_v20, %v1242_v38  ;;  %5508 = vmatprep.mubr.msk.f32.mxu1 %vm60_vm2, %v8542_v40  ;;  %v8558_v50 = vld [vmem:[#allocation3 + $0x38] sm:$0xff]  ;;  %v5442_v20 = vld [vmem:[%s11839_s3 + $0x3f8] sm:$0xff]  ;;  %v6501_v15 = vpack.c.bf16 %v5450_v30, %v5446_v4  ;;  %v5457_v7 = vld [vmem:[%s11839_s3 + $0x470] sm:$0xff] }
 0x20f   :  { %1288 = vst.msk [vmem:[#allocation3 + $0x58] sm:$0xff] %vm60_vm2, %v1272_v39  ;;  %1654 = vmatmul.mubr.f32.gmra.mrb[2].mxu1 %v8556_v36  ;;  %v1537_v55 = vrot.slane %v8558_v50, 2  ;;  %v6497_v61 = vpack.c.bf16 %v5442_v20, %v5438_v54  ;;  %v1407_v4 = vld [vmem:[#allocation3 + $0x80] sm:$0x3] }
 0x210   :  { %1287 = vst [vmem:[#allocation3 + $0x50] sm:$0xff] %v8551_v47  ;;  %6492 = vmatpush1.bf16.msra.mxu1 %v6491_v37  ;;  %v1231_v56 = vpop.permute.xlu1 %1230  ;;  %v1233_v8 = vpop.permute.xlu0 %1232  ;;  %v1543_v24 = vrot.slane %v8551_v47, 2 }
 0x211   :  { %v1243_v2 = vsel %vm1236_vm5, %v1229_v49, %v1231_v56  ;;  %v1274_v58 = vmax.f32 %v8450_v41, %v1231_v56  ;;  %v8574_v59 = vsel %vm1524_vm6, %v1533_v0, %v1537_v55  ;;  %6494 = vmatprep.subr.bf16.mxu1 %v6493_v43  ;;  %v8588_v41 = vsel %vm1524_vm6, %v1531_v32, %v1535_v52  ;;  %v5453_v0 = vld [vmem:[%s11839_s3 + $0x450] sm:$0xff]  ;;  %v5462_v43 = vld [vmem:[%s11839_s3 + $0x498] sm:$0xff] }
 0x212   :  { %v8583_v62 = vmax.f32 %v8433_v27, %v1243_v2  ;;  %5509 = vmatprep.mubr.msk.f32.mxu1 %vm60_vm2, %v8574_v59  ;;  %v8590_v63 = vld [vmem:[#allocation3 + $0x48] sm:$0xff]  ;;  %v6503_v32 = vpack.c.bf16 %v5449_v21, %v5445_v19  ;;  %v8647_v37 = vsel %vm1524_vm6, %v1539_v1, %v1543_v24  ;;  %v6507_v49 = vpack.c.bf16 %v5457_v7, %v5453_v0  ;;  %v5465_v56 = vld [vmem:[%s11839_s3 + $0x4b0] sm:$0xff] }
 0x213   :  { %1290 = vst.msk [vmem:[#allocation3 + $0x68] sm:$0xff] %vm60_vm2, %v1274_v58  ;;  %1660 = vmatmul.mubr.f32.gmra.mrb[4].mxu1 %v8588_v41  ;;  %v1541_v27 = vrot.slane %v8590_v63, 2  ;;  %v6509_v20 = vpack.c.bf16 %v5466_v45, %v5462_v43  ;;  %v5482_v19 = vld [vmem:[%s11839_s3 + $0x538] sm:$0xff]  ;;  %v5485_v43 = vld [vmem:[%s11839_s3 + $0x550] sm:$0xff] }
 0x214   :  { %1289 = vst [vmem:[#allocation3 + $0x60] sm:$0xff] %v8583_v62  ;;  %6496 = vmatpush1.bf16.msra.mxu1 %v6495_v35  ;;  %v1235_v9 = vpop.permute.xlu1 %1234  ;;  %v1547_v39 = vrot.slane %v8583_v62, 2  ;;  %v5490_v0 = vld [vmem:[%s11839_s3 + $0x578] sm:$0xff]  ;;  %v5489_v45 = vld [vmem:[%s11839_s3 + $0x570] sm:$0xff] }
 0x215   :  { %v1244_v17 = vsel %vm1236_vm5, %v1233_v8, %v1235_v9  ;;  %v1276_v18 = vmax.f32 %v8459_v44, %v1235_v9  ;;  %v8606_v48 = vsel %vm1524_vm6, %v1537_v55, %v1541_v27  ;;  %6498 = vmatprep.subr.bf16.mxu1 %v6497_v61  ;;  %v8620_v44 = vsel %vm1524_vm6, %v1535_v52, %v1539_v1  ;;  %v1408_v52 = vld [vmem:[#allocation3 + $0x88] sm:$0x3]  ;;  %v5461_v55 = vld [vmem:[%s11839_s3 + $0x490] sm:$0xff] }
 0x216   :  { %v8615_v22 = vmax.f32 %v8452_v42, %v1244_v17  ;;  %5510 = vmatprep.mubr.msk.f32.mxu1 %vm60_vm2, %v8606_v48  ;;  %v8622_v23 = vld [vmem:[#allocation3 + $0x58] sm:$0xff]  ;;  %v8672_v35 = vsel %vm1524_vm6, %v1543_v24, %v1547_v39  ;;  %v5470_v61 = vld [vmem:[%s11839_s3 + $0x4d8] sm:$0xff]  ;;  %v1557_v1 = vrot.slane %v1408_v52, 2  ;;  %v6511_v30 = vpack.c.bf16 %v5465_v56, %v5461_v55  ;;  %v5469_v9 = vld [vmem:[%s11839_s3 + $0x4d0] sm:$0xff] }
 0x217   :  { %1292 = vst.msk [vmem:[#allocation3 + $0x78] sm:$0xff] %vm60_vm2, %v1276_v18  ;;  %1666 = vmatmul.mubr.f32.gmra.mrb[6].mxu1 %v8620_v44  ;;  %v1545_v42 = vrot.slane %v8622_v23, 2  ;;  %v6513_v8 = vpack.c.bf16 %v5474_v3, %v5470_v61  ;;  %v1555_v18 = vrot.slane %v1407_v4, 2  ;;  %v5497_v55 = vld [vmem:[%s11839_s3 + $0x5b0] sm:$0xff]  ;;  %v5502_v56 = vld [vmem:[%s11839_s3 + $0x5d8] sm:$0xff]  ;;  %v1310_v4 = vld [vmem:[%s11839_s3 + $0x8] sm:$0xff] }
 0x218   :  { %1291 = vst [vmem:[#allocation3 + $0x70] sm:$0xff] %v8615_v22  ;;  %6500 = vmatpush1.bf16.msra.mxu1 %v6499_v13  ;;  %v1551_v58 = vrot.slane %v8615_v22, 2  ;;  %v5473_v13 = vld [vmem:[%s11839_s3 + $0x4f0] sm:$0xff] }
 0x219   :  { %v8636_v33 = vsel %vm1524_vm6, %v1541_v27, %v1545_v42  ;;  %6502 = vmatprep.subr.bf16.mxu1 %v6501_v15  ;;  %v5478_v15 = vld [vmem:[%s11839_s3 + $0x518] sm:$0xff]  ;;  %v6515_v24 = vpack.c.bf16 %v5473_v13, %v5469_v9  ;;  %v1309_v13 = vld [vmem:[%s11839_s3] sm:$0xff] }
 0x21a   :  { %5511 = vmatprep.mubr.msk.f32.mxu1 %vm60_vm2, %v8636_v33  ;;  %v8649_v38 = vld [vmem:[#allocation3 + $0x68] sm:$0xff]  ;;  %v8697_v17 = vsel %vm1524_vm6, %v1547_v39, %v1551_v58  ;;  %v6517_v25 = vpack.c.bf16 %v5482_v19, %v5478_v15  ;;  %v1318_v15 = vld [vmem:[%s11839_s3 + $0x48] sm:$0xff] }
 0x21b   :  { %1672 = vmatmul.mubr.f32.gmra.mrb[8].mxu1 %v8647_v37  ;;  %v1549_v46 = vrot.slane %v8649_v38, 2  ;;  %v1322_v19 = vld [vmem:[%s11839_s3 + $0x68] sm:$0xff] }
 0x21c   :  { %6504 = vmatpush1.bf16.msra.mxu1 %v6503_v32  ;;  %v8718_v32 = vsel %vm1524_vm6, %v1551_v58, %v1555_v18  ;;  %v5506_v58 = vld [vmem:[%s11839_s3 + $0x5f8] sm:$0xff]  ;;  %v1313_v18 = vld [vmem:[%s11839_s3 + $0x20] sm:$0xff] }
 0x21d   :  { %v8661_v54 = vsel %vm1524_vm6, %v1545_v42, %v1549_v46  ;;  %6506 = vmatprep.subr.bf16.mxu1 %v6505_v34  ;;  %v5481_v42 = vld [vmem:[%s11839_s3 + $0x530] sm:$0xff]  ;;  %v5486_v34 = vld [vmem:[%s11839_s3 + $0x558] sm:$0xff]  ;;  %v6529_v3 = vpack.c.bf16 %v5506_v58, %v5502_v56  ;;  %v1341_v56 = vld [vmem:[%s11839_s3 + $0x100] sm:$0xff] }
 0x21e   :  { %5512 = vmatprep.mubr.msk.f32.mxu1 %vm60_vm2, %v8661_v54  ;;  %v8674_v2 = vld [vmem:[#allocation3 + $0x78] sm:$0xff]  ;;  %v6519_v7 = vpack.c.bf16 %v5481_v42, %v5477_v26  ;;  %v6521_v39 = vpack.c.bf16 %v5490_v0, %v5486_v34  ;;  %v1317_v26 = vld [vmem:[%s11839_s3 + $0x40] sm:$0xff] }
 0x21f   :  { %1678 = vmatmul.mubr.f32.gmra.mrb[10].mxu1 %v8672_v35  ;;  %v1553_v53 = vrot.slane %v8674_v2, 2  ;;  %v1321_v42 = vld [vmem:[%s11839_s3 + $0x60] sm:$0xff]  ;;  %v1326_v34 = vld [vmem:[%s11839_s3 + $0x88] sm:$0xff] }
 0x220   :  { %6508 = vmatpush1.bf16.msra.mxu1 %v6507_v49  ;;  %v5498_v49 = vld [vmem:[%s11839_s3 + $0x5b8] sm:$0xff]  ;;  %v1330_v0 = vld [vmem:[%s11839_s3 + $0xa8] sm:$0xff]  ;;  %v1345_v58 = vld [vmem:[%s11839_s3 + $0x120] sm:$0xff] }
 0x221   :  { %v8686_v27 = vsel %vm1524_vm6, %v1549_v46, %v1553_v53  ;;  %6510 = vmatprep.subr.bf16.mxu1 %v6509_v20  ;;  %v8707_v21 = vsel %vm1524_vm6, %v1553_v53, %v1557_v1  ;;  %v5494_v46 = vld [vmem:[%s11839_s3 + $0x598] sm:$0xff]  ;;  %v5493_v20 = vld [vmem:[%s11839_s3 + $0x590] sm:$0xff] }
 0x222   :  { %5513 = vmatprep.mubr.msk.f32.mxu1 %vm60_vm2, %v8686_v27  ;;  %v6525_v52 = vpack.c.bf16 %v5498_v49, %v5494_v46  ;;  %v6527_v61 = vpack.c.bf16 %v5497_v55, %v5493_v20  ;;  %v5501_v53 = vld [vmem:[%s11839_s3 + $0x5d0] sm:$0xff]  ;;  %v1334_v46 = vld [vmem:[%s11839_s3 + $0xc8] sm:$0xff] }
 0x223   :  { %1684 = vmatmul.mubr.f32.gmra.mrb[12].mxu1 %v8697_v17  ;;  %v5505_v1 = vld [vmem:[%s11839_s3 + $0x5f0] sm:$0xff]  ;;  %v1342_v20 = vld [vmem:[%s11839_s3 + $0x108] sm:$0xff] }
 0x224   :  { %6512 = vmatpush1.bf16.msra.mxu1 %v6511_v30  ;;  %5514 = vmatprep.mubr.msk.f32.mxu1 %vm60_vm2, %v8707_v21  ;;  %v1314_v30 = vld [vmem:[%s11839_s3 + $0x28] sm:$0xff] }
 0x225   :  { %6514 = vmatprep.subr.bf16.mxu1 %v6513_v8  ;;  %v6531_v8 = vpack.c.bf16 %v5505_v1, %v5501_v53  ;;  %v6533_v9 = vpack.c.bf16 %v1314_v30, %v1310_v4  ;;  %v1349_v53 = vld [vmem:[%s11839_s3 + $0x140] sm:$0xff]  ;;  %v1358_v4 = vld [vmem:[%s11839_s3 + $0x188] sm:$0xff] }
 0x226   :  { %v1353_v1 = vld [vmem:[%s11839_s3 + $0x160] sm:$0xff] }
 0x227   :  { %1690 = vmatmul.mubr.f32.gmra.mrb[14].mxu1 %v8718_v32 }
 0x228   :  { %6516 = vmatpush1.bf16.msra.mxu1 %v6515_v24  ;;  %5515 = vmatprep.mubr.msk.f32.mxu1 %vm60_vm2, %v8510_v16  ;;  %v6523_v16 = vpack.c.bf16 %v5489_v45, %v5485_v43  ;;  %v6535_v24 = vpack.c.bf16 %v1313_v18, %v1309_v13  ;;  %v1325_v43 = vld [vmem:[%s11839_s3 + $0x80] sm:$0xff]  ;;  %v1366_v13 = vld [vmem:[%s11839_s3 + $0x1c8] sm:$0xff] }
 0x229   :  { %6518 = vmatprep.subr.bf16.mxu1 %v6517_v25  ;;  %v6537_v25 = vpack.c.bf16 %v1322_v19, %v1318_v15  ;;  %v1329_v45 = vld [vmem:[%s11839_s3 + $0xa0] sm:$0xff] }
 0x22a   :  { %v1365_v15 = vld [vmem:[%s11839_s3 + $0x1c0] sm:$0xff] }
 0x22b   :  { %v1369_v19 = vld [vmem:[%s11839_s3 + $0x1e0] sm:$0xff] }
 0x22c   :  { %6520 = vmatpush1.bf16.msra.mxu1 %v6519_v7  ;;  %v6539_v7 = vpack.c.bf16 %v1321_v42, %v1317_v26  ;;  %v1373_v26 = vld [vmem:[%s11839_s3 + $0x200] sm:$0xff] }
 0x22d   :  { %6522 = vmatprep.subr.bf16.mxu1 %v6521_v39  ;;  %v6541_v39 = vpack.c.bf16 %v1330_v0, %v1326_v34  ;;  %v1377_v42 = vld [vmem:[%s11839_s3 + $0x220] sm:$0xff]  ;;  %v1382_v34 = vld [vmem:[%s11839_s3 + $0x248] sm:$0xff] }
 0x22e   :  { %v6567_v0 = vpack.c.bf16 %v1377_v42, %v1373_v26  ;;  %v1344_v26 = vld [vmem:[%s11839_s3 + $0x118] sm:$0xff] }
 0x22f   :  { %v1348_v42 = vld [vmem:[%s11839_s3 + $0x138] sm:$0xff] }
 0x230   :  { %6524 = vmatpush1.bf16.msra.mxu1 %v6523_v16  ;;  %v1333_v16 = vld [vmem:[%s11839_s3 + $0xc0] sm:$0xff] }
 0x231   :  { %6526 = vmatprep.subr.bf16.mxu1 %v6525_v52  ;;  %v1337_v52 = vld [vmem:[%s11839_s3 + $0xe0] sm:$0xff] }
 0x234   :  { %6528 = vmatpush1.bf16.msra.mxu1 %v6527_v61  ;;  %v1350_v61 = vld [vmem:[%s11839_s3 + $0x148] sm:$0xff] }
 0x235   :  { %6530 = vmatprep.subr.bf16.mxu1 %v6529_v3 }
 0x238   :  { %6532 = vmatpush1.bf16.msra.mxu1 %v6531_v8  ;;  %v1357_v8 = vld [vmem:[%s11839_s3 + $0x180] sm:$0xff] }
 0x239   :  { %6534 = vmatprep.subr.bf16.mxu1 %v6533_v9  ;;  %v1361_v9 = vld [vmem:[%s11839_s3 + $0x1a0] sm:$0xff] }
 0x23b   :  { %1761 = vmatmul.mubr.f32.vlgmr.msra.gmra.mrb[16].mxu1 %v8524_v28  ;;  %v1338_v28 = vld [vmem:[%s11839_s3 + $0xe8] sm:$0xff] }
 0x23c   :  { %5516 = vmatprep.mubr.msk.f32.mxu1 %vm60_vm2, %v8542_v40  ;;  %6536 = vmatpush1.bf16.msra.mxu1 %v6535_v24  ;;  %v6543_v40 = vpack.c.bf16 %v1329_v45, %v1325_v43  ;;  %v6545_v49 = vpack.c.bf16 %v1338_v28, %v1334_v46  ;;  %v1374_v24 = vld [vmem:[%s11839_s3 + $0x208] sm:$0xff]  ;;  %v1385_v43 = vld [vmem:[%s11839_s3 + $0x260] sm:$0xff] }
 0x23d   :  { %6538 = vmatprep.subr.bf16.mxu1 %v6537_v25  ;;  %v1394_v45 = vld [vmem:[%s11839_s3 + $0x2a8] sm:$0xff] }
 0x23f   :  { %1767 = vmatmul.mubr.f32.gmra.mrb[18].mxu1 %v8556_v36  ;;  %v1346_v36 = vld [vmem:[%s11839_s3 + $0x128] sm:$0xff] }
 0x240   :  { %5517 = vmatprep.mubr.msk.f32.mxu1 %vm60_vm2, %v8574_v59  ;;  %6540 = vmatpush1.bf16.msra.mxu1 %v6539_v7  ;;  %v6547_v59 = vpack.c.bf16 %v1337_v52, %v1333_v16  ;;  %v6549_v55 = vpack.c.bf16 %v1346_v36, %v1342_v20  ;;  %v1398_v16 = vld [vmem:[%s11839_s3 + $0x2c8] sm:$0xff] }
 0x241   :  { %6542 = vmatprep.subr.bf16.mxu1 %v6541_v39  ;;  %v1381_v39 = vld [vmem:[%s11839_s3 + $0x240] sm:$0xff]  ;;  %v1402_v52 = vld [vmem:[%s11839_s3 + $0x2e8] sm:$0xff] }
 0x242   :  { %v6571_v46 = vpack.c.bf16 %v1385_v43, %v1381_v39  ;;  %v6577_v36 = vpack.c.bf16 %v1402_v52, %v1398_v16  ;;  %v1352_v39 = vld [vmem:[%s11839_s3 + $0x158] sm:$0xff] }
 0x243   :  { %1773 = vmatmul.mubr.f32.gmra.mrb[20].mxu1 %v8588_v41  ;;  %v1354_v41 = vld [vmem:[%s11839_s3 + $0x168] sm:$0xff]  ;;  %v1356_v43 = vld [vmem:[%s11839_s3 + $0x178] sm:$0xff] }
 0x244   :  { %5518 = vmatprep.mubr.msk.f32.mxu1 %vm60_vm2, %v8606_v48  ;;  %6544 = vmatpush1.bf16.msra.mxu1 %v6543_v40  ;;  %v6551_v48 = vpack.c.bf16 %v1345_v58, %v1341_v56  ;;  %v6553_v3 = vpack.c.bf16 %v1354_v41, %v1350_v61  ;;  %v1389_v40 = vld [vmem:[%s11839_s3 + $0x280] sm:$0xff]  ;;  %v1312_v56 = vld [vmem:[%s11839_s3 + $0x18] sm:$0xff] }
 0x245   :  { %6546 = vmatprep.subr.bf16.mxu1 %v6545_v49  ;;  %v1393_v49 = vld [vmem:[%s11839_s3 + $0x2a0] sm:$0xff]  ;;  %v1316_v58 = vld [vmem:[%s11839_s3 + $0x38] sm:$0xff] }
 0x246   :  { %v6575_v20 = vpack.c.bf16 %v1393_v49, %v1389_v40  ;;  %v6581_v41 = vpack.c.bf16 %v1316_v58, %v1312_v56  ;;  %v1360_v40 = vld [vmem:[%s11839_s3 + $0x198] sm:$0xff] }
 0x247   :  { %1779 = vmatmul.mubr.f32.gmra.mrb[22].mxu1 %v8620_v44  ;;  %v1362_v44 = vld [vmem:[%s11839_s3 + $0x1a8] sm:$0xff]  ;;  %v1364_v49 = vld [vmem:[%s11839_s3 + $0x1b8] sm:$0xff] }
 0x248   :  { %5519 = vmatprep.mubr.msk.f32.mxu1 %vm60_vm2, %v8636_v33  ;;  %6548 = vmatpush1.bf16.msra.mxu1 %v6547_v59  ;;  %v6555_v33 = vpack.c.bf16 %v1353_v1, %v1349_v53  ;;  %v6557_v30 = vpack.c.bf16 %v1362_v44, %v1358_v4  ;;  %v1397_v59 = vld [vmem:[%s11839_s3 + $0x2c0] sm:$0xff]  ;;  %v1320_v53 = vld [vmem:[%s11839_s3 + $0x58] sm:$0xff]  ;;  %v6605_v52 = vpack.c.bf16 %v1364_v49, %v1360_v40 }
 0x249   :  { %6550 = vmatprep.subr.bf16.mxu1 %v6549_v55  ;;  %v1401_v55 = vld [vmem:[%s11839_s3 + $0x2e0] sm:$0xff]  ;;  %v1324_v1 = vld [vmem:[%s11839_s3 + $0x78] sm:$0xff] }
 0x24a   :  { %v6579_v61 = vpack.c.bf16 %v1401_v55, %v1397_v59  ;;  %v6585_v44 = vpack.c.bf16 %v1324_v1, %v1320_v53  ;;  %v1368_v59 = vld [vmem:[%s11839_s3 + $0x1d8] sm:$0xff]  ;;  %v5547_v49 = vld [vmem:[%s11839_s3 + $0x640] sm:$0xff] }
 0x24b   :  { %1785 = vmatmul.mubr.f32.gmra.mrb[24].mxu1 %v8647_v37  ;;  %v1370_v37 = vld [vmem:[%s11839_s3 + $0x1e8] sm:$0xff]  ;;  %v1372_v55 = vld [vmem:[%s11839_s3 + $0x1f8] sm:$0xff] }
 0x24c   :  { %5520 = vmatprep.mubr.msk.f32.mxu1 %vm60_vm2, %v8661_v54  ;;  %6552 = vmatpush1.bf16.msra.mxu1 %v6551_v48  ;;  %v6559_v54 = vpack.c.bf16 %v1361_v9, %v1357_v8  ;;  %v6561_v18 = vpack.c.bf16 %v1370_v37, %v1366_v13  ;;  %v1311_v48 = vld [vmem:[%s11839_s3 + $0x10] sm:$0xff]  ;;  %v1328_v8 = vld [vmem:[%s11839_s3 + $0x98] sm:$0xff]  ;;  %v6609_v58 = vpack.c.bf16 %v1372_v55, %v1368_v59  ;;  %v5555_v55 = vld [vmem:[%s11839_s3 + $0x680] sm:$0xff] }
 0x24d   :  { %6554 = vmatprep.subr.bf16.mxu1 %v6553_v3  ;;  %v1315_v3 = vld [vmem:[%s11839_s3 + $0x30] sm:$0xff]  ;;  %v1332_v9 = vld [vmem:[%s11839_s3 + $0xb8] sm:$0xff] }
 0x24e   :  { %v6583_v4 = vpack.c.bf16 %v1315_v3, %v1311_v48  ;;  %v6589_v37 = vpack.c.bf16 %v1332_v9, %v1328_v8  ;;  %v1376_v48 = vld [vmem:[%s11839_s3 + $0x218] sm:$0xff] }
 0x24f   :  { %1791 = vmatmul.mubr.f32.gmra.mrb[26].mxu1 %v8672_v35  ;;  %v1378_v35 = vld [vmem:[%s11839_s3 + $0x228] sm:$0xff]  ;;  %v1380_v3 = vld [vmem:[%s11839_s3 + $0x238] sm:$0xff] }
 0x250   :  { %5521 = vmatprep.mubr.msk.f32.mxu1 %vm60_vm2, %v8686_v27  ;;  %6556 = vmatpush1.bf16.msra.mxu1 %v6555_v33  ;;  %v6563_v27 = vpack.c.bf16 %v1369_v19, %v1365_v15  ;;  %v6565_v25 = vpack.c.bf16 %v1378_v35, %v1374_v24  ;;  %v1319_v33 = vld [vmem:[%s11839_s3 + $0x50] sm:$0xff]  ;;  %v1336_v15 = vld [vmem:[%s11839_s3 + $0xd8] sm:$0xff]  ;;  %v6613_v1 = vpack.c.bf16 %v1380_v3, %v1376_v48  ;;  %v5563_v48 = vld [vmem:[%s11839_s3 + $0x6c0] sm:$0xff] }
 0x251   :  { %6558 = vmatprep.subr.bf16.mxu1 %v6557_v30  ;;  %v1323_v30 = vld [vmem:[%s11839_s3 + $0x70] sm:$0xff]  ;;  %v1340_v19 = vld [vmem:[%s11839_s3 + $0xf8] sm:$0xff]  ;;  %v5567_v3 = vld [vmem:[%s11839_s3 + $0x6e0] sm:$0xff] }
 0x252   :  { %v6587_v13 = vpack.c.bf16 %v1323_v30, %v1319_v33  ;;  %v6593_v35 = vpack.c.bf16 %v1340_v19, %v1336_v15  ;;  %v1384_v33 = vld [vmem:[%s11839_s3 + $0x258] sm:$0xff]  ;;  %v1391_v19 = vld [vmem:[%s11839_s3 + $0x290] sm:$0xff] }
 0x253   :  { %1797 = vmatmul.mubr.f32.gmra.mrb[28].mxu1 %v8697_v17  ;;  %v1386_v17 = vld [vmem:[%s11839_s3 + $0x268] sm:$0xff]  ;;  %v1388_v30 = vld [vmem:[%s11839_s3 + $0x278] sm:$0xff] }
 0x254   :  { %5522 = vmatprep.mubr.msk.f32.mxu1 %vm60_vm2, %v8707_v21  ;;  %6560 = vmatpush1.bf16.msra.mxu1 %v6559_v54  ;;  %v8895_v21 = vld [vmem:[#allocation3 + $0x8] sm:$0xff]  ;;  %v6569_v7 = vpack.c.bf16 %v1386_v17, %v1382_v34  ;;  %v1327_v54 = vld [vmem:[%s11839_s3 + $0x90] sm:$0xff]  ;;  %v6597_v17 = vpack.c.bf16 %v1348_v42, %v1344_v26  ;;  %v6617_v9 = vpack.c.bf16 %v1388_v30, %v1384_v33  ;;  %v5575_v33 = vld [vmem:[%s11839_s3 + $0x720] sm:$0xff] }
 0x255   :  { %6562 = vmatprep.subr.bf16.mxu1 %v6561_v18  ;;  %v1331_v18 = vld [vmem:[%s11839_s3 + $0xb0] sm:$0xff]  ;;  %v5580_v30 = vld [vmem:[%s11839_s3 + $0x748] sm:$0xff] }
 0x256   :  { %v6591_v24 = vpack.c.bf16 %v1331_v18, %v1327_v54  ;;  %v1392_v54 = vld [vmem:[%s11839_s3 + $0x298] sm:$0xff]  ;;  %v1399_v42 = vld [vmem:[%s11839_s3 + $0x2d0] sm:$0xff] }
 0x257   :  { %1803 = vmatmul.mubr.f32.gmra.mrb[30].mxu1 %v8718_v32  ;;  %v1390_v32 = vld [vmem:[%s11839_s3 + $0x288] sm:$0xff]  ;;  %v1396_v18 = vld [vmem:[%s11839_s3 + $0x2b8] sm:$0xff] }
 0x258   :  { %6564 = vmatpush1.bf16.msra.mxu1 %v6563_v27  ;;  %5523 = vmatprep.mubr.msk.f32.mxu1 %vm60_vm2, %v8895_v21  ;;  %v6573_v28 = vpack.c.bf16 %v1394_v45, %v1390_v32  ;;  %v1335_v27 = vld [vmem:[%s11839_s3 + $0xd0] sm:$0xff]  ;;  %v6601_v45 = vpack.c.bf16 %v1356_v43, %v1352_v39  ;;  %v6621_v15 = vpack.c.bf16 %v1396_v18, %v1392_v54  ;;  %v5539_v43 = vld [vmem:[%s11839_s3 + $0x600] sm:$0xff]  ;;  %v5588_v54 = vld [vmem:[%s11839_s3 + $0x788] sm:$0xff] }
 0x259   :  { %6566 = vmatprep.subr.bf16.mxu1 %v6565_v25  ;;  %v1339_v25 = vld [vmem:[%s11839_s3 + $0xf0] sm:$0xff] }
 0x25a   :  { %v6595_v34 = vpack.c.bf16 %v1339_v25, %v1335_v27  ;;  %v1404_v27 = vld [vmem:[%s11839_s3 + $0x2f8] sm:$0xff] }
 0x25c   :  { %6568 = vmatpush1.bf16.msra.mxu1 %v6567_v0  ;;  %v1343_v0 = vld [vmem:[%s11839_s3 + $0x110] sm:$0xff] }
 0x25d   :  { %6570 = vmatprep.subr.bf16.mxu1 %v6569_v7  ;;  %v1347_v7 = vld [vmem:[%s11839_s3 + $0x130] sm:$0xff] }
 0x25e   :  { %v6599_v32 = vpack.c.bf16 %v1347_v7, %v1343_v0  ;;  %v5544_v0 = vld [vmem:[%s11839_s3 + $0x628] sm:$0xff] }
 0x260   :  { %6572 = vmatpush1.bf16.msra.mxu1 %v6571_v46  ;;  %v1351_v46 = vld [vmem:[%s11839_s3 + $0x150] sm:$0xff] }
 0x261   :  { %6574 = vmatprep.subr.bf16.mxu1 %v6573_v28  ;;  %v1355_v28 = vld [vmem:[%s11839_s3 + $0x170] sm:$0xff] }
 0x262   :  { %v6603_v16 = vpack.c.bf16 %v1355_v28, %v1351_v46  ;;  %v5552_v46 = vld [vmem:[%s11839_s3 + $0x668] sm:$0xff] }
 0x264   :  { %6576 = vmatpush1.bf16.msra.mxu1 %v6575_v20  ;;  %v1359_v20 = vld [vmem:[%s11839_s3 + $0x190] sm:$0xff] }
 0x265   :  { %6578 = vmatprep.subr.bf16.mxu1 %v6577_v36  ;;  %v1363_v36 = vld [vmem:[%s11839_s3 + $0x1b0] sm:$0xff] }
 0x266   :  { %v6607_v56 = vpack.c.bf16 %v1363_v36, %v1359_v20  ;;  %v5560_v20 = vld [vmem:[%s11839_s3 + $0x6a8] sm:$0xff] }
 0x268   :  { %6580 = vmatpush1.bf16.msra.mxu1 %v6579_v61  ;;  %v1367_v61 = vld [vmem:[%s11839_s3 + $0x1d0] sm:$0xff] }
 0x269   :  { %6582 = vmatprep.subr.bf16.mxu1 %v6581_v41  ;;  %v1371_v41 = vld [vmem:[%s11839_s3 + $0x1f0] sm:$0xff] }
 0x26a   :  { %v6611_v53 = vpack.c.bf16 %v1371_v41, %v1367_v61 }
 0x26b   :  { %1891 = vmatmul.mubr.f32.vlgmr.msra.gmra.mrb[0].mxu1 %v8466_v51 }
 0x26c   :  { %5524 = vmatprep.mubr.msk.f32.mxu1 %vm60_vm2, %v8495_v6  ;;  %6584 = vmatpush1.bf16.msra.mxu1 %v6583_v4  ;;  %v1375_v4 = vld [vmem:[%s11839_s3 + $0x210] sm:$0xff] }
 0x26d   :  { %6586 = vmatprep.subr.bf16.mxu1 %v6585_v44  ;;  %v1379_v44 = vld [vmem:[%s11839_s3 + $0x230] sm:$0xff] }
 0x26e   :  { %v6615_v8 = vpack.c.bf16 %v1379_v44, %v1375_v4  ;;  %v5571_v44 = vld [vmem:[%s11839_s3 + $0x700] sm:$0xff] }
 0x26f   :  { %1897 = vmatmul.mubr.f32.gmra.mrb[2].mxu1 %v8473_v57 }
 0x270   :  { %5525 = vmatprep.mubr.msk.f32.mxu1 %vm60_vm2, %v8526_v31  ;;  %6588 = vmatpush1.bf16.msra.mxu1 %v6587_v13  ;;  %v1383_v13 = vld [vmem:[%s11839_s3 + $0x250] sm:$0xff] }
 0x271   :  { %6590 = vmatprep.subr.bf16.mxu1 %v6589_v37  ;;  %v1387_v37 = vld [vmem:[%s11839_s3 + $0x270] sm:$0xff] }
 0x273   :  { %1903 = vmatmul.mubr.f32.gmra.mrb[4].mxu1 %v8480_v60 }
 0x274   :  { %5526 = vmatprep.mubr.msk.f32.mxu1 %vm60_vm2, %v8558_v50  ;;  %6592 = vmatpush1.bf16.msra.mxu1 %v6591_v24  ;;  %v1395_v24 = vld [vmem:[%s11839_s3 + $0x2b0] sm:$0xff] }
 0x275   :  { %6594 = vmatprep.subr.bf16.mxu1 %v6593_v35  ;;  %v1400_v35 = vld [vmem:[%s11839_s3 + $0x2d8] sm:$0xff]  ;;  %v6623_v25 = vpack.c.bf16 %v1395_v24, %v1391_v19  ;;  %v5591_v19 = vld [vmem:[%s11839_s3 + $0x7a0] sm:$0xff]  ;;  %v5596_v24 = vld [vmem:[%s11839_s3 + $0x7c8] sm:$0xff] }
 0x276   :  { %v6625_v26 = vpack.c.bf16 %v1404_v27, %v1400_v35 }
 0x277   :  { %1909 = vmatmul.mubr.f32.gmra.mrb[6].mxu1 %v8493_v5 }
 0x278   :  { %5527 = vmatprep.mubr.msk.f32.mxu1 %vm60_vm2, %v8590_v63  ;;  %6596 = vmatpush1.bf16.msra.mxu1 %v6595_v34  ;;  %v1403_v34 = vld [vmem:[%s11839_s3 + $0x2f0] sm:$0xff] }
 0x279   :  { %6598 = vmatprep.subr.bf16.mxu1 %v6597_v17  ;;  %v5540_v17 = vld [vmem:[%s11839_s3 + $0x608] sm:$0xff]  ;;  %v6627_v7 = vpack.c.bf16 %v1403_v34, %v1399_v42  ;;  %v2053_v42 = vld [vmem:[#allocation3 + $0x8] sm:$0xf0] }
 0x27a   :  { %v6629_v39 = vpack.c.bf16 %v5544_v0, %v5540_v17  ;;  %v5608_v34 = vld [vmem:[%s11839_s3 + $0x828] sm:$0xff]  ;;  %v2162_v17 = vrot.slane %v8495_v6, 4 }
 0x27b   :  { %1915 = vmatmul.mubr.f32.gmra.mrb[8].mxu1 %v8519_v29 }
 0x27c   :  { %5528 = vmatprep.mubr.msk.f32.mxu1 %vm60_vm2, %v8622_v23  ;;  %6600 = vmatpush1.bf16.msra.mxu1 %v6599_v32  ;;  %v5543_v32 = vld [vmem:[%s11839_s3 + $0x620] sm:$0xff] }
 0x27d   :  { %6602 = vmatprep.subr.bf16.mxu1 %v6601_v45  ;;  %v5548_v45 = vld [vmem:[%s11839_s3 + $0x648] sm:$0xff]  ;;  %v6631_v28 = vpack.c.bf16 %v5543_v32, %v5539_v43  ;;  %v5603_v43 = vld [vmem:[%s11839_s3 + $0x800] sm:$0xff] }
 0x27e   :  { %v6633_v40 = vpack.c.bf16 %v5552_v46, %v5548_v45  ;;  %v5607_v32 = vld [vmem:[%s11839_s3 + $0x820] sm:$0xff]  ;;  %v5616_v45 = vld [vmem:[%s11839_s3 + $0x868] sm:$0xff] }
 0x27f   :  { %1921 = vmatmul.mubr.f32.gmra.mrb[10].mxu1 %v8551_v47 }
 0x280   :  { %5529 = vmatprep.mubr.msk.f32.mxu1 %vm60_vm2, %v8649_v38  ;;  %6604 = vmatpush1.bf16.msra.mxu1 %v6603_v16  ;;  %v5551_v16 = vld [vmem:[%s11839_s3 + $0x660] sm:$0xff] }
 0x281   :  { %6606 = vmatprep.subr.bf16.mxu1 %v6605_v52  ;;  %v5556_v52 = vld [vmem:[%s11839_s3 + $0x688] sm:$0xff]  ;;  %v6635_v36 = vpack.c.bf16 %v5551_v16, %v5547_v49  ;;  %v5611_v49 = vld [vmem:[%s11839_s3 + $0x840] sm:$0xff] }
 0x282   :  { %v6637_v59 = vpack.c.bf16 %v5560_v20, %v5556_v52  ;;  %v5620_v16 = vld [vmem:[%s11839_s3 + $0x888] sm:$0xff] }
 0x283   :  { %1927 = vmatmul.mubr.f32.gmra.mrb[12].mxu1 %v8583_v62  ;;  %v5624_v52 = vld [vmem:[%s11839_s3 + $0x8a8] sm:$0xff] }
 0x284   :  { %5530 = vmatprep.mubr.msk.f32.mxu1 %vm60_vm2, %v8674_v2  ;;  %6608 = vmatpush1.bf16.msra.mxu1 %v6607_v56  ;;  %v5559_v56 = vld [vmem:[%s11839_s3 + $0x6a0] sm:$0xff] }
 0x285   :  { %6610 = vmatprep.subr.bf16.mxu1 %v6609_v58  ;;  %v5564_v58 = vld [vmem:[%s11839_s3 + $0x6c8] sm:$0xff]  ;;  %v6639_v61 = vpack.c.bf16 %v5559_v56, %v5555_v55  ;;  %v5623_v55 = vld [vmem:[%s11839_s3 + $0x8a0] sm:$0xff] }
 0x286   :  { %v5628_v56 = vld [vmem:[%s11839_s3 + $0x8c8] sm:$0xff] }
 0x287   :  { %1933 = vmatmul.mubr.f32.gmra.mrb[14].mxu1 %v8615_v22 }
 0x288   :  { %6612 = vmatpush1.bf16.msra.mxu1 %v6611_v53  ;;  %5531 = vmatprep.mubr.msk.f32.mxu1 %vm60_vm2, %v8895_v21  ;;  %v6619_v21 = vpack.c.bf16 %v1387_v37, %v1383_v13  ;;  %v5572_v53 = vld [vmem:[%s11839_s3 + $0x708] sm:$0xff]  ;;  %v5579_v13 = vld [vmem:[%s11839_s3 + $0x740] sm:$0xff] }
 0x289   :  { %6614 = vmatprep.subr.bf16.mxu1 %v6613_v1  ;;  %v6643_v1 = vpack.c.bf16 %v5567_v3, %v5563_v48  ;;  %v5583_v37 = vld [vmem:[%s11839_s3 + $0x760] sm:$0xff]  ;;  %v5542_v3 = vld [vmem:[%s11839_s3 + $0x618] sm:$0xff] }
 0x28a   :  { %v6651_v18 = vpack.c.bf16 %v5583_v37, %v5579_v13  ;;  %v5631_v48 = vld [vmem:[%s11839_s3 + $0x8e0] sm:$0xff] }
 0x28b   :  { %v9290_v13 = vld [vmem:[#allocation3 + $0x10] sm:$0xff] }
 0x28c   :  { %6616 = vmatpush1.bf16.msra.mxu1 %v6615_v8  ;;  %v6647_v8 = vpack.c.bf16 %v5575_v33, %v5571_v44  ;;  %v5541_v44 = vld [vmem:[%s11839_s3 + $0x610] sm:$0xff]  ;;  %v2159_v37 = vrot.slane %v9290_v13, 4 }
 0x28d   :  { %6618 = vmatprep.subr.bf16.mxu1 %v6617_v9  ;;  %v5545_v33 = vld [vmem:[%s11839_s3 + $0x630] sm:$0xff] }
 0x290   :  { %6620 = vmatpush1.bf16.msra.mxu1 %v6619_v21 }
 0x291   :  { %6622 = vmatprep.subr.bf16.mxu1 %v6621_v15  ;;  %v5587_v15 = vld [vmem:[%s11839_s3 + $0x780] sm:$0xff] }
 0x292   :  { %v6655_v35 = vpack.c.bf16 %v5591_v19, %v5587_v15 }
 0x294   :  { %6624 = vmatpush1.bf16.msra.mxu1 %v6623_v25  ;;  %v5595_v25 = vld [vmem:[%s11839_s3 + $0x7c0] sm:$0xff] }
 0x295   :  { %6626 = vmatprep.subr.bf16.mxu1 %v6625_v26  ;;  %v5599_v26 = vld [vmem:[%s11839_s3 + $0x7e0] sm:$0xff] }
 0x296   :  { %v6659_v0 = vpack.c.bf16 %v5599_v26, %v5595_v25 }
 0x298   :  { %6628 = vmatpush1.bf16.msra.mxu1 %v6627_v7  ;;  %v2161_v7 = vrot.slane %v2053_v42, 4  ;;  %v5557_v42 = vld [vmem:[%s11839_s3 + $0x690] sm:$0xff] }
 0x299   :  { %6630 = vmatprep.subr.bf16.mxu1 %v6629_v39 }
 0x29a   :  { %v9237_v46 = vsel %vm2157_vm7, %v2161_v7, %v2162_v17 }
 0x29b   :  { %2004 = vmatmul.mubr.f32.vlgmr.msra.gmra.mrb[16].mxu1 %v8466_v51  ;;  %v5568_v51 = vld [vmem:[%s11839_s3 + $0x6e8] sm:$0xff] }
 0x29c   :  { %5532 = vmatprep.mubr.msk.f32.mxu1 %vm60_vm2, %v8495_v6  ;;  %6632 = vmatpush1.bf16.msra.mxu1 %v6631_v28  ;;  %v6641_v41 = vpack.c.bf16 %v5568_v51, %v5564_v58  ;;  %v6663_v28 = vpack.c.bf16 %v5607_v32, %v5603_v43  ;;  %v5632_v58 = vld [vmem:[%s11839_s3 + $0x8e8] sm:$0xff]  ;;  %v5561_v6 = vld [vmem:[%s11839_s3 + $0x6b0] sm:$0xff] }
 0x29d   :  { %6634 = vmatprep.subr.bf16.mxu1 %v6633_v40  ;;  %v6687_v43 = vpack.c.bf16 %v5561_v6, %v5557_v42 }
 0x29f   :  { %2010 = vmatmul.mubr.f32.gmra.mrb[18].mxu1 %v8473_v57  ;;  %v5576_v57 = vld [vmem:[%s11839_s3 + $0x728] sm:$0xff] }
 0x2a0   :  { %5533 = vmatprep.mubr.msk.f32.mxu1 %vm60_vm2, %v8526_v31  ;;  %6636 = vmatpush1.bf16.msra.mxu1 %v6635_v36  ;;  %v6645_v4 = vpack.c.bf16 %v5576_v57, %v5572_v53  ;;  %v6669_v36 = vpack.c.bf16 %v5624_v52, %v5620_v16  ;;  %v5546_v53 = vld [vmem:[%s11839_s3 + $0x638] sm:$0xff]  ;;  %v2052_v57 = vld [vmem:[#allocation3] sm:$0xf0]  ;;  %v2178_v52 = vrot.slane %v8622_v23, 4 }
 0x2a1   :  { %6638 = vmatprep.subr.bf16.mxu1 %v6637_v59  ;;  %v5619_v59 = vld [vmem:[%s11839_s3 + $0x880] sm:$0xff] }
 0x2a2   :  { %v6671_v51 = vpack.c.bf16 %v5623_v55, %v5619_v59  ;;  %v5573_v59 = vld [vmem:[%s11839_s3 + $0x710] sm:$0xff] }
 0x2a3   :  { %2016 = vmatmul.mubr.f32.gmra.mrb[20].mxu1 %v8480_v60  ;;  %v5584_v60 = vld [vmem:[%s11839_s3 + $0x768] sm:$0xff]  ;;  %v5577_v55 = vld [vmem:[%s11839_s3 + $0x730] sm:$0xff] }
 0x2a4   :  { %5534 = vmatprep.mubr.msk.f32.mxu1 %vm60_vm2, %v8558_v50  ;;  %6640 = vmatpush1.bf16.msra.mxu1 %v6639_v61  ;;  %v6649_v9 = vpack.c.bf16 %v5584_v60, %v5580_v30  ;;  %v6673_v61 = vpack.c.bf16 %v5632_v58, %v5628_v56  ;;  %v2158_v30 = vrot.slane %v2052_v57, 4  ;;  %v5550_v60 = vld [vmem:[%s11839_s3 + $0x658] sm:$0xff]  ;;  %v9379_v58 = vld [vmem:[#allocation3 + $0x50] sm:$0xff]  ;;  %v5581_v57 = vld [vmem:[%s11839_s3 + $0x750] sm:$0xff] }
 0x2a5   :  { %6642 = vmatprep.subr.bf16.mxu1 %v6641_v41  ;;  %v5627_v41 = vld [vmem:[%s11839_s3 + $0x8c0] sm:$0xff] }
 0x2a6   :  { %v9300_v15 = vsel %vm2157_vm7, %v2158_v30, %v2159_v37  ;;  %v5594_v30 = vld [vmem:[%s11839_s3 + $0x7b8] sm:$0xff] }
 0x2a7   :  { %2022 = vmatmul.mubr.f32.gmra.mrb[22].mxu1 %v8493_v5  ;;  %v5592_v5 = vld [vmem:[%s11839_s3 + $0x7a8] sm:$0xff] }
 0x2a8   :  { %5535 = vmatprep.mubr.msk.f32.mxu1 %vm60_vm2, %v8590_v63  ;;  %6644 = vmatpush1.bf16.msra.mxu1 %v6643_v1  ;;  %v6653_v21 = vpack.c.bf16 %v5592_v5, %v5588_v54  ;;  %v6675_v1 = vpack.c.bf16 %v5631_v48, %v5627_v41  ;;  %v6679_v54 = vpack.c.bf16 %v5545_v33, %v5541_v44  ;;  %v2182_v48 = vrot.slane %v8649_v38, 4  ;;  %v9404_v44 = vld [vmem:[#allocation3 + $0x60] sm:$0xff]  ;;  %v5590_v33 = vld [vmem:[%s11839_s3 + $0x798] sm:$0xff] }
 0x2a9   :  { %6646 = vmatprep.subr.bf16.mxu1 %v6645_v4  ;;  %v6677_v4 = vpack.c.bf16 %v5546_v53, %v5542_v3  ;;  %v6695_v3 = vpack.c.bf16 %v5577_v55, %v5573_v59 }
 0x2ab   :  { %2028 = vmatmul.mubr.f32.gmra.mrb[24].mxu1 %v8519_v29  ;;  %v5600_v29 = vld [vmem:[%s11839_s3 + $0x7e8] sm:$0xff] }
 0x2ac   :  { %5536 = vmatprep.mubr.msk.f32.mxu1 %vm60_vm2, %v8622_v23  ;;  %6648 = vmatpush1.bf16.msra.mxu1 %v6647_v8  ;;  %v6657_v27 = vpack.c.bf16 %v5600_v29, %v5596_v24  ;;  %v5554_v8 = vld [vmem:[%s11839_s3 + $0x678] sm:$0xff]  ;;  %v2176_v23 = vrot.slane %v9379_v58, 4 }
 0x2ad   :  { %6650 = vmatprep.subr.bf16.mxu1 %v6649_v9  ;;  %v2166_v9 = vrot.slane %v8526_v31, 4  ;;  %v6681_v5 = vpack.c.bf16 %v5554_v8, %v5550_v60  ;;  %v9302_v31 = vld [vmem:[#allocation3 + $0x20] sm:$0xff]  ;;  %v5558_v24 = vld [vmem:[%s11839_s3 + $0x698] sm:$0xff]  ;;  %v9415_v60 = vsel %vm2157_vm7, %v2178_v52, %v2182_v48  ;;  %v2186_v8 = vrot.slane %v8674_v2, 4 }
 0x2ae   :  { %v2164_v19 = vrot.slane %v9302_v31, 4  ;;  %v5562_v29 = vld [vmem:[%s11839_s3 + $0x6b8] sm:$0xff] }
 0x2af   :  { %2034 = vmatmul.mubr.f32.gmra.mrb[26].mxu1 %v8551_v47  ;;  %v5604_v47 = vld [vmem:[%s11839_s3 + $0x808] sm:$0xff]  ;;  %v6685_v26 = vpack.c.bf16 %v5562_v29, %v5558_v24  ;;  %v5598_v24 = vld [vmem:[%s11839_s3 + $0x7d8] sm:$0xff] }
 0x2b0   :  { %5537 = vmatprep.mubr.msk.f32.mxu1 %vm60_vm2, %v8649_v38  ;;  %6652 = vmatpush1.bf16.msra.mxu1 %v6651_v18  ;;  %v6661_v39 = vpack.c.bf16 %v5608_v34, %v5604_v47  ;;  %v5549_v18 = vld [vmem:[%s11839_s3 + $0x650] sm:$0xff]  ;;  %v9327_v47 = vsel %vm2157_vm7, %v2159_v37, %v2164_v19  ;;  %v9329_v34 = vld [vmem:[#allocation3 + $0x30] sm:$0xff]  ;;  %v2180_v38 = vrot.slane %v9404_v44, 4  ;;  %v2055_v37 = vld [vmem:[#allocation3 + $0x88] sm:$0xf] }
 0x2b1   :  { %6654 = vmatprep.subr.bf16.mxu1 %v6653_v21  ;;  %v5553_v21 = vld [vmem:[%s11839_s3 + $0x670] sm:$0xff]  ;;  %v5602_v29 = vld [vmem:[%s11839_s3 + $0x7f8] sm:$0xff] }
 0x2b2   :  { %v6683_v25 = vpack.c.bf16 %v5553_v21, %v5549_v18  ;;  %v5593_v18 = vld [vmem:[%s11839_s3 + $0x7b0] sm:$0xff]  ;;  %v9427_v21 = vsel %vm2157_vm7, %v2176_v23, %v2180_v38  ;;  %v6705_v6 = vpack.c.bf16 %v5602_v29, %v5598_v24  ;;  %v5655_v24 = vld [vmem:[%s11839_s3 + $0x920] sm:$0xff]  ;;  %v5660_v29 = vld [vmem:[%s11839_s3 + $0x948] sm:$0xff] }
 0x2b3   :  { %2040 = vmatmul.mubr.f32.gmra.mrb[28].mxu1 %v8583_v62  ;;  %v5612_v62 = vld [vmem:[%s11839_s3 + $0x848] sm:$0xff] }
 0x2b4   :  { %5538 = vmatprep.mubr.msk.f32.mxu1 %vm60_vm2, %v8674_v2  ;;  %6656 = vmatpush1.bf16.msra.mxu1 %v6655_v35  ;;  %v6665_v40 = vpack.c.bf16 %v5616_v45, %v5612_v62  ;;  %v9315_v35 = vsel %vm2157_vm7, %v2162_v17, %v2166_v9  ;;  %v5566_v17 = vld [vmem:[%s11839_s3 + $0x6d8] sm:$0xff]  ;;  %v5565_v62 = vld [vmem:[%s11839_s3 + $0x6d0] sm:$0xff]  ;;  %v9429_v2 = vld [vmem:[#allocation3 + $0x70] sm:$0xff] }
 0x2b5   :  { %6658 = vmatprep.subr.bf16.mxu1 %v6657_v27  ;;  %v2170_v27 = vrot.slane %v8558_v50, 4  ;;  %v2168_v50 = vrot.slane %v9329_v34, 4  ;;  %v5569_v45 = vld [vmem:[%s11839_s3 + $0x6f0] sm:$0xff] }
 0x2b7   :  { %2046 = vmatmul.mubr.f32.gmra.mrb[30].mxu1 %v8615_v22  ;;  %v5615_v22 = vld [vmem:[%s11839_s3 + $0x860] sm:$0xff]  ;;  %v9340_v7 = vsel %vm2157_vm7, %v2166_v9, %v2170_v27 }
 0x2b8   :  { %6660 = vmatpush1.bf16.msra.mxu1 %v6659_v0  ;;  %5635 = vmatprep.mubr.msk.f32.mxu1 %vm60_vm2, %v9237_v46  ;;  %v6667_v20 = vpack.c.bf16 %v5615_v22, %v5611_v49  ;;  %v5570_v0 = vld [vmem:[%s11839_s3 + $0x6f8] sm:$0xff] }
 0x2b9   :  { %6662 = vmatprep.subr.bf16.mxu1 %v6661_v39  ;;  %v2174_v39 = vrot.slane %v8590_v63, 4  ;;  %v6689_v32 = vpack.c.bf16 %v5570_v0, %v5566_v17  ;;  %v5574_v49 = vld [vmem:[%s11839_s3 + $0x718] sm:$0xff]  ;;  %v5601_v17 = vld [vmem:[%s11839_s3 + $0x7f0] sm:$0xff] }
 0x2ba   :  { %v5578_v22 = vld [vmem:[%s11839_s3 + $0x738] sm:$0xff] }
 0x2bb   :  { %v9365_v16 = vsel %vm2157_vm7, %v2170_v27, %v2174_v39  ;;  %v9390_v41 = vsel %vm2157_vm7, %v2174_v39, %v2178_v52  ;;  %v9440_v27 = vsel %vm2157_vm7, %v2182_v48, %v2186_v8  ;;  %v5626_v48 = vld [vmem:[%s11839_s3 + $0x8b8] sm:$0xff] }
 0x2bc   :  { %6664 = vmatpush1.bf16.msra.mxu1 %v6663_v28  ;;  %v9352_v28 = vsel %vm2157_vm7, %v2164_v19, %v2168_v50  ;;  %v2184_v19 = vrot.slane %v9429_v2, 4 }
 0x2bd   :  { %6666 = vmatprep.subr.bf16.mxu1 %v6665_v40  ;;  %v9354_v40 = vld [vmem:[#allocation3 + $0x40] sm:$0xff] }
 0x2be   :  { %v2172_v63 = vrot.slane %v9354_v40, 4  ;;  %v9451_v0 = vsel %vm2157_vm7, %v2180_v38, %v2184_v19  ;;  %v5634_v38 = vld [vmem:[%s11839_s3 + $0x8f8] sm:$0xff] }
 0x2c0   :  { %6668 = vmatpush1.bf16.msra.mxu1 %v6667_v20  ;;  %v6691_v20 = vpack.c.bf16 %v5569_v45, %v5565_v62  ;;  %v9377_v56 = vsel %vm2157_vm7, %v2168_v50, %v2172_v63  ;;  %v5597_v50 = vld [vmem:[%s11839_s3 + $0x7d0] sm:$0xff] }
 0x2c1   :  { %6670 = vmatprep.subr.bf16.mxu1 %v6669_v36  ;;  %v6693_v36 = vpack.c.bf16 %v5578_v22, %v5574_v49  ;;  %v6707_v45 = vpack.c.bf16 %v5601_v17, %v5597_v50  ;;  %v5605_v49 = vld [vmem:[%s11839_s3 + $0x810] sm:$0xff]  ;;  %v5663_v50 = vld [vmem:[%s11839_s3 + $0x960] sm:$0xff]  ;;  %v5668_v17 = vld [vmem:[%s11839_s3 + $0x988] sm:$0xff] }
 0x2c2   :  { %v5609_v22 = vld [vmem:[%s11839_s3 + $0x830] sm:$0xff] }
 0x2c3   :  { %v6711_v59 = vpack.c.bf16 %v5609_v22, %v5605_v49  ;;  %v5676_v49 = vld [vmem:[%s11839_s3 + $0x9c8] sm:$0xff] }
 0x2c4   :  { %6672 = vmatpush1.bf16.msra.mxu1 %v6671_v51  ;;  %v5582_v51 = vld [vmem:[%s11839_s3 + $0x758] sm:$0xff] }
 0x2c5   :  { %6674 = vmatprep.subr.bf16.mxu1 %v6673_v61  ;;  %v5586_v61 = vld [vmem:[%s11839_s3 + $0x778] sm:$0xff] }
 0x2c6   :  { %v6697_v53 = vpack.c.bf16 %v5586_v61, %v5582_v51  ;;  %v5617_v51 = vld [vmem:[%s11839_s3 + $0x870] sm:$0xff]  ;;  %v5622_v61 = vld [vmem:[%s11839_s3 + $0x898] sm:$0xff] }
 0x2c8   :  { %6676 = vmatpush1.bf16.msra.mxu1 %v6675_v1  ;;  %v5585_v1 = vld [vmem:[%s11839_s3 + $0x770] sm:$0xff] }
 0x2c9   :  { %6678 = vmatprep.subr.bf16.mxu1 %v6677_v4  ;;  %v9402_v4 = vsel %vm2157_vm7, %v2172_v63, %v2176_v23  ;;  %v6699_v9 = vpack.c.bf16 %v5585_v1, %v5581_v57  ;;  %v5613_v23 = vld [vmem:[%s11839_s3 + $0x850] sm:$0xff]  ;;  %v5630_v1 = vld [vmem:[%s11839_s3 + $0x8d8] sm:$0xff] }
 0x2ca   :  { %v5625_v57 = vld [vmem:[%s11839_s3 + $0x8b0] sm:$0xff] }
 0x2cb   :  { %2281 = vmatmul.mubr.f32.vlgmr.msra.gmra.mrb[0].mxu1 %v9300_v15 }
 0x2cc   :  { %5636 = vmatprep.mubr.msk.f32.mxu1 %vm60_vm2, %v9315_v35  ;;  %6680 = vmatpush1.bf16.msra.mxu1 %v6679_v54  ;;  %v6701_v54 = vpack.c.bf16 %v5594_v30, %v5590_v33  ;;  %v6721_v30 = vpack.c.bf16 %v5634_v38, %v5630_v1  ;;  %v5699_v1 = vld [vmem:[%s11839_s3 + $0xa80] sm:$0xff] }
 0x2cd   :  { %6682 = vmatprep.subr.bf16.mxu1 %v6681_v5  ;;  %v5589_v5 = vld [vmem:[%s11839_s3 + $0x790] sm:$0xff]  ;;  %v5703_v38 = vld [vmem:[%s11839_s3 + $0xaa0] sm:$0xff] }
 0x2ce   :  { %v6703_v42 = vpack.c.bf16 %v5593_v18, %v5589_v5 }
 0x2cf   :  { %2287 = vmatmul.mubr.f32.gmra.mrb[2].mxu1 %v9327_v47 }
 0x2d0   :  { %5637 = vmatprep.mubr.msk.f32.mxu1 %vm60_vm2, %v9340_v7  ;;  %6684 = vmatpush1.bf16.msra.mxu1 %v6683_v25  ;;  %v2190_v25 = vrot.slane %v2055_v37, 4  ;;  %v5652_v37 = vld [vmem:[%s11839_s3 + $0x908] sm:$0xff] }
 0x2d1   :  { %6686 = vmatprep.subr.bf16.mxu1 %v6685_v26  ;;  %v2054_v26 = vld [vmem:[#allocation3 + $0x80] sm:$0xf] }
 0x2d2   :  { %v2188_v39 = vrot.slane %v2054_v26, 4  ;;  %v9461_v62 = vsel %vm2157_vm7, %v2186_v8, %v2190_v25  ;;  %v5629_v8 = vld [vmem:[%s11839_s3 + $0x8d0] sm:$0xff]  ;;  %v5664_v25 = vld [vmem:[%s11839_s3 + $0x968] sm:$0xff] }
 0x2d3   :  { %2293 = vmatmul.mubr.f32.gmra.mrb[4].mxu1 %v9352_v28 }
 0x2d4   :  { %5638 = vmatprep.mubr.msk.f32.mxu1 %vm60_vm2, %v9365_v16  ;;  %6688 = vmatpush1.bf16.msra.mxu1 %v6687_v43  ;;  %v5606_v43 = vld [vmem:[%s11839_s3 + $0x818] sm:$0xff]  ;;  %v9472_v52 = vsel %vm2157_vm7, %v2184_v19, %v2188_v39  ;;  %v5651_v19 = vld [vmem:[%s11839_s3 + $0x900] sm:$0xff]  ;;  %v5672_v39 = vld [vmem:[%s11839_s3 + $0x9a8] sm:$0xff] }
 0x2d5   :  { %6690 = vmatprep.subr.bf16.mxu1 %v6689_v32  ;;  %v5610_v32 = vld [vmem:[%s11839_s3 + $0x838] sm:$0xff]  ;;  %v6727_v26 = vpack.c.bf16 %v5655_v24, %v5651_v19 }
 0x2d6   :  { %v6709_v63 = vpack.c.bf16 %v5610_v32, %v5606_v43  ;;  %v6733_v32 = vpack.c.bf16 %v5672_v39, %v5668_v17  ;;  %v5732_v17 = vld [vmem:[%s11839_s3 + $0xb88] sm:$0xff] }
 0x2d7   :  { %2299 = vmatmul.mubr.f32.gmra.mrb[6].mxu1 %v9377_v56  ;;  %v5736_v39 = vld [vmem:[%s11839_s3 + $0xba8] sm:$0xff] }
 0x2d8   :  { %5639 = vmatprep.mubr.msk.f32.mxu1 %vm60_vm2, %v9390_v41  ;;  %6692 = vmatpush1.bf16.msra.mxu1 %v6691_v20  ;;  %v5614_v20 = vld [vmem:[%s11839_s3 + $0x858] sm:$0xff] }
 0x2d9   :  { %6694 = vmatprep.subr.bf16.mxu1 %v6693_v36  ;;  %v5618_v36 = vld [vmem:[%s11839_s3 + $0x878] sm:$0xff] }
 0x2da   :  { %v6713_v55 = vpack.c.bf16 %v5618_v36, %v5614_v20  ;;  %v5675_v20 = vld [vmem:[%s11839_s3 + $0x9c0] sm:$0xff] }
 0x2db   :  { %2305 = vmatmul.mubr.f32.gmra.mrb[8].mxu1 %v9402_v4  ;;  %v5679_v36 = vld [vmem:[%s11839_s3 + $0x9e0] sm:$0xff] }
 0x2dc   :  { %5640 = vmatprep.mubr.msk.f32.mxu1 %vm60_vm2, %v9415_v60  ;;  %6696 = vmatpush1.bf16.msra.mxu1 %v6695_v3  ;;  %v6717_v3 = vpack.c.bf16 %v5626_v48, %v5622_v61  ;;  %v5692_v61 = vld [vmem:[%s11839_s3 + $0xa48] sm:$0xff] }
 0x2dd   :  { %6698 = vmatprep.subr.bf16.mxu1 %v6697_v53  ;;  %v5621_v53 = vld [vmem:[%s11839_s3 + $0x890] sm:$0xff] }
 0x2de   :  { %v6719_v33 = vpack.c.bf16 %v5625_v57, %v5621_v53  ;;  %v5700_v53 = vld [vmem:[%s11839_s3 + $0xa88] sm:$0xff] }
 0x2df   :  { %2311 = vmatmul.mubr.f32.gmra.mrb[10].mxu1 %v9427_v21 }
 0x2e0   :  { %5641 = vmatprep.mubr.msk.f32.mxu1 %vm60_vm2, %v9440_v27  ;;  %6700 = vmatpush1.bf16.msra.mxu1 %v6699_v9  ;;  %v5633_v9 = vld [vmem:[%s11839_s3 + $0x8f0] sm:$0xff] }
 0x2e1   :  { %6702 = vmatprep.subr.bf16.mxu1 %v6701_v54  ;;  %v5656_v54 = vld [vmem:[%s11839_s3 + $0x928] sm:$0xff]  ;;  %v6723_v5 = vpack.c.bf16 %v5633_v9, %v5629_v8  ;;  %v5707_v8 = vld [vmem:[%s11839_s3 + $0xac0] sm:$0xff] }
 0x2e2   :  { %v6725_v18 = vpack.c.bf16 %v5656_v54, %v5652_v37  ;;  %v5711_v9 = vld [vmem:[%s11839_s3 + $0xae0] sm:$0xff]  ;;  %v2475_v37 = vld [vmem:[#allocation3 + $0x8] sm:$0xc0]  ;;  %v9634_v54 = vld [vmem:[#allocation3 + $0x18] sm:$0xff] }
 0x2e3   :  { %2317 = vmatmul.mubr.f32.gmra.mrb[12].mxu1 %v9451_v0  ;;  %v2583_v19 = vrot.slane %v2475_v37, 6  ;;  %v5669_v37 = vld [vmem:[%s11839_s3 + $0x990] sm:$0xff] }
 0x2e4   :  { %5642 = vmatprep.mubr.msk.f32.mxu1 %vm60_vm2, %v9461_v62  ;;  %6704 = vmatpush1.bf16.msra.mxu1 %v6703_v42  ;;  %v6729_v42 = vpack.c.bf16 %v5664_v25, %v5660_v29  ;;  %v5715_v29 = vld [vmem:[%s11839_s3 + $0xb00] sm:$0xff]  ;;  %v5724_v25 = vld [vmem:[%s11839_s3 + $0xb48] sm:$0xff] }
 0x2e5   :  { %6706 = vmatprep.subr.bf16.mxu1 %v6705_v6  ;;  %v5659_v6 = vld [vmem:[%s11839_s3 + $0x940] sm:$0xff] }
 0x2e6   :  { %v6731_v43 = vpack.c.bf16 %v5663_v50, %v5659_v6  ;;  %v5723_v50 = vld [vmem:[%s11839_s3 + $0xb40] sm:$0xff] }
 0x2e7   :  { %2323 = vmatmul.mubr.f32.gmra.mrb[14].mxu1 %v9472_v52 }
 0x2e8   :  { %6708 = vmatpush1.bf16.msra.mxu1 %v6707_v45  ;;  %5643 = vmatprep.mubr.msk.f32.mxu1 %vm60_vm2, %v9237_v46  ;;  %v6715_v46 = vpack.c.bf16 %v5617_v51, %v5613_v23  ;;  %v5667_v45 = vld [vmem:[%s11839_s3 + $0x980] sm:$0xff] }
 0x2e9   :  { %6710 = vmatprep.subr.bf16.mxu1 %v6709_v63  ;;  %v5671_v63 = vld [vmem:[%s11839_s3 + $0x9a0] sm:$0xff] }
 0x2ea   :  { %v5683_v23 = vld [vmem:[%s11839_s3 + $0xa00] sm:$0xff] }
 0x2eb   :  { %v5687_v51 = vld [vmem:[%s11839_s3 + $0xa20] sm:$0xff] }
 0x2ec   :  { %6712 = vmatpush1.bf16.msra.mxu1 %v6711_v59  ;;  %v5684_v59 = vld [vmem:[%s11839_s3 + $0xa08] sm:$0xff] }
 0x2ed   :  { %6714 = vmatprep.subr.bf16.mxu1 %v6713_v55 }
 0x2f0   :  { %6716 = vmatpush1.bf16.msra.mxu1 %v6715_v46  ;;  %v5691_v46 = vld [vmem:[%s11839_s3 + $0xa40] sm:$0xff] }
 0x2f1   :  { %6718 = vmatprep.subr.bf16.mxu1 %v6717_v3  ;;  %v5695_v3 = vld [vmem:[%s11839_s3 + $0xa60] sm:$0xff] }
 0x2f4   :  { %6720 = vmatpush1.bf16.msra.mxu1 %v6719_v33  ;;  %v5708_v33 = vld [vmem:[%s11839_s3 + $0xac8] sm:$0xff] }
 0x2f5   :  { %6722 = vmatprep.subr.bf16.mxu1 %v6721_v30 }
 0x2f8   :  { %6724 = vmatpush1.bf16.msra.mxu1 %v6723_v5  ;;  %v2584_v5 = vrot.slane %v9634_v54, 6 }
 0x2f9   :  { %6726 = vmatprep.subr.bf16.mxu1 %v6725_v18  ;;  %v6755_v18 = vpack.c.bf16 %v5711_v9, %v5707_v8 }
 0x2fb   :  { %2394 = vmatmul.mubr.f32.vlgmr.msra.gmra.mrb[16].mxu1 %v9300_v15  ;;  %v5680_v15 = vld [vmem:[%s11839_s3 + $0x9e8] sm:$0xff] }
 0x2fc   :  { %5644 = vmatprep.mubr.msk.f32.mxu1 %vm60_vm2, %v9315_v35  ;;  %6728 = vmatpush1.bf16.msra.mxu1 %v6727_v26  ;;  %v6735_v35 = vpack.c.bf16 %v5671_v63, %v5667_v45  ;;  %v6737_v22 = vpack.c.bf16 %v5680_v15, %v5676_v49  ;;  %v9655_v26 = vsel %vm2579_vm8, %v2583_v19, %v2584_v5  ;;  %v5731_v45 = vld [vmem:[%s11839_s3 + $0xb80] sm:$0xff]  ;;  %v5740_v49 = vld [vmem:[%s11839_s3 + $0xbc8] sm:$0xff]  ;;  %v5682_v19 = vld [vmem:[%s11839_s3 + $0x9f8] sm:$0xff] }
 0x2fd   :  { %6730 = vmatprep.subr.bf16.mxu1 %v6729_v42  ;;  %v5735_v63 = vld [vmem:[%s11839_s3 + $0xba0] sm:$0xff]  ;;  %v5744_v15 = vld [vmem:[%s11839_s3 + $0xbe8] sm:$0xff] }
 0x2ff   :  { %2400 = vmatmul.mubr.f32.gmra.mrb[18].mxu1 %v9327_v47  ;;  %v5688_v47 = vld [vmem:[%s11839_s3 + $0xa28] sm:$0xff] }
 0x300   :  { %5645 = vmatprep.mubr.msk.f32.mxu1 %vm60_vm2, %v9340_v7  ;;  %6732 = vmatpush1.bf16.msra.mxu1 %v6731_v43  ;;  %v6739_v7 = vpack.c.bf16 %v5679_v36, %v5675_v20  ;;  %v6741_v55 = vpack.c.bf16 %v5688_v47, %v5684_v59  ;;  %v5739_v20 = vld [vmem:[%s11839_s3 + $0xbc0] sm:$0xff]  ;;  %v5654_v59 = vld [vmem:[%s11839_s3 + $0x918] sm:$0xff] }
 0x301   :  { %6734 = vmatprep.subr.bf16.mxu1 %v6733_v32  ;;  %v6765_v32 = vpack.c.bf16 %v5736_v39, %v5732_v17  ;;  %v5743_v36 = vld [vmem:[%s11839_s3 + $0xbe0] sm:$0xff]  ;;  %v5658_v47 = vld [vmem:[%s11839_s3 + $0x938] sm:$0xff] }
 0x302   :  { %v5690_v17 = vld [vmem:[%s11839_s3 + $0xa38] sm:$0xff] }
 0x303   :  { %2406 = vmatmul.mubr.f32.gmra.mrb[20].mxu1 %v9352_v28  ;;  %v5696_v28 = vld [vmem:[%s11839_s3 + $0xa68] sm:$0xff] }
 0x304   :  { %5646 = vmatprep.mubr.msk.f32.mxu1 %vm60_vm2, %v9365_v16  ;;  %6736 = vmatpush1.bf16.msra.mxu1 %v6735_v35  ;;  %v6743_v16 = vpack.c.bf16 %v5687_v51, %v5683_v23  ;;  %v6745_v48 = vpack.c.bf16 %v5696_v28, %v5692_v61  ;;  %v6767_v35 = vpack.c.bf16 %v5735_v63, %v5731_v45  ;;  %v5653_v51 = vld [vmem:[%s11839_s3 + $0x910] sm:$0xff] }
 0x305   :  { %6738 = vmatprep.subr.bf16.mxu1 %v6737_v22  ;;  %v6769_v22 = vpack.c.bf16 %v5744_v15, %v5740_v49  ;;  %v6773_v23 = vpack.c.bf16 %v5658_v47, %v5654_v59  ;;  %v5657_v61 = vld [vmem:[%s11839_s3 + $0x930] sm:$0xff]  ;;  %v9808_v59 = vld [vmem:[#allocation3 + $0x68] sm:$0xff] }
 0x306   :  { %v5685_v63 = vld [vmem:[%s11839_s3 + $0xa10] sm:$0xff]  ;;  %v2604_v47 = vrot.slane %v9808_v59, 6 }
 0x307   :  { %2412 = vmatmul.mubr.f32.gmra.mrb[22].mxu1 %v9377_v56  ;;  %v5704_v56 = vld [vmem:[%s11839_s3 + $0xaa8] sm:$0xff]  ;;  %v5689_v49 = vld [vmem:[%s11839_s3 + $0xa30] sm:$0xff] }
 0x308   :  { %5647 = vmatprep.mubr.msk.f32.mxu1 %vm60_vm2, %v9390_v41  ;;  %6740 = vmatpush1.bf16.msra.mxu1 %v6739_v7  ;;  %v6747_v41 = vpack.c.bf16 %v5695_v3, %v5691_v46  ;;  %v6749_v57 = vpack.c.bf16 %v5704_v56, %v5700_v53  ;;  %v2474_v7 = vld [vmem:[#allocation3] sm:$0xc0]  ;;  %v9707_v46 = vld [vmem:[#allocation3 + $0x28] sm:$0xff]  ;;  %v2581_v53 = vrot.slane %v9290_v13, 6  ;;  %v6775_v56 = vpack.c.bf16 %v5657_v61, %v5653_v51 }
 0x309   :  { %6742 = vmatprep.subr.bf16.mxu1 %v6741_v55  ;;  %v6771_v55 = vpack.c.bf16 %v5743_v36, %v5739_v20  ;;  %v2580_v28 = vrot.slane %v2474_v7, 6  ;;  %v2588_v3 = vrot.slane %v9707_v46, 6  ;;  %v5670_v13 = vld [vmem:[%s11839_s3 + $0x998] sm:$0xff]  ;;  %v2602_v61 = vrot.slane %v9404_v44, 6 }
 0x30a   :  { %v5698_v20 = vld [vmem:[%s11839_s3 + $0xa78] sm:$0xff] }
 0x30b   :  { %2418 = vmatmul.mubr.f32.gmra.mrb[24].mxu1 %v9402_v4  ;;  %v5712_v4 = vld [vmem:[%s11839_s3 + $0xae8] sm:$0xff] }
 0x30c   :  { %5648 = vmatprep.mubr.msk.f32.mxu1 %vm60_vm2, %v9415_v60  ;;  %6744 = vmatpush1.bf16.msra.mxu1 %v6743_v16  ;;  %v6751_v60 = vpack.c.bf16 %v5703_v38, %v5699_v1  ;;  %v6753_v30 = vpack.c.bf16 %v5712_v4, %v5708_v33  ;;  %v5662_v16 = vld [vmem:[%s11839_s3 + $0x958] sm:$0xff]  ;;  %v5665_v1 = vld [vmem:[%s11839_s3 + $0x970] sm:$0xff]  ;;  %v9718_v38 = vsel %vm2579_vm8, %v2580_v28, %v2581_v53  ;;  %v2586_v33 = vrot.slane %v9302_v31, 6 }
 0x30d   :  { %6746 = vmatprep.subr.bf16.mxu1 %v6745_v48  ;;  %v5666_v48 = vld [vmem:[%s11839_s3 + $0x978] sm:$0xff] }
 0x30e   :  { %v5674_v4 = vld [vmem:[%s11839_s3 + $0x9b8] sm:$0xff] }
 0x30f   :  { %2424 = vmatmul.mubr.f32.gmra.mrb[26].mxu1 %v9427_v21  ;;  %v5716_v21 = vld [vmem:[%s11839_s3 + $0xb08] sm:$0xff]  ;;  %v6781_v9 = vpack.c.bf16 %v5674_v4, %v5670_v13  ;;  %v5702_v28 = vld [vmem:[%s11839_s3 + $0xa98] sm:$0xff]  ;;  %v2606_v13 = vrot.slane %v9429_v2, 6 }
 0x310   :  { %5649 = vmatprep.mubr.msk.f32.mxu1 %vm60_vm2, %v9440_v27  ;;  %6748 = vmatpush1.bf16.msra.mxu1 %v6747_v41  ;;  %v5720_v27 = vld [vmem:[%s11839_s3 + $0xb28] sm:$0xff]  ;;  %v6777_v41 = vpack.c.bf16 %v5666_v48, %v5662_v16  ;;  %v5706_v16 = vld [vmem:[%s11839_s3 + $0xab8] sm:$0xff] }
 0x311   :  { %6750 = vmatprep.subr.bf16.mxu1 %v6749_v57  ;;  %v6757_v24 = vpack.c.bf16 %v5720_v27, %v5716_v21  ;;  %v5661_v57 = vld [vmem:[%s11839_s3 + $0x950] sm:$0xff]  ;;  %v9745_v27 = vsel %vm2579_vm8, %v2581_v53, %v2586_v33  ;;  %v5710_v4 = vld [vmem:[%s11839_s3 + $0xad8] sm:$0xff] }
 0x312   :  { %v6779_v31 = vpack.c.bf16 %v5665_v1, %v5661_v57  ;;  %v5673_v21 = vld [vmem:[%s11839_s3 + $0x9b0] sm:$0xff] }
 0x313   :  { %2430 = vmatmul.mubr.f32.gmra.mrb[28].mxu1 %v9451_v0  ;;  %v5719_v0 = vld [vmem:[%s11839_s3 + $0xb20] sm:$0xff]  ;;  %v5701_v57 = vld [vmem:[%s11839_s3 + $0xa90] sm:$0xff] }
 0x314   :  { %5650 = vmatprep.mubr.msk.f32.mxu1 %vm60_vm2, %v9461_v62  ;;  %6752 = vmatpush1.bf16.msra.mxu1 %v6751_v60  ;;  %v5728_v62 = vld [vmem:[%s11839_s3 + $0xb68] sm:$0xff]  ;;  %v6759_v42 = vpack.c.bf16 %v5719_v0, %v5715_v29  ;;  %v9731_v60 = vsel %vm2579_vm8, %v2584_v5, %v2588_v3  ;;  %v2590_v5 = vrot.slane %v9329_v34, 6  ;;  %v9758_v29 = vld [vmem:[#allocation3 + $0x48] sm:$0xff]  ;;  %v6783_v34 = vpack.c.bf16 %v5673_v21, %v5669_v37  ;;  %v5705_v1 = vld [vmem:[%s11839_s3 + $0xab0] sm:$0xff] }
 0x315   :  { %6754 = vmatprep.subr.bf16.mxu1 %v6753_v30  ;;  %v6761_v6 = vpack.c.bf16 %v5728_v62, %v5724_v25  ;;  %v9733_v30 = vld [vmem:[#allocation3 + $0x38] sm:$0xff]  ;;  %v2596_v0 = vrot.slane %v9758_v29, 6  ;;  %v5677_v62 = vld [vmem:[%s11839_s3 + $0x9d0] sm:$0xff]  ;;  %v6799_v21 = vpack.c.bf16 %v5705_v1, %v5701_v57 }
 0x316   :  { %v2592_v8 = vrot.slane %v9733_v30, 6  ;;  %v2476_v37 = vld [vmem:[#allocation3 + $0x80] sm:$0x3f]  ;;  %v5768_v57 = vld [vmem:[%s11839_s3 + $0xc28] sm:$0xff] }
 0x317   :  { %2436 = vmatmul.mubr.f32.gmra.mrb[30].mxu1 %v9472_v52  ;;  %v5727_v52 = vld [vmem:[%s11839_s3 + $0xb60] sm:$0xff] }
 0x318   :  { %6756 = vmatpush1.bf16.msra.mxu1 %v6755_v18  ;;  %5747 = vmatprep.mubr.msk.f32.mxu1 %vm60_vm2, %v9655_v26  ;;  %v6763_v43 = vpack.c.bf16 %v5727_v52, %v5723_v50  ;;  %v5678_v18 = vld [vmem:[%s11839_s3 + $0x9d8] sm:$0xff]  ;;  %v2594_v50 = vrot.slane %v9354_v40, 6  ;;  %v9781_v39 = vsel %vm2579_vm8, %v2592_v8, %v2596_v0 }
 0x319   :  { %6758 = vmatprep.subr.bf16.mxu1 %v6757_v24  ;;  %v9756_v24 = vsel %vm2579_vm8, %v2588_v3, %v2592_v8  ;;  %v6785_v25 = vpack.c.bf16 %v5682_v19, %v5678_v18  ;;  %v5686_v52 = vld [vmem:[%s11839_s3 + $0xa18] sm:$0xff]  ;;  %v9833_v3 = vld [vmem:[#allocation3 + $0x78] sm:$0xff]  ;;  %v5709_v18 = vld [vmem:[%s11839_s3 + $0xad0] sm:$0xff] }
 0x31a   :  { %v6789_v45 = vpack.c.bf16 %v5690_v17, %v5686_v52  ;;  %v9795_v15 = vsel %vm2579_vm8, %v2590_v5, %v2594_v50  ;;  %v2608_v53 = vrot.slane %v9833_v3, 6  ;;  %v5714_v8 = vld [vmem:[%s11839_s3 + $0xaf8] sm:$0xff]  ;;  %v5713_v19 = vld [vmem:[%s11839_s3 + $0xaf0] sm:$0xff] }
 0x31b   :  { %v5717_v17 = vld [vmem:[%s11839_s3 + $0xb10] sm:$0xff] }
 0x31c   :  { %6760 = vmatpush1.bf16.msra.mxu1 %v6759_v42  ;;  %v5681_v42 = vld [vmem:[%s11839_s3 + $0x9f0] sm:$0xff] }
 0x31d   :  { %6762 = vmatprep.subr.bf16.mxu1 %v6761_v6  ;;  %v9770_v6 = vsel %vm2579_vm8, %v2586_v33, %v2590_v5  ;;  %v6787_v40 = vpack.c.bf16 %v5681_v42, %v5677_v62  ;;  %v6801_v5 = vpack.c.bf16 %v5714_v8, %v5710_v4  ;;  %v5722_v62 = vld [vmem:[%s11839_s3 + $0xb38] sm:$0xff]  ;;  %v5763_v4 = vld [vmem:[%s11839_s3 + $0xc00] sm:$0xff] }
 0x31e   :  { %v5767_v8 = vld [vmem:[%s11839_s3 + $0xc20] sm:$0xff] }
 0x320   :  { %6764 = vmatpush1.bf16.msra.mxu1 %v6763_v43  ;;  %v9783_v43 = vld [vmem:[#allocation3 + $0x58] sm:$0xff] }
 0x321   :  { %6766 = vmatprep.subr.bf16.mxu1 %v6765_v32  ;;  %v2600_v32 = vrot.slane %v9783_v43, 6 }
 0x323   :  { %v9806_v36 = vsel %vm2579_vm8, %v2596_v0, %v2600_v32  ;;  %v9831_v48 = vsel %vm2579_vm8, %v2600_v32, %v2604_v47  ;;  %v9867_v0 = vsel %vm2579_vm8, %v2602_v61, %v2606_v13  ;;  %v5721_v32 = vld [vmem:[%s11839_s3 + $0xb30] sm:$0xff] }
 0x324   :  { %6768 = vmatpush1.bf16.msra.mxu1 %v6767_v35  ;;  %v2598_v35 = vrot.slane %v9379_v58, 6  ;;  %v6791_v58 = vpack.c.bf16 %v5689_v49, %v5685_v63  ;;  %v5730_v63 = vld [vmem:[%s11839_s3 + $0xb78] sm:$0xff]  ;;  %v6807_v49 = vpack.c.bf16 %v5721_v32, %v5717_v17  ;;  %v5783_v17 = vld [vmem:[%s11839_s3 + $0xca0] sm:$0xff]  ;;  %v5788_v32 = vld [vmem:[%s11839_s3 + $0xcc8] sm:$0xff] }
 0x325   :  { %6770 = vmatprep.subr.bf16.mxu1 %v6769_v22  ;;  %v5694_v22 = vld [vmem:[%s11839_s3 + $0xa58] sm:$0xff] }
 0x326   :  { %v6793_v7 = vpack.c.bf16 %v5698_v20, %v5694_v22  ;;  %v9820_v51 = vsel %vm2579_vm8, %v2594_v50, %v2598_v35  ;;  %v9845_v33 = vsel %vm2579_vm8, %v2598_v35, %v2602_v61  ;;  %v6803_v50 = vpack.c.bf16 %v5713_v19, %v5709_v18  ;;  %v5725_v22 = vld [vmem:[%s11839_s3 + $0xb50] sm:$0xff]  ;;  %v5742_v61 = vld [vmem:[%s11839_s3 + $0xbd8] sm:$0xff]  ;;  %v5771_v18 = vld [vmem:[%s11839_s3 + $0xc40] sm:$0xff] }
 0x327   :  { %v5729_v20 = vld [vmem:[%s11839_s3 + $0xb70] sm:$0xff]  ;;  %v5775_v19 = vld [vmem:[%s11839_s3 + $0xc60] sm:$0xff] }
 0x328   :  { %6772 = vmatpush1.bf16.msra.mxu1 %v6771_v55  ;;  %v5693_v55 = vld [vmem:[%s11839_s3 + $0xa50] sm:$0xff] }
 0x329   :  { %6774 = vmatprep.subr.bf16.mxu1 %v6773_v23  ;;  %v5697_v23 = vld [vmem:[%s11839_s3 + $0xa70] sm:$0xff] }
 0x32a   :  { %v6795_v44 = vpack.c.bf16 %v5697_v23, %v5693_v55  ;;  %v5733_v55 = vld [vmem:[%s11839_s3 + $0xb90] sm:$0xff] }
 0x32b   :  { %2703 = vmatmul.mubr.f32.vlgmr.msra.gmra.mrb[0].mxu1 %v9718_v38  ;;  %v5737_v23 = vld [vmem:[%s11839_s3 + $0xbb0] sm:$0xff] }
 0x32c   :  { %5748 = vmatprep.mubr.msk.f32.mxu1 %vm60_vm2, %v9731_v60  ;;  %6776 = vmatpush1.bf16.msra.mxu1 %v6775_v56  ;;  %v2477_v56 = vld [vmem:[#allocation3 + $0x88] sm:$0x3f] }
 0x32d   :  { %6778 = vmatprep.subr.bf16.mxu1 %v6777_v41  ;;  %v6797_v41 = vpack.c.bf16 %v5706_v16, %v5702_v28  ;;  %v5746_v28 = vld [vmem:[%s11839_s3 + $0xbf8] sm:$0xff]  ;;  %v6815_v16 = vpack.c.bf16 %v5737_v23, %v5733_v55  ;;  %v5807_v55 = vld [vmem:[%s11839_s3 + $0xd60] sm:$0xff]  ;;  %v5812_v23 = vld [vmem:[%s11839_s3 + $0xd88] sm:$0xff] }
 0x32f   :  { %2709 = vmatmul.mubr.f32.gmra.mrb[2].mxu1 %v9745_v27 }
 0x330   :  { %5749 = vmatprep.mubr.msk.f32.mxu1 %vm60_vm2, %v9756_v24  ;;  %6780 = vmatpush1.bf16.msra.mxu1 %v6779_v31  ;;  %v9856_v31 = vsel %vm2579_vm8, %v2604_v47, %v2608_v53  ;;  %v5734_v47 = vld [vmem:[%s11839_s3 + $0xb98] sm:$0xff] }
 0x331   :  { %6782 = vmatprep.subr.bf16.mxu1 %v6781_v9  ;;  %v2612_v9 = vrot.slane %v2477_v56, 6  ;;  %v5745_v56 = vld [vmem:[%s11839_s3 + $0xbf0] sm:$0xff] }
 0x333   :  { %2715 = vmatmul.mubr.f32.gmra.mrb[4].mxu1 %v9770_v6  ;;  %v9877_v42 = vsel %vm2579_vm8, %v2608_v53, %v2612_v9  ;;  %v6817_v53 = vpack.c.bf16 %v5746_v28, %v5742_v61  ;;  %v5772_v9 = vld [vmem:[%s11839_s3 + $0xc48] sm:$0xff]  ;;  %v5811_v28 = vld [vmem:[%s11839_s3 + $0xd80] sm:$0xff] }
 0x334   :  { %5750 = vmatprep.mubr.msk.f32.mxu1 %vm60_vm2, %v9781_v39  ;;  %6784 = vmatpush1.bf16.msra.mxu1 %v6783_v34  ;;  %v2610_v34 = vrot.slane %v2476_v37, 6  ;;  %v5776_v37 = vld [vmem:[%s11839_s3 + $0xc68] sm:$0xff] }
 0x335   :  { %6786 = vmatprep.subr.bf16.mxu1 %v6785_v25  ;;  %v5718_v25 = vld [vmem:[%s11839_s3 + $0xb18] sm:$0xff] }
 0x336   :  { %v6805_v52 = vpack.c.bf16 %v5722_v62, %v5718_v25  ;;  %v5784_v25 = vld [vmem:[%s11839_s3 + $0xca8] sm:$0xff]  ;;  %v6827_v62 = vpack.c.bf16 %v5775_v19, %v5771_v18 }
 0x337   :  { %2721 = vmatmul.mubr.f32.gmra.mrb[6].mxu1 %v9795_v15 }
 0x338   :  { %5751 = vmatprep.mubr.msk.f32.mxu1 %vm60_vm2, %v9806_v36  ;;  %6788 = vmatpush1.bf16.msra.mxu1 %v6787_v40  ;;  %v9888_v40 = vsel %vm2579_vm8, %v2606_v13, %v2610_v34  ;;  %v5780_v34 = vld [vmem:[%s11839_s3 + $0xc88] sm:$0xff] }
 0x339   :  { %6790 = vmatprep.subr.bf16.mxu1 %v6789_v45  ;;  %v5726_v45 = vld [vmem:[%s11839_s3 + $0xb58] sm:$0xff] }
 0x33a   :  { %v6809_v35 = vpack.c.bf16 %v5730_v63, %v5726_v45  ;;  %v5787_v63 = vld [vmem:[%s11839_s3 + $0xcc0] sm:$0xff] }
 0x33b   :  { %2727 = vmatmul.mubr.f32.gmra.mrb[8].mxu1 %v9820_v51 }
 0x33c   :  { %5752 = vmatprep.mubr.msk.f32.mxu1 %vm60_vm2, %v9831_v48  ;;  %6792 = vmatpush1.bf16.msra.mxu1 %v6791_v58  ;;  %v5738_v58 = vld [vmem:[%s11839_s3 + $0xbb8] sm:$0xff] }
 0x33d   :  { %6794 = vmatprep.subr.bf16.mxu1 %v6793_v7  ;;  %v6813_v7 = vpack.c.bf16 %v5738_v58, %v5734_v47  ;;  %v5799_v47 = vld [vmem:[%s11839_s3 + $0xd20] sm:$0xff]  ;;  %v5804_v58 = vld [vmem:[%s11839_s3 + $0xd48] sm:$0xff] }
 0x33f   :  { %2733 = vmatmul.mubr.f32.gmra.mrb[10].mxu1 %v9845_v33 }
 0x340   :  { %5753 = vmatprep.mubr.msk.f32.mxu1 %vm60_vm2, %v9856_v31  ;;  %6796 = vmatpush1.bf16.msra.mxu1 %v6795_v44  ;;  %v5741_v44 = vld [vmem:[%s11839_s3 + $0xbd0] sm:$0xff] }
 0x341   :  { %6798 = vmatprep.subr.bf16.mxu1 %v6797_v41  ;;  %v5764_v41 = vld [vmem:[%s11839_s3 + $0xc08] sm:$0xff]  ;;  %v6819_v1 = vpack.c.bf16 %v5745_v56, %v5741_v44  ;;  %v5819_v56 = vld [vmem:[%s11839_s3 + $0xdc0] sm:$0xff] }
 0x342   :  { %v6821_v13 = vpack.c.bf16 %v5768_v57, %v5764_v41  ;;  %v5823_v41 = vld [vmem:[%s11839_s3 + $0xde0] sm:$0xff]  ;;  %v5828_v57 = vld [vmem:[%s11839_s3 + $0xe08] sm:$0xff] }
 0x343   :  { %2739 = vmatmul.mubr.f32.gmra.mrb[12].mxu1 %v9867_v0 }
 0x344   :  { %5754 = vmatprep.mubr.msk.f32.mxu1 %vm60_vm2, %v9877_v42  ;;  %6800 = vmatpush1.bf16.msra.mxu1 %v6799_v21  ;;  %v6823_v21 = vpack.c.bf16 %v5767_v8, %v5763_v4  ;;  %v5831_v4 = vld [vmem:[%s11839_s3 + $0xe20] sm:$0xff]  ;;  %v5836_v8 = vld [vmem:[%s11839_s3 + $0xe48] sm:$0xff] }
 0x345   :  { %6802 = vmatprep.subr.bf16.mxu1 %v6801_v5  ;;  %v6825_v5 = vpack.c.bf16 %v5776_v37, %v5772_v9  ;;  %v5835_v37 = vld [vmem:[%s11839_s3 + $0xe40] sm:$0xff] }
 0x347   :  { %2745 = vmatmul.mubr.f32.gmra.mrb[14].mxu1 %v9888_v40 }
 0x348   :  { %6804 = vmatpush1.bf16.msra.mxu1 %v6803_v50  ;;  %5755 = vmatprep.mubr.msk.f32.mxu1 %vm60_vm2, %v9655_v26  ;;  %v6811_v26 = vpack.c.bf16 %v5729_v20, %v5725_v22  ;;  %v6829_v50 = vpack.c.bf16 %v5784_v25, %v5780_v34  ;;  %v5795_v20 = vld [vmem:[%s11839_s3 + $0xd00] sm:$0xff] }
 0x349   :  { %6806 = vmatprep.subr.bf16.mxu1 %v6805_v52  ;;  %v5779_v52 = vld [vmem:[%s11839_s3 + $0xc80] sm:$0xff] }
 0x34a   :  { %v5843_v34 = vld [vmem:[%s11839_s3 + $0xe80] sm:$0xff] }
 0x34b   :  { %v5847_v25 = vld [vmem:[%s11839_s3 + $0xea0] sm:$0xff] }
 0x34c   :  { %6808 = vmatpush1.bf16.msra.mxu1 %v6807_v49  ;;  %v5791_v49 = vld [vmem:[%s11839_s3 + $0xce0] sm:$0xff] }
 0x34d   :  { %6810 = vmatprep.subr.bf16.mxu1 %v6809_v35  ;;  %v5796_v35 = vld [vmem:[%s11839_s3 + $0xd08] sm:$0xff] }
 0x350   :  { %6812 = vmatpush1.bf16.msra.mxu1 %v6811_v26 }
 0x351   :  { %6814 = vmatprep.subr.bf16.mxu1 %v6813_v7  ;;  %v5803_v7 = vld [vmem:[%s11839_s3 + $0xd40] sm:$0xff] }
 0x354   :  { %6816 = vmatpush1.bf16.msra.mxu1 %v6815_v16  ;;  %v5815_v16 = vld [vmem:[%s11839_s3 + $0xda0] sm:$0xff] }
 0x355   :  { %6818 = vmatprep.subr.bf16.mxu1 %v6817_v53  ;;  %v5820_v53 = vld [vmem:[%s11839_s3 + $0xdc8] sm:$0xff] }
 0x358   :  { %6820 = vmatpush1.bf16.msra.mxu1 %v6819_v1 }
 0x359   :  { %6822 = vmatprep.subr.bf16.mxu1 %v6821_v13  ;;  %v5827_v13 = vld [vmem:[%s11839_s3 + $0xe00] sm:$0xff] }
 0x35b   :  { %2816 = vmatmul.mubr.f32.vlgmr.msra.gmra.mrb[16].mxu1 %v9718_v38  ;;  %v5792_v38 = vld [vmem:[%s11839_s3 + $0xce8] sm:$0xff] }
 0x35c   :  { %5756 = vmatprep.mubr.msk.f32.mxu1 %vm60_vm2, %v9731_v60  ;;  %6824 = vmatpush1.bf16.msra.mxu1 %v6823_v21  ;;  %v6831_v60 = vpack.c.bf16 %v5783_v17, %v5779_v52  ;;  %v6833_v45 = vpack.c.bf16 %v5792_v38, %v5788_v32  ;;  %v5839_v21 = vld [vmem:[%s11839_s3 + $0xe60] sm:$0xff]  ;;  %v6863_v52 = vpack.c.bf16 %v5847_v25, %v5843_v34  ;;  %v5813_v25 = vld [vmem:[%s11839_s3 + $0xd90] sm:$0xff] }
 0x35d   :  { %6826 = vmatprep.subr.bf16.mxu1 %v6825_v5  ;;  %v5844_v5 = vld [vmem:[%s11839_s3 + $0xe88] sm:$0xff]  ;;  %v6859_v18 = vpack.c.bf16 %v5839_v21, %v5835_v37  ;;  %v5851_v32 = vld [vmem:[%s11839_s3 + $0xec0] sm:$0xff]  ;;  %v5805_v37 = vld [vmem:[%s11839_s3 + $0xd50] sm:$0xff] }
 0x35e   :  { %v5855_v38 = vld [vmem:[%s11839_s3 + $0xee0] sm:$0xff]  ;;  %v5809_v21 = vld [vmem:[%s11839_s3 + $0xd70] sm:$0xff] }
 0x35f   :  { %2822 = vmatmul.mubr.f32.gmra.mrb[18].mxu1 %v9745_v27  ;;  %v5800_v27 = vld [vmem:[%s11839_s3 + $0xd28] sm:$0xff] }
 0x360   :  { %5757 = vmatprep.mubr.msk.f32.mxu1 %vm60_vm2, %v9756_v24  ;;  %6828 = vmatpush1.bf16.msra.mxu1 %v6827_v62  ;;  %v6835_v24 = vpack.c.bf16 %v5791_v49, %v5787_v63  ;;  %v6837_v22 = vpack.c.bf16 %v5800_v27, %v5796_v35  ;;  %v5852_v62 = vld [vmem:[%s11839_s3 + $0xec8] sm:$0xff]  ;;  %v6867_v63 = vpack.c.bf16 %v5855_v38, %v5851_v32  ;;  %v5765_v35 = vld [vmem:[%s11839_s3 + $0xc10] sm:$0xff]  ;;  %v2897_v38 = vld [vmem:[#allocation3 + $0x88] sm:$0xff] }
 0x361   :  { %6830 = vmatprep.subr.bf16.mxu1 %v6829_v50  ;;  %v5856_v50 = vld [vmem:[%s11839_s3 + $0xee8] sm:$0xff]  ;;  %v5769_v27 = vld [vmem:[%s11839_s3 + $0xc30] sm:$0xff] }
 0x362   :  { %v6865_v17 = vpack.c.bf16 %v5856_v50, %v5852_v62  ;;  %v5817_v62 = vld [vmem:[%s11839_s3 + $0xdb0] sm:$0xff]  ;;  %v5822_v50 = vld [vmem:[%s11839_s3 + $0xdd8] sm:$0xff] }
 0x363   :  { %2828 = vmatmul.mubr.f32.gmra.mrb[20].mxu1 %v9770_v6  ;;  %v5808_v6 = vld [vmem:[%s11839_s3 + $0xd68] sm:$0xff]  ;;  %v6895_v32 = vpack.c.bf16 %v5817_v62, %v5813_v25 }
 0x364   :  { %5758 = vmatprep.mubr.msk.f32.mxu1 %vm60_vm2, %v9781_v39  ;;  %6832 = vmatpush1.bf16.msra.mxu1 %v6831_v60  ;;  %v6839_v39 = vpack.c.bf16 %v5799_v47, %v5795_v20  ;;  %v6841_v26 = vpack.c.bf16 %v5808_v6, %v5804_v58  ;;  %v5766_v60 = vld [vmem:[%s11839_s3 + $0xc18] sm:$0xff]  ;;  %v6871_v20 = vpack.c.bf16 %v5769_v27, %v5765_v35  ;;  %v5773_v58 = vld [vmem:[%s11839_s3 + $0xc50] sm:$0xff] }
 0x365   :  { %6834 = vmatprep.subr.bf16.mxu1 %v6833_v45  ;;  %v5770_v45 = vld [vmem:[%s11839_s3 + $0xc38] sm:$0xff]  ;;  %v5777_v6 = vld [vmem:[%s11839_s3 + $0xc70] sm:$0xff] }
 0x366   :  { %v6869_v49 = vpack.c.bf16 %v5770_v45, %v5766_v60  ;;  %v5821_v45 = vld [vmem:[%s11839_s3 + $0xdd0] sm:$0xff]  ;;  %v5834_v35 = vld [vmem:[%s11839_s3 + $0xe38] sm:$0xff] }
 0x367   :  { %2834 = vmatmul.mubr.f32.gmra.mrb[22].mxu1 %v9795_v15  ;;  %v5816_v15 = vld [vmem:[%s11839_s3 + $0xda8] sm:$0xff] }
 0x368   :  { %5759 = vmatprep.mubr.msk.f32.mxu1 %vm60_vm2, %v9806_v36  ;;  %6836 = vmatpush1.bf16.msra.mxu1 %v6835_v24  ;;  %v6843_v36 = vpack.c.bf16 %v5807_v55, %v5803_v7  ;;  %v6845_v61 = vpack.c.bf16 %v5816_v15, %v5812_v23  ;;  %v5774_v24 = vld [vmem:[%s11839_s3 + $0xc58] sm:$0xff]  ;;  %v10127_v7 = vld [vmem:[#allocation3 + $0x10] sm:$0xff]  ;;  %v6875_v55 = vpack.c.bf16 %v5777_v6, %v5773_v58  ;;  %v5781_v15 = vld [vmem:[%s11839_s3 + $0xc90] sm:$0xff] }
 0x369   :  { %6838 = vmatprep.subr.bf16.mxu1 %v6837_v22  ;;  %v5778_v22 = vld [vmem:[%s11839_s3 + $0xc78] sm:$0xff]  ;;  %v10240_v58 = vld [vmem:[#allocation3 + $0x80] sm:$0xff] }
 0x36a   :  { %v6873_v47 = vpack.c.bf16 %v5778_v22, %v5774_v24  ;;  %v5829_v22 = vld [vmem:[%s11839_s3 + $0xe10] sm:$0xff]  ;;  %83 = vst.msk [vmem:[#allocation4 + $0x20] sm:$0xff] %vm82_vm9, %v10240_v58  ;;  %88 = vst.msk [vmem:[#allocation4 + $0x48] sm:$0xff] %vm82_vm9, %v10240_v58 }
 0x36b   :  { %2840 = vmatmul.mubr.f32.gmra.mrb[24].mxu1 %v9820_v51  ;;  %v5824_v51 = vld [vmem:[%s11839_s3 + $0xde8] sm:$0xff]  ;;  %93 = vst.msk [vmem:[#allocation4 + $0x70] sm:$0xff] %vm82_vm9, %v10240_v58  ;;  %98 = vst.msk [vmem:[#allocation4 + $0x98] sm:$0xff] %vm82_vm9, %v10240_v58 }
 0x36c   :  { %5760 = vmatprep.mubr.msk.f32.mxu1 %vm60_vm2, %v9831_v48  ;;  %6840 = vmatpush1.bf16.msra.mxu1 %v6839_v39  ;;  %v6847_v48 = vpack.c.bf16 %v5815_v16, %v5811_v28  ;;  %v6849_v44 = vpack.c.bf16 %v5824_v51, %v5820_v53  ;;  %v5782_v39 = vld [vmem:[%s11839_s3 + $0xc98] sm:$0xff]  ;;  %v10144_v16 = vld [vmem:[#allocation3 + $0x20] sm:$0xff]  ;;  %103 = vst.msk [vmem:[#allocation4 + $0xc0] sm:$0xff] %vm82_vm9, %v10240_v58  ;;  %108 = vst.msk [vmem:[#allocation4 + $0xe8] sm:$0xff] %vm82_vm9, %v10240_v58 }
 0x36d   :  { %6842 = vmatprep.subr.bf16.mxu1 %v6841_v26  ;;  %v5786_v26 = vld [vmem:[%s11839_s3 + $0xcb8] sm:$0xff]  ;;  %113 = vst.msk [vmem:[#allocation4 + $0x110] sm:$0xff] %vm82_vm9, %v10240_v58  ;;  %118 = vst.msk [vmem:[#allocation4 + $0x138] sm:$0xff] %vm82_vm9, %v10240_v58 }
 0x36e   :  { %v6877_v23 = vpack.c.bf16 %v5786_v26, %v5782_v39  ;;  %v5794_v28 = vld [vmem:[%s11839_s3 + $0xcf8] sm:$0xff]  ;;  %v5837_v26 = vld [vmem:[%s11839_s3 + $0xe50] sm:$0xff]  ;;  %124 = vst.msk [vmem:[#allocation4 + $0x160] sm:$0x3] %vm123_vm10, %v10240_v58 }
 0x36f   :  { %2846 = vmatmul.mubr.f32.gmra.mrb[26].mxu1 %v9845_v33  ;;  %v5832_v33 = vld [vmem:[%s11839_s3 + $0xe28] sm:$0xff] }
 0x370   :  { %5761 = vmatprep.mubr.msk.f32.mxu1 %vm60_vm2, %v9856_v31  ;;  %6844 = vmatpush1.bf16.msra.mxu1 %v6843_v36  ;;  %v6851_v31 = vpack.c.bf16 %v5823_v41, %v5819_v56  ;;  %v6853_v1 = vpack.c.bf16 %v5832_v33, %v5828_v57  ;;  %v5785_v36 = vld [vmem:[%s11839_s3 + $0xcb0] sm:$0xff]  ;;  %v5798_v56 = vld [vmem:[%s11839_s3 + $0xd18] sm:$0xff]  ;;  %v10161_v57 = vld [vmem:[#allocation3 + $0x30] sm:$0xff] }
 0x371   :  { %6846 = vmatprep.subr.bf16.mxu1 %v6845_v61  ;;  %v5790_v61 = vld [vmem:[%s11839_s3 + $0xcd8] sm:$0xff]  ;;  %v6879_v53 = vpack.c.bf16 %v5785_v36, %v5781_v15 }
 0x372   :  { %v6881_v51 = vpack.c.bf16 %v5794_v28, %v5790_v61  ;;  %v5802_v41 = vld [vmem:[%s11839_s3 + $0xd38] sm:$0xff]  ;;  %v5845_v61 = vld [vmem:[%s11839_s3 + $0xe90] sm:$0xff] }
 0x373   :  { %2852 = vmatmul.mubr.f32.gmra.mrb[28].mxu1 %v9867_v0  ;;  %v5840_v0 = vld [vmem:[%s11839_s3 + $0xe68] sm:$0xff]  ;;  %v5850_v15 = vld [vmem:[%s11839_s3 + $0xeb8] sm:$0xff]  ;;  %v5849_v28 = vld [vmem:[%s11839_s3 + $0xeb0] sm:$0xff] }
 0x374   :  { %5762 = vmatprep.mubr.msk.f32.mxu1 %vm60_vm2, %v9877_v42  ;;  %6848 = vmatpush1.bf16.msra.mxu1 %v6847_v48  ;;  %v6855_v42 = vpack.c.bf16 %v5831_v4, %v5827_v13  ;;  %v6857_v9 = vpack.c.bf16 %v5840_v0, %v5836_v8  ;;  %v5789_v48 = vld [vmem:[%s11839_s3 + $0xcd0] sm:$0xff]  ;;  %v5806_v4 = vld [vmem:[%s11839_s3 + $0xd58] sm:$0xff] }
 0x375   :  { %6850 = vmatprep.subr.bf16.mxu1 %v6849_v44  ;;  %v5793_v44 = vld [vmem:[%s11839_s3 + $0xcf0] sm:$0xff]  ;;  %v5810_v8 = vld [vmem:[%s11839_s3 + $0xd78] sm:$0xff] }
 0x376   :  { %v6883_v33 = vpack.c.bf16 %v5793_v44, %v5789_v48  ;;  %v5801_v13 = vld [vmem:[%s11839_s3 + $0xd30] sm:$0xff]  ;;  %v6911_v48 = vpack.c.bf16 %v5849_v28, %v5845_v61 }
 0x377   :  { %2858 = vmatmul.mubr.f32.gmra.mrb[30].mxu1 %v9888_v40  ;;  %v5848_v40 = vld [vmem:[%s11839_s3 + $0xea8] sm:$0xff]  ;;  %v10178_v0 = vld [vmem:[#allocation3 + $0x40] sm:$0xff] }
 0x378   :  { %6852 = vmatpush1.bf16.msra.mxu1 %v6851_v31  ;;  %5859 = vmatprep.mubr.msk.f32.mxu1 %vm60_vm2, %v9634_v54  ;;  %v6861_v19 = vpack.c.bf16 %v5848_v40, %v5844_v5  ;;  %v6885_v31 = vpack.c.bf16 %v5802_v41, %v5798_v56  ;;  %v5814_v5 = vld [vmem:[%s11839_s3 + $0xd98] sm:$0xff]  ;;  %v5853_v56 = vld [vmem:[%s11839_s3 + $0xed0] sm:$0xff] }
 0x379   :  { %6854 = vmatprep.subr.bf16.mxu1 %v6853_v1  ;;  %v5797_v1 = vld [vmem:[%s11839_s3 + $0xd10] sm:$0xff]  ;;  %v5818_v40 = vld [vmem:[%s11839_s3 + $0xdb8] sm:$0xff] }
 0x37a   :  { %v6893_v34 = vpack.c.bf16 %v5818_v40, %v5814_v5  ;;  %v5857_v41 = vld [vmem:[%s11839_s3 + $0xef0] sm:$0xff] }
 0x37c   :  { %6856 = vmatpush1.bf16.msra.mxu1 %v6855_v42  ;;  %v6887_v42 = vpack.c.bf16 %v5801_v13, %v5797_v1 }
 0x37d   :  { %6858 = vmatprep.subr.bf16.mxu1 %v6857_v9  ;;  %v6889_v9 = vpack.c.bf16 %v5810_v8, %v5806_v4 }
 0x380   :  { %6860 = vmatpush1.bf16.msra.mxu1 %v6859_v18  ;;  %v10195_v18 = vld [vmem:[#allocation3 + $0x50] sm:$0xff] }
 0x381   :  { %6862 = vmatprep.subr.bf16.mxu1 %v6861_v19  ;;  %v6891_v19 = vpack.c.bf16 %v5809_v21, %v5805_v37 }
 0x384   :  { %6864 = vmatpush1.bf16.msra.mxu1 %v6863_v52  ;;  %v5826_v52 = vld [vmem:[%s11839_s3 + $0xdf8] sm:$0xff] }
 0x385   :  { %6866 = vmatprep.subr.bf16.mxu1 %v6865_v17  ;;  %v7496_v17 = vld [vmem:[#allocation3 + $0x60] sm:$0xff]  ;;  %v6897_v60 = vpack.c.bf16 %v5826_v52, %v5822_v50 }
 0x388   :  { %6868 = vmatpush1.bf16.msra.mxu1 %v6867_v63  ;;  %v5825_v63 = vld [vmem:[%s11839_s3 + $0xdf0] sm:$0xff] }
 0x389   :  { %6870 = vmatprep.subr.bf16.mxu1 %v6869_v49  ;;  %v5830_v49 = vld [vmem:[%s11839_s3 + $0xe18] sm:$0xff]  ;;  %v6899_v27 = vpack.c.bf16 %v5825_v63, %v5821_v45 }
 0x38a   :  { %v6901_v24 = vpack.c.bf16 %v5834_v35, %v5830_v49 }
 0x38b   :  { %3063 = vmatmul.mubr.f32.vlgmr.msra.gmra.mrb[0].mxu1 %v10127_v7 }
 0x38c   :  { %5860 = vmatprep.mubr.msk.f32.mxu1 %vm60_vm2, %v9707_v46  ;;  %6872 = vmatpush1.bf16.msra.mxu1 %v6871_v20  ;;  %v5833_v20 = vld [vmem:[%s11839_s3 + $0xe30] sm:$0xff] }
 0x38d   :  { %6874 = vmatprep.subr.bf16.mxu1 %v6873_v47  ;;  %v5838_v47 = vld [vmem:[%s11839_s3 + $0xe58] sm:$0xff]  ;;  %v6903_v6 = vpack.c.bf16 %v5833_v20, %v5829_v22 }
 0x38f   :  { %3069 = vmatmul.mubr.f32.gmra.mrb[2].mxu1 %v10144_v16 }
 0x390   :  { %5861 = vmatprep.mubr.msk.f32.mxu1 %vm60_vm2, %v9733_v30  ;;  %6876 = vmatpush1.bf16.msra.mxu1 %v6875_v55  ;;  %v5841_v55 = vld [vmem:[%s11839_s3 + $0xe70] sm:$0xff] }
 0x391   :  { %6878 = vmatprep.subr.bf16.mxu1 %v6877_v23  ;;  %v5846_v23 = vld [vmem:[%s11839_s3 + $0xe98] sm:$0xff] }
 0x392   :  { %v6909_v36 = vpack.c.bf16 %v5850_v15, %v5846_v23 }
 0x393   :  { %3075 = vmatmul.mubr.f32.gmra.mrb[4].mxu1 %v10161_v57 }
 0x394   :  { %5862 = vmatprep.mubr.msk.f32.mxu1 %vm60_vm2, %v9758_v29  ;;  %6880 = vmatpush1.bf16.msra.mxu1 %v6879_v53  ;;  %v5854_v53 = vld [vmem:[%s11839_s3 + $0xed8] sm:$0xff] }
 0x395   :  { %6882 = vmatprep.subr.bf16.mxu1 %v6881_v51  ;;  %v5858_v51 = vld [vmem:[%s11839_s3 + $0xef8] sm:$0xff] }
 0x396   :  { %v6913_v44 = vpack.c.bf16 %v5858_v51, %v5854_v53 }
 0x397   :  { %3081 = vmatmul.mubr.f32.gmra.mrb[6].mxu1 %v10178_v0 }
 0x398   :  { %5863 = vmatprep.mubr.msk.f32.mxu1 %vm60_vm2, %v9783_v43  ;;  %6884 = vmatpush1.bf16.msra.mxu1 %v6883_v33  ;;  %v6915_v33 = vpack.c.bf16 %v5857_v41, %v5853_v56 }
 0x399   :  { %6886 = vmatprep.subr.bf16.mxu1 %v6885_v31 }
 0x39b   :  { %3087 = vmatmul.mubr.f32.gmra.mrb[8].mxu1 %v10195_v18 }
 0x39c   :  { %5864 = vmatprep.mubr.msk.f32.mxu1 %vm60_vm2, %v9808_v59  ;;  %6888 = vmatpush1.bf16.msra.mxu1 %v6887_v42 }
 0x39d   :  { %6890 = vmatprep.subr.bf16.mxu1 %v6889_v9 }
 0x39f   :  { %3093 = vmatmul.mubr.f32.gmra.mrb[10].mxu1 %v7496_v17 }
 0x3a0   :  { %5865 = vmatprep.mubr.msk.f32.mxu1 %vm60_vm2, %v9833_v3  ;;  %6892 = vmatpush1.bf16.msra.mxu1 %v6891_v19 }
 0x3a1   :  { %6894 = vmatprep.subr.bf16.mxu1 %v6893_v34 }
 0x3a3   :  { %3099 = vmatmul.mubr.f32.gmra.mrb[12].mxu1 %v9429_v2  ;;  %v5842_v2 = vld [vmem:[%s11839_s3 + $0xe78] sm:$0xff]  ;;  %s7526_s3 = smov 96  }
 0x3a4   :  { %6896 = vmatpush1.bf16.msra.mxu1 %v6895_v32  ;;  %5866 = vmatprep.mubr.msk.f32.mxu1 %vm60_vm2, %v2897_v38  ;;  %v6905_v39 = vpack.c.bf16 %v5842_v2, %v5838_v47 }
 0x3a5   :  { %6898 = vmatprep.subr.bf16.mxu1 %v6897_v60 }
 0x3a7   :  { %3105 = vmatmul.mubr.f32.gmra.mrb[14].mxu1 %v10240_v58 }
 0x3a8   :  { %6900 = vmatpush1.bf16.msra.mxu1 %v6899_v27  ;;  %5867 = vmatprep.mubr.msk.f32.mxu1 %vm60_vm2, %v9634_v54  ;;  %v6907_v54 = vpack.c.bf16 %v5841_v55, %v5837_v26 }
 0x3a9   :  { %6902 = vmatprep.subr.bf16.mxu1 %v6901_v24 }
 0x3ac   :  { %6904 = vmatpush1.bf16.msra.mxu1 %v6903_v6 }
 0x3ad   :  { %6906 = vmatprep.subr.bf16.mxu1 %v6905_v39 }
 0x3b0   :  { %6908 = vmatpush1.bf16.msra.mxu1 %v6907_v54 }
 0x3b1   :  { %6910 = vmatprep.subr.bf16.mxu1 %v6909_v36 }
 0x3b4   :  { %6912 = vmatpush1.bf16.msra.mxu1 %v6911_v48 }
 0x3b5   :  { %6914 = vmatprep.subr.bf16.mxu1 %v6913_v44 }
 0x3b8   :  { %6916 = vmatpush1.bf16.msra.mxu1 %v6915_v33 }
 0x3bb   :  { %3176 = vmatmul.mubr.f32.vlgmr.msra.gmra.mrb[16].mxu1 %v10127_v7 }
 0x3bc   :  { %5868 = vmatprep.mubr.msk.f32.mxu1 %vm60_vm2, %v9707_v46  ;;  %v7498_v46 = vld [vmem:[#allocation3 + $0x70] sm:$0xff] }
 0x3bf   :  { %3182 = vmatmul.mubr.f32.gmra.mrb[18].mxu1 %v10144_v16 }
 0x3c0   :  { %5869 = vmatprep.mubr.msk.f32.mxu1 %vm60_vm2, %v9733_v30  ;;  %v10302_v30 = vld [vmem:[#allocation4 + $0x48] sm:$0xff] }
 0x3c3   :  { %3188 = vmatmul.mubr.f32.gmra.mrb[20].mxu1 %v10161_v57  ;;  %v10312_v57 = vld [vmem:[%s11840_s4] sm:$0xf] }
 0x3c4   :  { %5870 = vmatprep.mubr.msk.f32.mxu1 %vm60_vm2, %v9758_v29  ;;  %v3590_v29 = vld [vmem:[#allocation4 + $0x20] sm:$0xfc]  ;;  %v10317_v31 = vrot.slane %v10312_v57, %v1027_v12  ;;  %v10322_v1 = vrot.slane %v10312_v57, %v1031_v14 }
 0x3c7   :  { %3194 = vmatmul.mubr.f32.gmra.mrb[22].mxu1 %v10178_v0 }
 0x3c8   :  { %5871 = vmatprep.mubr.msk.f32.mxu1 %vm60_vm2, %v9783_v43  ;;  %v3582_v43 = vld [vmem:[#allocation4 + $0x20] sm:$0xff] }
 0x3cb   :  { %3200 = vmatmul.mubr.f32.gmra.mrb[24].mxu1 %v10195_v18 }
 0x3cc   :  { %5872 = vmatprep.mubr.msk.f32.mxu1 %vm60_vm2, %v9808_v59  ;;  %v3601_v59 = vrot.slane %v3590_v29, 2 }
 0x3cf   :  { %3206 = vmatmul.mubr.f32.gmra.mrb[26].mxu1 %v7496_v17 }
 0x3d0   :  { %5873 = vmatprep.mubr.msk.f32.mxu1 %vm60_vm2, %v9833_v3  ;;  %v3602_v3 = vrot.slane %v10302_v30, 2 }
 0x3d2   :  { %v3603_v7 = vsel %vm1524_vm6, %v3601_v59, %v3602_v3 }
 0x3d3   :  { %3212 = vmatmul.mubr.f32.gmra.mrb[28].mxu1 %v7498_v46  ;;  %v3626_v16 = vmax.f32 %v3582_v43, %v3603_v7 }
 0x3d4   :  { %5874 = vmatprep.mubr.msk.f32.mxu1 %vm60_vm2, %v2897_v38 }
 0x3d5   :  { %3682 = vrot.lane.b32.xlu0 %v3626_v16, %s7526_s3 }
 0x3d7   :  { %3218 = vmatmul.mubr.f32.gmra.mrb[30].mxu1 %v10240_v58 }
 0x45e   :  { %v3064_v13 = vpop.f32.mrb[0].mxu1 }
 0x45f   :  { %v3278_v4 = vadd.f32 %v10317_v31, %v3064_v13  ;;  %v3066_v8 = vpop.f32.mrb[1].mxu1 }
 0x460   :  { %v3279_v0 = vadd.f32 %v10322_v1, %v3066_v8 }
 0x461   :  { %v3310_v42 = vmax.f32 %v3278_v4, 0.0 }
 0x462   :  { %v3311_v9 = vmax.f32 %v3279_v0, 0.0  ;;  %v3070_v37 = vpop.f32.mrb[2].mxu1 }
 0x463   :  { %3342 = vst [vmem:[#allocation4] sm:$0xff] %v3310_v42  ;;  %v3282_v21 = vadd.f32 %v10317_v31, %v3070_v37  ;;  %v3072_v5 = vpop.f32.mrb[3].mxu1 }
 0x464   :  { %3343 = vst [vmem:[#allocation4 + $0x8] sm:$0xff] %v3311_v9  ;;  %v3283_v12 = vadd.f32 %v10322_v1, %v3072_v5 }
 0x465   :  { %v3314_v40 = vmax.f32 %v3282_v21, 0.0 }
 0x466   :  { %v3315_v18 = vmax.f32 %v3283_v12, 0.0  ;;  %v3076_v14 = vpop.f32.mrb[4].mxu1 }
 0x467   :  { %v3286_v19 = vadd.f32 %v10317_v31, %v3076_v14  ;;  %v3078_v34 = vpop.f32.mrb[5].mxu1  ;;  %v3451_v45 = vrot.slane %v3314_v40, 2 }
 0x468   :  { %v3287_v25 = vadd.f32 %v10322_v1, %v3078_v34  ;;  %v3454_v24 = vrot.slane %v3315_v18, 2 }
 0x469   :  { %v3318_v62 = vmax.f32 %v3286_v19, 0.0 }
 0x46a   :  { %v3319_v50 = vmax.f32 %v3287_v25, 0.0  ;;  %v3082_v52 = vpop.f32.mrb[6].mxu1  ;;  %v3406_v17 = vld [vmem:[#allocation4] sm:$0xfc] }
 0x46b   :  { %v3290_v32 = vadd.f32 %v10317_v31, %v3082_v52  ;;  %v3084_v38 = vpop.f32.mrb[7].mxu1  ;;  %v3450_v60 = vrot.slane %v3406_v17, 2  ;;  %v3407_v63 = vld [vmem:[#allocation4 + $0x8] sm:$0xfc]  ;;  %v3462_v49 = vrot.slane %v3318_v62, 2 }
 0x46c   :  { %v3291_v35 = vadd.f32 %v10322_v1, %v3084_v38  ;;  %v3453_v27 = vrot.slane %v3407_v63, 2  ;;  %v3464_v22 = vrot.slane %v3319_v50, 2 }
 0x46d   :  { %v3322_v20 = vmax.f32 %v3290_v32, 0.0  ;;  %v3452_v47 = vsel %vm1524_vm6, %v3450_v60, %v3451_v45  ;;  %v3463_v2 = vsel %vm1524_vm6, %v3451_v45, %v3462_v49 }
 0x46e   :  { %v3323_v6 = vmax.f32 %v3291_v35, 0.0  ;;  %v3088_v39 = vpop.f32.mrb[8].mxu1  ;;  %v10335_v58 = vmax.f32 %v3310_v42, %v3452_v47  ;;  %v3455_v26 = vsel %vm1524_vm6, %v3453_v27, %v3454_v24  ;;  %v10338_v55 = vmax.f32 %v3314_v40, %v3463_v2 }
 0x46f   :  { %v3294_v23 = vadd.f32 %v10317_v31, %v3088_v39  ;;  %v3090_v15 = vpop.f32.mrb[9].mxu1  ;;  %v10341_v54 = vmax.f32 %v3311_v9, %v3455_v26  ;;  %v3465_v36 = vsel %vm1524_vm6, %v3454_v24, %v3464_v22  ;;  %v3470_v61 = vrot.slane %v3322_v20, 2 }
 0x470   :  { %v3295_v28 = vadd.f32 %v10322_v1, %v3090_v15  ;;  %3674 = vrot.lane.b32.xlu0 %v10335_v58, %s7526_s3  ;;  %v10347_v53 = vmax.f32 %v3315_v18, %v3465_v36  ;;  %v3472_v51 = vrot.slane %v3323_v6, 2  ;;  %v3268_v26 = vsub.s32 2, %v8269_v11 }
 0x471   :  { %v3326_v48 = vmax.f32 %v3294_v23, 0.0  ;;  %3676 = vrot.lane.b32.xlu1 %v10341_v54, %s7526_s3  ;;  %v3471_v44 = vsel %vm1524_vm6, %v3462_v49, %v3470_v61  ;;  %v3272_v23 = vsub.s32 3, %v8269_v11 }
 0x472   :  { %v3327_v56 = vmax.f32 %v3295_v28, 0.0  ;;  %v3094_v41 = vpop.f32.mrb[10].mxu1  ;;  %v10352_v33 = vmax.f32 %v3318_v62, %v3471_v44  ;;  %v3473_v46 = vsel %vm1524_vm6, %v3464_v22, %v3472_v51  ;;  %v10410_v15 = vrot.slane %v10312_v57, %v3268_v26 }
 0x473   :  { %v3298_v29 = vadd.f32 %v10317_v31, %v3094_v41  ;;  %v3096_v43 = vpop.f32.mrb[11].mxu1  ;;  %v3478_v59 = vrot.slane %v3326_v48, 2  ;;  %v10356_v7 = vmax.f32 %v3319_v50, %v3473_v46  ;;  %v10413_v36 = vrot.slane %v10312_v57, %v3272_v23 }
 0x474   :  { %v3299_v16 = vadd.f32 %v10322_v1, %v3096_v43  ;;  %v3480_v13 = vrot.slane %v3327_v56, 2 }
 0x475   :  { %v3330_v4 = vmax.f32 %v3298_v29, 0.0  ;;  %v3479_v8 = vsel %vm1524_vm6, %v3470_v61, %v3478_v59 }
 0x476   :  { %v3331_v0 = vmax.f32 %v3299_v16, 0.0  ;;  %v3100_v42 = vpop.f32.mrb[12].mxu1  ;;  %v10360_v9 = vmax.f32 %v3322_v20, %v3479_v8  ;;  %v3481_v37 = vsel %vm1524_vm6, %v3472_v51, %v3480_v13 }
 0x477   :  { %v3302_v21 = vadd.f32 %v10317_v31, %v3100_v42  ;;  %v3102_v5 = vpop.f32.mrb[13].mxu1  ;;  %v3486_v12 = vrot.slane %v3330_v4, 2  ;;  %v10364_v40 = vmax.f32 %v3323_v6, %v3481_v37 }
 0x478   :  { %v3303_v18 = vadd.f32 %v10322_v1, %v3102_v5  ;;  %v3488_v14 = vrot.slane %v3331_v0, 2 }
 0x479   :  { %v3334_v19 = vmax.f32 %v3302_v21, 0.0  ;;  %v3487_v34 = vsel %vm1524_vm6, %v3478_v59, %v3486_v12 }
 0x47a   :  { %v3335_v25 = vmax.f32 %v3303_v18, 0.0  ;;  %v3106_v62 = vpop.f32.mrb[14].mxu1  ;;  %v10368_v50 = vmax.f32 %v3326_v48, %v3487_v34  ;;  %v3489_v52 = vsel %vm1524_vm6, %v3480_v13, %v3488_v14 }
 0x47b   :  { %v10372_v17 = vadd.f32 %v10317_v31, %v3106_v62  ;;  %v3108_v32 = vpop.f32.mrb[15].mxu1  ;;  %v10374_v38 = vmax.f32 %v3327_v56, %v3489_v52  ;;  %v3494_v60 = vrot.slane %v3334_v19, 2 }
 0x47c   :  { %v10377_v45 = vadd.f32 %v10322_v1, %v3108_v32  ;;  %3714 = vrot.lane.b32.xlu1 %v10368_v50, %s7526_s3  ;;  %v3496_v63 = vrot.slane %v3335_v25, 2 }
 0x47d   :  { %v3338_v49 = vmax.f32 %v10372_v17, 0.0  ;;  %3716 = vrot.lane.b32.xlu0 %v10374_v38, %s7526_s3  ;;  %v3495_v35 = vsel %vm1524_vm6, %v3486_v12, %v3494_v60 }
 0x47e   :  { %v3339_v31 = vmax.f32 %v10377_v45, 0.0  ;;  %v10386_v27 = vmax.f32 %v3330_v4, %v3495_v35  ;;  %v3497_v24 = vsel %vm1524_vm6, %v3488_v14, %v3496_v63 }
 0x47f   :  { %v10389_v22 = vmax.f32 %v3331_v0, %v3497_v24  ;;  %v10393_v1 = vrot.slane %v3338_v49, 2 }
 0x480   :  { %v10397_v20 = vrot.slane %v3339_v31, 2 }
 0x481   :  { %v3503_v47 = vsel %vm1524_vm6, %v3494_v60, %v10393_v1 }
 0x482   :  { %v10401_v2 = vmax.f32 %v3334_v19, %v3503_v47  ;;  %v3505_v6 = vsel %vm1524_vm6, %v3496_v63, %v10397_v20 }
 0x483   :  { %v10405_v39 = vmax.f32 %v3335_v25, %v3505_v6 }
 0x48e   :  { %v3177_v61 = vpop.f32.mrb[16].mxu1 }
 0x48f   :  { %v3280_v28 = vadd.f32 %v10410_v15, %v3177_v61  ;;  %v3179_v51 = vpop.f32.mrb[17].mxu1 }
 0x490   :  { %v3281_v48 = vadd.f32 %v10413_v36, %v3179_v51 }
 0x491   :  { %v3312_v44 = vmax.f32 %v3280_v28, 0.0 }
 0x492   :  { %v3313_v56 = vmax.f32 %v3281_v48, 0.0  ;;  %v3183_v41 = vpop.f32.mrb[18].mxu1 }
 0x493   :  { %3344 = vst [vmem:[#allocation4 + $0x10] sm:$0xff] %v3312_v44  ;;  %v3284_v46 = vadd.f32 %v10410_v15, %v3183_v41  ;;  %v3185_v29 = vpop.f32.mrb[19].mxu1 }
 0x494   :  { %3345 = vst [vmem:[#allocation4 + $0x18] sm:$0xff] %v3313_v56  ;;  %v3285_v43 = vadd.f32 %v10413_v36, %v3185_v29  ;;  %v3929_v29 = vld [vmem:[%s11841_s5] sm:$0xff] }
 0x495   :  { %v3316_v59 = vmax.f32 %v3284_v46, 0.0  ;;  %v3945_v46 = vld [vmem:[%s11841_s5 + $0x80] sm:$0xff] }
 0x496   :  { %v3317_v16 = vmax.f32 %v3285_v43, 0.0  ;;  %v3189_v57 = vpop.f32.mrb[20].mxu1 }
 0x497   :  { %v3288_v13 = vadd.f32 %v10410_v15, %v3189_v57  ;;  %v3191_v4 = vpop.f32.mrb[21].mxu1  ;;  %v3457_v14 = vrot.slane %v3316_v59, 2 }
 0x498   :  { %v3289_v8 = vadd.f32 %v10413_v36, %v3191_v4  ;;  %v3460_v52 = vrot.slane %v3317_v16, 2  ;;  %v3947_v4 = vld [vmem:[%s11841_s5 + $0x90] sm:$0xff] }
 0x499   :  { %v3320_v0 = vmax.f32 %v3288_v13, 0.0  ;;  %v3930_v13 = vld [vmem:[%s11841_s5 + $0x8] sm:$0xff] }
 0x49a   :  { %v3321_v42 = vmax.f32 %v3289_v8, 0.0  ;;  %v3195_v37 = vpop.f32.mrb[22].mxu1  ;;  %v3408_v21 = vld [vmem:[#allocation4 + $0x10] sm:$0xfc]  ;;  %v3948_v8 = vld [vmem:[%s11841_s5 + $0x98] sm:$0xff] }
 0x49b   :  { %v10422_v5 = vadd.f32 %v10410_v15, %v3195_v37  ;;  %v3197_v12 = vpop.f32.mrb[23].mxu1  ;;  %v3456_v18 = vrot.slane %v3408_v21, 2  ;;  %v3409_v19 = vld [vmem:[#allocation4 + $0x18] sm:$0xfc]  ;;  %v3466_v34 = vrot.slane %v3320_v0, 2 }
 0x49c   :  { %v10425_v25 = vadd.f32 %v10413_v36, %v3197_v12  ;;  %v3459_v62 = vrot.slane %v3409_v19, 2  ;;  %v3468_v32 = vrot.slane %v3321_v42, 2  ;;  %v6921_v12 = vpack.c.bf16 %v3948_v8, %v3947_v4  ;;  %v10471_v19 = vld [vmem:[#allocation4 + $0xe8] sm:$0xff] }
 0x49d   :  { %v3324_v60 = vmax.f32 %v10422_v5, 0.0  ;;  %v3458_v63 = vsel %vm1524_vm6, %v3456_v18, %v3457_v14  ;;  %v3467_v35 = vsel %vm1524_vm6, %v3457_v14, %v3466_v34  ;;  %v6919_v5 = vpack.c.bf16 %v3930_v13, %v3929_v29 }
 0x49e   :  { %v3325_v24 = vmax.f32 %v10425_v25, 0.0  ;;  %v3201_v47 = vpop.f32.mrb[24].mxu1  ;;  %v10431_v6 = vmax.f32 %v3312_v44, %v3458_v63  ;;  %v3461_v26 = vsel %vm1524_vm6, %v3459_v62, %v3460_v52  ;;  %v10434_v23 = vmax.f32 %v3316_v59, %v3467_v35  ;;  %v3946_v44 = vld [vmem:[%s11841_s5 + $0x88] sm:$0xff]  ;;  %v3932_v63 = vld [vmem:[%s11841_s5 + $0x18] sm:$0xff] }
 0x49f   :  { %v10437_v61 = vadd.f32 %v10410_v15, %v3201_v47  ;;  %v3203_v28 = vpop.f32.mrb[25].mxu1  ;;  %v10439_v51 = vmax.f32 %v3313_v56, %v3461_v26  ;;  %v3469_v48 = vsel %vm1524_vm6, %v3460_v52, %v3468_v32  ;;  %v3474_v41 = vrot.slane %v3324_v60, 2  ;;  %v3931_v52 = vld [vmem:[%s11841_s5 + $0x10] sm:$0xff] }
 0x4a0   :  { %v3297_v43 = vadd.f32 %v10413_v36, %v3203_v28  ;;  %3678 = vrot.lane.b32.xlu0 %v10431_v6, %s7526_s3  ;;  %v10454_v56 = vmax.f32 %v3317_v16, %v3469_v48  ;;  %v3476_v59 = vrot.slane %v3325_v24, 2  ;;  %v6917_v57 = vpack.c.bf16 %v3946_v44, %v3945_v46  ;;  %v10468_v16 = vld [vmem:[#allocation4 + $0xc0] sm:$0xff] }
 0x4a1   :  { %v3328_v37 = vmax.f32 %v10437_v61, 0.0  ;;  %3680 = vrot.lane.b32.xlu1 %v10439_v51, %s7526_s3  ;;  %v3475_v21 = vsel %vm1524_vm6, %v3466_v34, %v3474_v41  ;;  %v3950_v61 = vld [vmem:[%s11841_s5 + $0xa8] sm:$0xff]  ;;  %v3608_v29 = vrot.slane %v10468_v16, 2 }
 0x4a2   :  { %v3329_v18 = vmax.f32 %v3297_v43, 0.0  ;;  %v3207_v14 = vpop.f32.mrb[26].mxu1  ;;  %v10473_v25 = vmax.f32 %v3320_v0, %v3475_v21  ;;  %v3477_v62 = vsel %vm1524_vm6, %v3468_v32, %v3476_v59  ;;  %6918 = vmatprep.subr.bf16.mxu0 %v6917_v57  ;;  %v6923_v0 = vpack.c.bf16 %v3932_v63, %v3931_v52  ;;  %v3949_v32 = vld [vmem:[%s11841_s5 + $0xa0] sm:$0xff] }
 0x4a3   :  { %v3300_v34 = vadd.f32 %v10410_v15, %v3207_v14  ;;  %v3209_v35 = vpop.f32.mrb[27].mxu1  ;;  %v3482_v47 = vrot.slane %v3328_v37, 2  ;;  %v10483_v26 = vmax.f32 %v3321_v42, %v3477_v62  ;;  %6920 = vmatpush3.bf16.msra.mxu0 %v6919_v5  ;;  %v6925_v46 = vpack.c.bf16 %v3950_v61, %v3949_v32 }
 0x4a4   :  { %v3301_v28 = vadd.f32 %v10413_v36, %v3209_v35  ;;  %v3484_v48 = vrot.slane %v3329_v18, 2  ;;  %6922 = vmatprep.subr.bf16.mxu0 %v6921_v12  ;;  %v3610_v42 = vrot.slane %v10471_v19, 2 }
 0x4a5   :  { %v3332_v44 = vmax.f32 %v3300_v34, 0.0  ;;  %v3483_v43 = vsel %vm1524_vm6, %v3474_v41, %v3482_v47 }
 0x4a6   :  { %v3333_v57 = vmax.f32 %v3301_v28, 0.0  ;;  %v3213_v13 = vpop.f32.mrb[28].mxu1  ;;  %v10495_v4 = vmax.f32 %v3324_v60, %v3483_v43  ;;  %v3485_v8 = vsel %vm1524_vm6, %v3476_v59, %v3484_v48  ;;  %v3611_v60 = vsel %vm1524_vm6, %v3608_v29, %v3610_v42 }
 0x4a7   :  { %v3304_v21 = vadd.f32 %v10410_v15, %v3213_v13  ;;  %v3215_v5 = vpop.f32.mrb[29].mxu1  ;;  %v3490_v14 = vrot.slane %v3332_v44, 2  ;;  %v10499_v62 = vmax.f32 %v3325_v24, %v3485_v8  ;;  %6924 = vmatpush3.bf16.msra.mxu0 %v6923_v0  ;;  %v10511_v0 = vld [vmem:[#allocation4 + $0x70] sm:$0xff]  ;;  %v3934_v13 = vld [vmem:[%s11841_s5 + $0x28] sm:$0xff] }
 0x4a8   :  { %v3305_v12 = vadd.f32 %v10413_v36, %v3215_v5  ;;  %v3492_v52 = vrot.slane %v3333_v57, 2  ;;  %6926 = vmatprep.subr.bf16.mxu0 %v6925_v46 }
 0x4a9   :  { %v3336_v63 = vmax.f32 %v3304_v21, 0.0  ;;  %v3491_v41 = vsel %vm1524_vm6, %v3482_v47, %v3490_v14 }
 0x4aa   :  { %v3337_v59 = vmax.f32 %v3305_v12, 0.0  ;;  %v3219_v34 = vpop.f32.mrb[30].mxu1  ;;  %v10508_v35 = vmax.f32 %v3328_v37, %v3491_v41  ;;  %v3493_v24 = vsel %vm1524_vm6, %v3484_v48, %v3492_v52  ;;  %v3630_v37 = vmax.f32 %v10468_v16, %v3611_v60  ;;  %v3951_v41 = vld [vmem:[%s11841_s5 + $0xb0] sm:$0xff] }
 0x4ab   :  { %v10514_v32 = vadd.f32 %v10410_v15, %v3219_v34  ;;  %v3221_v61 = vpop.f32.mrb[31].mxu1  ;;  %v10516_v28 = vmax.f32 %v3329_v18, %v3493_v24  ;;  %v3498_v47 = vrot.slane %v3336_v63, 2  ;;  %v3604_v15 = vrot.slane %v10511_v0, 2  ;;  %v3935_v60 = vld [vmem:[%s11841_s5 + $0x30] sm:$0xff]  ;;  %v3936_v24 = vld [vmem:[%s11841_s5 + $0x38] sm:$0xff] }
 0x4ac   :  { %v10519_v46 = vadd.f32 %v10413_v36, %v3221_v61  ;;  %3718 = vrot.lane.b32.xlu1 %v10508_v35, %s7526_s3  ;;  %v3500_v43 = vrot.slane %v3337_v59, 2  ;;  %v3933_v36 = vld [vmem:[%s11841_s5 + $0x20] sm:$0xff] }
 0x4ad   :  { %v3340_v48 = vmax.f32 %v10514_v32, 0.0  ;;  %3720 = vrot.lane.b32.xlu0 %v10516_v28, %s7526_s3  ;;  %v3499_v18 = vsel %vm1524_vm6, %v3490_v14, %v3498_v47  ;;  %v6927_v12 = vpack.c.bf16 %v3934_v13, %v3933_v36  ;;  %v3952_v14 = vld [vmem:[%s11841_s5 + $0xb8] sm:$0xff]  ;;  %v3953_v61 = vld [vmem:[%s11841_s5 + $0xc0] sm:$0xff]  ;;  %v6931_v36 = vpack.c.bf16 %v3936_v24, %v3935_v60 }
 0x4ae   :  { %v3341_v8 = vmax.f32 %v10519_v46, 0.0  ;;  %v10536_v21 = vmax.f32 %v3332_v44, %v3499_v18  ;;  %v3501_v5 = vsel %vm1524_vm6, %v3492_v52, %v3500_v43  ;;  %v6929_v52 = vpack.c.bf16 %v3952_v14, %v3951_v41  ;;  %v3954_v18 = vld [vmem:[%s11841_s5 + $0xc8] sm:$0xff]  ;;  %v3937_v41 = vld [vmem:[%s11841_s5 + $0x40] sm:$0xff] }
 0x4af   :  { %v10548_v34 = vmax.f32 %v3333_v57, %v3501_v5  ;;  %v10552_v44 = vrot.slane %v3340_v48, 2  ;;  %6928 = vmatpush3.bf16.msra.mxu0 %v6927_v12  ;;  %v6933_v5 = vpack.c.bf16 %v3954_v18, %v3953_v61  ;;  %v3605_v12 = vsel %vm1524_vm6, %v3602_v3, %v3604_v15  ;;  %v3588_v61 = vld [vmem:[#allocation4 + $0x110] sm:$0xff]  ;;  %v3957_v18 = vld [vmem:[%s11841_s5 + $0xe0] sm:$0xff] }
 0x4b0   :  { %3722 = vrot.lane.b32.xlu1 %v3630_v37, %s7526_s3  ;;  %v10566_v57 = vrot.slane %v3341_v8, 2  ;;  %6930 = vmatprep.subr.bf16.mxu0 %v6929_v52  ;;  %v3938_v37 = vld [vmem:[%s11841_s5 + $0x48] sm:$0xff]  ;;  %v3627_v24 = vmax.f32 %v10302_v30, %v3605_v12  ;;  %v3955_v3 = vld [vmem:[%s11841_s5 + $0xd0] sm:$0xff]  ;;  %v3940_v30 = vld [vmem:[%s11841_s5 + $0x58] sm:$0xff] }
 0x4b1   :  { %3684 = vrot.lane.b32.xlu0 %v10338_v55, %s7526_s3  ;;  %v3507_v13 = vsel %vm1524_vm6, %v3498_v47, %v10552_v44  ;;  %v6935_v52 = vpack.c.bf16 %v3938_v37, %v3937_v41  ;;  %v3941_v37 = vld [vmem:[%s11841_s5 + $0x60] sm:$0xff]  ;;  %v3942_v12 = vld [vmem:[%s11841_s5 + $0x68] sm:$0xff] }
 0x4b2   :  { %v10583_v14 = vmax.f32 %v3336_v63, %v3507_v13  ;;  %v3509_v47 = vsel %vm1524_vm6, %v3500_v43, %v10566_v57  ;;  %v3956_v63 = vld [vmem:[%s11841_s5 + $0xd8] sm:$0xff]  ;;  %v3612_v13 = vrot.slane %v3588_v61, 2 }
 0x4b3   :  { %v10587_v60 = vmax.f32 %v3337_v59, %v3509_v47  ;;  %6932 = vmatpush3.bf16.msra.mxu0 %v6931_v36  ;;  %v3939_v59 = vld [vmem:[%s11841_s5 + $0x50] sm:$0xff]  ;;  %v6937_v43 = vpack.c.bf16 %v3956_v63, %v3955_v3  ;;  %v3958_v36 = vld [vmem:[%s11841_s5 + $0xe8] sm:$0xff] }
 0x4b4   :  { %3686 = vrot.lane.b32.xlu1 %v10347_v53, %s7526_s3  ;;  %6934 = vmatprep.subr.bf16.mxu0 %v6933_v5  ;;  %v6939_v5 = vpack.c.bf16 %v3940_v30, %v3939_v59  ;;  %v6941_v41 = vpack.c.bf16 %v3958_v36, %v3957_v18  ;;  %v3959_v47 = vld [vmem:[%s11841_s5 + $0xf0] sm:$0xff]  ;;  %v3613_v3 = vsel %vm1524_vm6, %v3610_v42, %v3612_v13  ;;  %v3585_v59 = vld [vmem:[#allocation4 + $0x98] sm:$0xff] }
 0x4b5   :  { %3688 = vrot.lane.b32.xlu0 %v10434_v23, %s7526_s3  ;;  %v3943_v30 = vld [vmem:[%s11841_s5 + $0x70] sm:$0xff]  ;;  %v3944_v42 = vld [vmem:[%s11841_s5 + $0x78] sm:$0xff]  ;;  %v3606_v18 = vrot.slane %v3585_v59, 2 }
 0x4b6   :  { %v6947_v36 = vpack.c.bf16 %v3944_v42, %v3943_v30  ;;  %v3412_v30 = vld [vmem:[#allocation4 + $0x150] sm:$0x3] }
 0x4b7   :  { %6936 = vmatpush3.bf16.msra.mxu0 %v6935_v52  ;;  %v3960_v52 = vld [vmem:[%s11841_s5 + $0xf8] sm:$0xff] }
 0x4b8   :  { %3690 = vrot.lane.b32.xlu1 %v10454_v56, %s7526_s3  ;;  %6938 = vmatprep.subr.bf16.mxu0 %v6937_v43  ;;  %v6945_v63 = vpack.c.bf16 %v3960_v52, %v3959_v47  ;;  %v3631_v43 = vmax.f32 %v10471_v19, %v3613_v3  ;;  %v3978_v19 = vld [vmem:[%s11841_s5 + $0x188] sm:$0xff]  ;;  %v3589_v47 = vld [vmem:[#allocation4 + $0x138] sm:$0xff] }
 0x4b9   :  { %3692 = vrot.lane.b32.xlu0 %v3627_v24, %s7526_s3  ;;  %v6943_v24 = vpack.c.bf16 %v3942_v12, %v3941_v37  ;;  %v3607_v37 = vsel %vm1524_vm6, %v3604_v15, %v3606_v18  ;;  %v3614_v52 = vrot.slane %v3589_v47, 2  ;;  %v3411_v3 = vld [vmem:[#allocation4 + $0x148] sm:$0x3] }
 0x4ba   :  { %v3628_v12 = vmax.f32 %v10511_v0, %v3607_v37  ;;  %v3410_v0 = vld [vmem:[#allocation4 + $0x140] sm:$0x3] }
 0x4bb   :  { %6940 = vmatpush3.bf16.msra.mxu0 %v6939_v5  ;;  %v3977_v5 = vld [vmem:[%s11841_s5 + $0x180] sm:$0xff]  ;;  %v3615_v15 = vsel %vm1524_vm6, %v3612_v13, %v3614_v52  ;;  %v3683_v13 = vpop.permute.xlu0 %3682 }
 0x4bc   :  { %3724 = vrot.lane.b32.xlu1 %v10386_v27, %s7526_s3  ;;  %6942 = vmatprep.subr.bf16.mxu0 %v6941_v41  ;;  %v6949_v41 = vpack.c.bf16 %v3978_v19, %v3977_v5  ;;  %v3591_v5 = vld [vmem:[#allocation4 + $0x160] sm:$0x3]  ;;  %v3514_v19 = vrot.slane %v3412_v30, 2 }
 0x4bd   :  { %3726 = vrot.lane.b32.xlu0 %v10389_v22, %s7526_s3 }
 0x4bf   :  { %6944 = vmatpush3.bf16.msra.mxu0 %v6943_v24  ;;  %v3632_v24 = vmax.f32 %v3588_v61, %v3615_v15  ;;  %v3512_v61 = vrot.slane %v3411_v3, 2 }
 0x4c0   :  { %3728 = vrot.lane.b32.xlu1 %v10536_v21, %s7526_s3  ;;  %6946 = vmatprep.subr.bf16.mxu0 %v6945_v63  ;;  %v3609_v63 = vsel %vm1524_vm6, %v3606_v18, %v3608_v29 }
 0x4c1   :  { %3730 = vrot.lane.b32.xlu0 %v10548_v34, %s7526_s3  ;;  %v3629_v42 = vmax.f32 %v3585_v59, %v3609_v63  ;;  %v3513_v16 = vsel %vm1524_vm6, %v10397_v20, %v3512_v61 }
 0x4c3   :  { %6948 = vmatpush3.bf16.msra.mxu0 %v6947_v36  ;;  %v3413_v36 = vld [vmem:[#allocation4 + $0x158] sm:$0x3] }
 0x4c4   :  { %3732 = vrot.lane.b32.xlu1 %v3631_v43, %s7526_s3  ;;  %6950 = vmatprep.subr.bf16.mxu0 %v6949_v41  ;;  %v3510_v43 = vrot.slane %v3410_v0, 2  ;;  %v3516_v29 = vrot.slane %v3413_v36, 2  ;;  %v3579_v41 = vmax.f32 %v3339_v31, %v3513_v16 }
 0x4c5   :  { %3694 = vrot.lane.b32.xlu0 %v10352_v33, %s7526_s3 }
 0x4c6   :  { %v3517_v20 = vsel %vm1524_vm6, %v10566_v57, %v3516_v29  ;;  %v7527_v29 = vmov 1983009808  }
 0x4c8   :  { %3696 = vrot.lane.b32.xlu1 %v10356_v7, %s7526_s3 }
 0x4c9   :  { %3698 = vrot.lane.b32.xlu0 %v10473_v25, %s7526_s3 }
 0x4cc   :  { %3700 = vrot.lane.b32.xlu1 %v10483_v26, %s7526_s3 }
 0x4cd   :  { %3702 = vrot.lane.b32.xlu0 %v3628_v12, %s7526_s3 }
 0x4d0   :  { %3734 = vrot.lane.b32.xlu1 %v10401_v2, %s7526_s3 }
 0x4d1   :  { %3736 = vrot.lane.b32.xlu0 %v10405_v39, %s7526_s3 }
 0x4d4   :  { %3738 = vrot.lane.b32.xlu1 %v10583_v14, %s7526_s3 }
 0x4d5   :  { %3740 = vrot.lane.b32.xlu0 %v10587_v60, %s7526_s3 }
 0x4d8   :  { %3742 = vrot.lane.b32.xlu1 %v3632_v24, %s7526_s3 }
 0x4d9   :  { %3704 = vrot.lane.b32.xlu0 %v10360_v9, %s7526_s3  ;;  %v3511_v9 = vsel %vm1524_vm6, %v10393_v1, %v3510_v43  ;;  %v3515_v1 = vsel %vm1524_vm6, %v10552_v44, %v3514_v19 }
 0x4da   :  { %v3580_v45 = vmax.f32 %v3340_v48, %v3515_v1 }
 0x4dc   :  { %3706 = vrot.lane.b32.xlu1 %v10364_v40, %s7526_s3  ;;  %v3616_v40 = vrot.slane %v3591_v5, 2 }
 0x4dd   :  { %3708 = vrot.lane.b32.xlu0 %v10495_v4, %s7526_s3  ;;  %v3578_v4 = vmax.f32 %v3338_v49, %v3511_v9  ;;  %v3581_v49 = vmax.f32 %v3341_v8, %v3517_v20 }
 0x4de   :  { %v3617_v17 = vsel %vm1524_vm6, %v3614_v52, %v3616_v40  ;;  %v4263_v40 = vunpack.c.l.s4 %v7527_v29 }
 0x4df   :  { %v3633_v31 = vmax.f32 %v3589_v47, %v3617_v17 }
 0x4e0   :  { %3710 = vrot.lane.b32.xlu1 %v10499_v62, %s7526_s3 }
 0x4e1   :  { %3712 = vrot.lane.b32.xlu0 %v3629_v42, %s7526_s3 }
 0x4e2   :  { %v3675_v18 = vpop.permute.xlu0 %3674 }
 0x4e3   :  { %v3677_v59 = vpop.permute.xlu1 %3676 }
 0x4e4   :  { %v3754_v62 = vsel %vm190_vm0, %v3675_v18, %v3677_v59  ;;  %3744 = vrot.lane.b32.xlu1 %v3578_v4, %s7526_s3 }
 0x4e5   :  { %v3818_v37 = vmax.f32 %v10335_v58, %v3754_v62  ;;  %3746 = vrot.lane.b32.xlu0 %v3579_v41, %s7526_s3  ;;  %v4264_v62 = vunpack.c.0.s8 %v4263_v40 }
 0x4e7   :  { %3850 = vst [vmem:[#allocation5] sm:$0xff] %v3818_v37 }
 0x4e8   :  { %3748 = vrot.lane.b32.xlu1 %v3580_v45, %s7526_s3  ;;  %v10749_v45 = vsub.s32 %v4264_v62, %v8269_v11  ;;  %v3985_v62 = vld [vmem:[%s11841_s5 + $0x1c0] sm:$0xff] }
 0x4e9   :  { %3750 = vrot.lane.b32.xlu0 %v3581_v49, %s7526_s3 }
 0x4ec   :  { %3752 = vrot.lane.b32.xlu1 %v3633_v31, %s7526_s3 }
 0x4ee   :  { %v3715_v44 = vpop.permute.xlu1 %3714 }
 0x4ef   :  { %v3717_v58 = vpop.permute.xlu0 %3716 }
 0x4f0   :  { %v3770_v57 = vsel %vm190_vm0, %v3715_v44, %v3717_v58 }
 0x4f1   :  { %v3834_v12 = vmax.f32 %v10368_v50, %v3770_v57  ;;  %v3995_v50 = vld [vmem:[%s11841_s5 + $0x210] sm:$0xff] }
 0x4f3   :  { %3866 = vst [vmem:[#allocation5 + $0x80] sm:$0xff] %v3834_v12  ;;  %v3979_v12 = vld [vmem:[%s11841_s5 + $0x190] sm:$0xff] }
 0x512   :  { %v3679_v32 = vpop.permute.xlu0 %3678 }
 0x513   :  { %v3755_v48 = vsel %vm190_vm0, %v3677_v59, %v3679_v32  ;;  %v3681_v52 = vpop.permute.xlu1 %3680 }
 0x514   :  { %v3819_v46 = vmax.f32 %v10341_v54, %v3755_v48  ;;  %v3756_v8 = vsel %vm190_vm0, %v3679_v32, %v3681_v52  ;;  %v3757_v47 = vsel %vm190_vm0, %v3681_v52, %v3683_v13 }
 0x515   :  { %v3820_v15 = vmax.f32 %v10431_v6, %v3756_v8  ;;  %v3821_v24 = vmax.f32 %v10439_v51, %v3757_v47 }
 0x516   :  { %3851 = vst [vmem:[#allocation5 + $0x8] sm:$0xff] %v3819_v46 }
 0x517   :  { %3852 = vst [vmem:[#allocation5 + $0x10] sm:$0xff] %v3820_v15  ;;  %3853 = vst [vmem:[#allocation5 + $0x18] sm:$0xff] %v3821_v24 }
 0x51e   :  { %v3882_v0 = vld [vmem:[#allocation5] ss:$8 sm:$0xf]  ;;  %v3889_v3 = vld [vmem:[#allocation5 + $0x4] ss:$8 sm:$0xf]  ;;  %v3719_v63 = vpop.permute.xlu1 %3718 }
 0x51f   :  { %3887 = vst.msk [vmem:[#allocation6] ss:$2 sm:$0xf] %vm10720_vm11, %v3882_v0  ;;  %3891 = vst.msk [vmem:[#allocation6 + $0x8] ss:$2 sm:$0xf] %vm10720_vm11, %v3889_v3  ;;  %v3771_v54 = vsel %vm190_vm0, %v3717_v58, %v3719_v63  ;;  %v3721_v6 = vpop.permute.xlu0 %3720 }
 0x520   :  { %v3835_v51 = vmax.f32 %v10374_v38, %v3771_v54  ;;  %v3772_v43 = vsel %vm190_vm0, %v3719_v63, %v3721_v6  ;;  %v3961_v58 = vld [vmem:[%s11841_s5 + $0x100] sm:$0xff]  ;;  %v3963_v54 = vld [vmem:[%s11841_s5 + $0x110] sm:$0xff] }
 0x521   :  { %v3836_v10 = vmax.f32 %v10508_v35, %v3772_v43  ;;  %v3981_v43 = vld [vmem:[%s11841_s5 + $0x1a0] sm:$0xff] }
 0x522   :  { %3867 = vst [vmem:[#allocation5 + $0x88] sm:$0xff] %v3835_v51  ;;  %v3723_v13 = vpop.permute.xlu1 %3722 }
 0x523   :  { %3868 = vst [vmem:[#allocation5 + $0x90] sm:$0xff] %v3836_v10  ;;  %v3773_v61 = vsel %vm190_vm0, %v3721_v6, %v3723_v13  ;;  %v3685_v30 = vpop.permute.xlu0 %3684  ;;  %v3964_v6 = vld [vmem:[%s11841_s5 + $0x118] sm:$0xff]  ;;  %v3982_v10 = vld [vmem:[%s11841_s5 + $0x1a8] sm:$0xff] }
 0x524   :  { %v3837_v42 = vmax.f32 %v10516_v28, %v3773_v61 }
 0x526   :  { %3869 = vst [vmem:[#allocation5 + $0x98] sm:$0xff] %v3837_v42  ;;  %v3687_v36 = vpop.permute.xlu1 %3686 }
 0x527   :  { %v3758_v5 = vsel %vm190_vm0, %v3685_v30, %v3687_v36  ;;  %v3689_v9 = vpop.permute.xlu0 %3688 }
 0x528   :  { %v3822_v19 = vmax.f32 %v10338_v55, %v3758_v5  ;;  %v3759_v38 = vsel %vm190_vm0, %v3687_v36, %v3689_v9  ;;  %v6955_v36 = vpack.c.bf16 %v3964_v6, %v3963_v54  ;;  %v3973_v54 = vld [vmem:[%s11841_s5 + $0x160] sm:$0xff]  ;;  %v3974_v6 = vld [vmem:[%s11841_s5 + $0x168] sm:$0xff] }
 0x529   :  { %v3823_v16 = vmax.f32 %v10347_v53, %v3759_v38  ;;  %v3966_v38 = vld [vmem:[%s11841_s5 + $0x128] sm:$0xff] }
 0x52a   :  { %3854 = vst [vmem:[#allocation5 + $0x20] sm:$0xff] %v3822_v19  ;;  %v3691_v35 = vpop.permute.xlu1 %3690  ;;  %v3965_v19 = vld [vmem:[%s11841_s5 + $0x120] sm:$0xff] }
 0x52b   :  { %3855 = vst [vmem:[#allocation5 + $0x28] sm:$0xff] %v3823_v16  ;;  %v3760_v18 = vsel %vm190_vm0, %v3689_v9, %v3691_v35  ;;  %v3693_v4 = vpop.permute.xlu0 %3692  ;;  %v6957_v9 = vpack.c.bf16 %v3982_v10, %v3981_v43  ;;  %v6975_v10 = vpack.c.bf16 %v3974_v6, %v3973_v54  ;;  %v4023_v54 = vld [vmem:[%s11841_s5 + $0x2f0] sm:$0xff]  ;;  %v4024_v6 = vld [vmem:[%s11841_s5 + $0x2f8] sm:$0xff] }
 0x52c   :  { %v3824_v28 = vmax.f32 %v10434_v23, %v3760_v18  ;;  %v3761_v59 = vsel %vm190_vm0, %v3691_v35, %v3693_v4  ;;  %v6959_v4 = vpack.c.bf16 %v3966_v38, %v3965_v19 }
 0x52d   :  { %v3905_v41 = vld [vmem:[#allocation5 + $0x80] ss:$8 sm:$0xf]  ;;  %v3909_v1 = vld [vmem:[#allocation5 + $0x84] ss:$8 sm:$0xf]  ;;  %v3825_v55 = vmax.f32 %v10454_v56, %v3761_v59 }
 0x52e   :  { %3907 = vst.msk [vmem:[#allocation6 + $0x1] ss:$2 sm:$0xf] %vm10720_vm11, %v3905_v41  ;;  %3911 = vst.msk [vmem:[#allocation6 + $0x9] ss:$2 sm:$0xf] %vm10720_vm11, %v3909_v1  ;;  %v3725_v53 = vpop.permute.xlu1 %3724 }
 0x52f   :  { %3856 = vst [vmem:[#allocation5 + $0x30] sm:$0xff] %v3824_v28  ;;  %3857 = vst [vmem:[#allocation5 + $0x38] sm:$0xff] %v3825_v55  ;;  %v3727_v20 = vpop.permute.xlu0 %3726  ;;  %v3967_v28 = vld [vmem:[%s11841_s5 + $0x130] sm:$0xff]  ;;  %v3968_v59 = vld [vmem:[%s11841_s5 + $0x138] sm:$0xff] }
 0x530   :  { %v3774_v37 = vsel %vm190_vm0, %v3725_v53, %v3727_v20 }
 0x531   :  { %v3838_v23 = vmax.f32 %v10386_v27, %v3774_v37  ;;  %v3962_v27 = vld [vmem:[%s11841_s5 + $0x108] sm:$0xff] }
 0x532   :  { %v3729_v17 = vpop.permute.xlu1 %3728  ;;  %v6951_v0 = vpack.c.bf16 %v3962_v27, %v3961_v58  ;;  %v3987_v58 = vld [vmem:[%s11841_s5 + $0x1d0] sm:$0xff]  ;;  %v3988_v27 = vld [vmem:[%s11841_s5 + $0x1d8] sm:$0xff] }
 0x533   :  { %3870 = vst [vmem:[#allocation5 + $0xa0] sm:$0xff] %v3838_v23  ;;  %v3775_v56 = vsel %vm190_vm0, %v3727_v20, %v3729_v17  ;;  %v3731_v49 = vpop.permute.xlu0 %3730  ;;  %v3986_v20 = vld [vmem:[%s11841_s5 + $0x1c8] sm:$0xff]  ;;  %v6963_v23 = vpack.c.bf16 %v3968_v59, %v3967_v28 }
 0x534   :  { %v3839_v31 = vmax.f32 %v10389_v22, %v3775_v56  ;;  %v3776_v44 = vsel %vm190_vm0, %v3729_v17, %v3731_v49  ;;  %v3980_v22 = vld [vmem:[%s11841_s5 + $0x198] sm:$0xff]  ;;  %v6965_v56 = vpack.c.bf16 %v3986_v20, %v3985_v62  ;;  %v4014_v62 = vld [vmem:[%s11841_s5 + $0x2a8] sm:$0xff] }
 0x535   :  { %v3840_v57 = vmax.f32 %v10536_v21, %v3776_v44  ;;  %v3924_v11 = vld [vmem:[#allocation6] sm:$0xff]  ;;  %v6953_v63 = vpack.c.bf16 %v3980_v22, %v3979_v12  ;;  %v10885_v19 = vld [vmem:[#allocation6 + $0x8] sm:$0xff] }
 0x536   :  { %v3893_v32 = vld [vmem:[#allocation5 + $0x20] ss:$8 sm:$0xf]  ;;  %v3897_v48 = vld [vmem:[#allocation5 + $0x24] ss:$8 sm:$0xf]  ;;  %v3733_v52 = vpop.permute.xlu1 %3732  ;;  %v4268_v46 = vrot.slane %v3924_v11, %v10749_v45  ;;  %v4261_v8 = vcombine.high %v3924_v11, %v3924_v11 }
 0x537   :  { %3871 = vst [vmem:[#allocation5 + $0xa8] sm:$0xff] %v3839_v31  ;;  %3895 = vst.msk [vmem:[#allocation6 + $0x10] ss:$2 sm:$0xf] %vm10720_vm11, %v3893_v32  ;;  %v3777_v21 = vsel %vm190_vm0, %v3731_v49, %v3733_v52  ;;  %v3695_v47 = vpop.permute.xlu0 %3694  ;;  %v3969_v49 = vld [vmem:[%s11841_s5 + $0x140] sm:$0xff]  ;;  %v3970_v31 = vld [vmem:[%s11841_s5 + $0x148] sm:$0xff] }
 0x538   :  { %3899 = vst.msk [vmem:[#allocation6 + $0x18] ss:$2 sm:$0xf] %vm10720_vm11, %v3897_v48  ;;  %3872 = vst [vmem:[#allocation5 + $0xb0] sm:$0xff] %v3840_v57  ;;  %v3841_v15 = vmax.f32 %v10548_v34, %v3777_v21  ;;  %v4276_v24 = vcombine.high %v4268_v46, %v4268_v46  ;;  %v10775_v3 = vrot.slane %v4261_v8, %v10749_v45  ;;  %v3971_v52 = vld [vmem:[%s11841_s5 + $0x150] sm:$0xff] }
 0x539   :  { %v6967_v22 = vpack.c.bf16 %v3970_v31, %v3969_v49  ;;  %v6969_v48 = vpack.c.bf16 %v3988_v27, %v3987_v58  ;;  %v4015_v49 = vld [vmem:[%s11841_s5 + $0x2b0] sm:$0xff]  ;;  %v4000_v27 = vld [vmem:[%s11841_s5 + $0x238] sm:$0xff] }
 0x53a   :  { %3873 = vst [vmem:[#allocation5 + $0xb8] sm:$0xff] %v3841_v15  ;;  %v3697_v51 = vpop.permute.xlu1 %3696  ;;  %4430 = vmatprep.mubr.f32.mxu0 %v4276_v24  ;;  %v4277_v34 = vcombine.high %v10775_v3, %v10775_v3  ;;  %v3999_v58 = vld [vmem:[%s11841_s5 + $0x230] sm:$0xff] }
 0x53b   :  { %v3762_v13 = vsel %vm190_vm0, %v3695_v47, %v3697_v51  ;;  %4431 = vmatmul.mubr.f32.vlgmr.msra.gmra.mrb[16].mxu0 %v4268_v46  ;;  %v3699_v61 = vpop.permute.xlu0 %3698  ;;  %v3972_v46 = vld [vmem:[%s11841_s5 + $0x158] sm:$0xff] }
 0x53c   :  { %v3826_v30 = vmax.f32 %v10352_v33, %v3762_v13  ;;  %6952 = vmatpush3.bf16.msra.mxu0 %v6951_v0  ;;  %v3763_v42 = vsel %vm190_vm0, %v3697_v51, %v3699_v61  ;;  %4500 = vmatprep.mubr.f32.mxu0 %v4277_v34  ;;  %v3983_v33 = vld [vmem:[%s11841_s5 + $0x1b0] sm:$0xff]  ;;  %v6971_v0 = vpack.c.bf16 %v3972_v46, %v3971_v52  ;;  %v4020_v52 = vld [vmem:[%s11841_s5 + $0x2d8] sm:$0xff] }
 0x53d   :  { %v3827_v5 = vmax.f32 %v10356_v7, %v3763_v42  ;;  %6954 = vmatprep.subr.bf16.mxu0 %v6953_v63  ;;  %v3984_v7 = vld [vmem:[%s11841_s5 + $0x1b8] sm:$0xff]  ;;  %v3991_v34 = vld [vmem:[%s11841_s5 + $0x1f0] sm:$0xff] }
 0x53e   :  { %3858 = vst [vmem:[#allocation5 + $0x40] sm:$0xff] %v3826_v30  ;;  %v3701_v16 = vpop.permute.xlu1 %3700  ;;  %v6961_v53 = vpack.c.bf16 %v3984_v7, %v3983_v33  ;;  %v3976_v30 = vld [vmem:[%s11841_s5 + $0x178] sm:$0xff]  ;;  %v3993_v7 = vld [vmem:[%s11841_s5 + $0x200] sm:$0xff] }
 0x53f   :  { %3859 = vst [vmem:[#allocation5 + $0x48] sm:$0xff] %v3827_v5  ;;  %v3764_v35 = vsel %vm190_vm0, %v3699_v61, %v3701_v16  ;;  %v3703_v29 = vpop.permute.xlu0 %3702  ;;  %v3975_v61 = vld [vmem:[%s11841_s5 + $0x170] sm:$0xff]  ;;  %v4010_v5 = vld [vmem:[%s11841_s5 + $0x288] sm:$0xff] }
 0x540   :  { %v3828_v40 = vmax.f32 %v10473_v25, %v3764_v35  ;;  %6956 = vmatpush3.bf16.msra.mxu0 %v6955_v36  ;;  %v3765_v18 = vsel %vm190_vm0, %v3701_v16, %v3703_v29  ;;  %v4009_v36 = vld [vmem:[%s11841_s5 + $0x280] sm:$0xff]  ;;  %v6979_v38 = vpack.c.bf16 %v3976_v30, %v3975_v61  ;;  %v3994_v35 = vld [vmem:[%s11841_s5 + $0x208] sm:$0xff]  ;;  %v4278_v61 = vcombine.high %v10885_v19, %v10885_v19 }
 0x541   :  { %v3913_v41 = vld [vmem:[#allocation5 + $0xa0] ss:$8 sm:$0xf]  ;;  %v3917_v1 = vld [vmem:[#allocation5 + $0xa4] ss:$8 sm:$0xf]  ;;  %v3829_v55 = vmax.f32 %v10483_v26, %v3765_v18  ;;  %6958 = vmatprep.subr.bf16.mxu0 %v6957_v9  ;;  %v6981_v33 = vpack.c.bf16 %v4010_v5, %v4009_v36  ;;  %v6983_v59 = vpack.c.bf16 %v3994_v35, %v3993_v7 }
 0x542   :  { %3915 = vst.msk [vmem:[#allocation6 + $0x11] ss:$2 sm:$0xf] %vm10720_vm11, %v3913_v41  ;;  %3919 = vst.msk [vmem:[#allocation6 + $0x19] ss:$2 sm:$0xf] %vm10720_vm11, %v3917_v1  ;;  %v3735_v25 = vpop.permute.xlu1 %3734 }
 0x543   :  { %3860 = vst [vmem:[#allocation5 + $0x50] sm:$0xff] %v3828_v40  ;;  %3861 = vst [vmem:[#allocation5 + $0x58] sm:$0xff] %v3829_v55  ;;  %v3737_v26 = vpop.permute.xlu0 %3736  ;;  %v10897_v40 = vrot.slane %v10885_v19, %v10749_v45  ;;  %v4011_v18 = vld [vmem:[%s11841_s5 + $0x290] sm:$0xff]  ;;  %v3996_v1 = vld [vmem:[%s11841_s5 + $0x218] sm:$0xff] }
 0x544   :  { %6960 = vmatpush3.bf16.msra.mxu0 %v6959_v4  ;;  %v3778_v37 = vsel %vm190_vm0, %v3735_v25, %v3737_v26  ;;  %v4012_v4 = vld [vmem:[%s11841_s5 + $0x298] sm:$0xff]  ;;  %v4013_v25 = vld [vmem:[%s11841_s5 + $0x2a0] sm:$0xff]  ;;  %v4026_v5 = vld [vmem:[%s11841_s5 + $0x308] sm:$0xff] }
 0x545   :  { %v3842_v17 = vmax.f32 %v10401_v2, %v3778_v37  ;;  %6962 = vmatprep.subr.bf16.mxu0 %v6961_v53  ;;  %v6985_v41 = vpack.c.bf16 %v4012_v4, %v4011_v18  ;;  %v4293_v53 = vcombine.high %v10897_v40, %v10897_v40  ;;  %v6989_v37 = vpack.c.bf16 %v4014_v62, %v4013_v25  ;;  %v4025_v36 = vld [vmem:[%s11841_s5 + $0x300] sm:$0xff]  ;;  %v4044_v19 = vld [vmem:[%s11841_s5 + $0x398] sm:$0xff]  ;;  %v4027_v7 = vld [vmem:[%s11841_s5 + $0x310] sm:$0xff] }
 0x546   :  { %v3739_v44 = vpop.permute.xlu1 %3738  ;;  %v4028_v35 = vld [vmem:[%s11841_s5 + $0x318] sm:$0xff]  ;;  %v4045_v18 = vld [vmem:[%s11841_s5 + $0x3a0] sm:$0xff]  ;;  %v4046_v4 = vld [vmem:[%s11841_s5 + $0x3a8] sm:$0xff] }
 0x547   :  { %3874 = vst [vmem:[#allocation5 + $0xc0] sm:$0xff] %v3842_v17  ;;  %v3779_v2 = vsel %vm190_vm0, %v3737_v26, %v3739_v44  ;;  %v3741_v57 = vpop.permute.xlu0 %3740  ;;  %v6987_v26 = vpack.c.bf16 %v3996_v1, %v3995_v50  ;;  %v3998_v17 = vld [vmem:[%s11841_s5 + $0x228] sm:$0xff]  ;;  %v4047_v1 = vld [vmem:[%s11841_s5 + $0x3b0] sm:$0xff]  ;;  %v4032_v62 = vld [vmem:[%s11841_s5 + $0x338] sm:$0xff] }
 0x548   :  { %v3843_v11 = vmax.f32 %v10405_v39, %v3779_v2  ;;  %6964 = vmatpush3.bf16.msra.mxu0 %v6963_v23  ;;  %v3780_v12 = vsel %vm190_vm0, %v3739_v44, %v3741_v57  ;;  %v3989_v39 = vld [vmem:[%s11841_s5 + $0x1e0] sm:$0xff]  ;;  %v4030_v50 = vld [vmem:[%s11841_s5 + $0x328] sm:$0xff]  ;;  %v4031_v25 = vld [vmem:[%s11841_s5 + $0x330] sm:$0xff] }
 0x549   :  { %v3844_v32 = vmax.f32 %v10583_v14, %v3780_v12  ;;  %6966 = vmatprep.subr.bf16.mxu0 %v6965_v56  ;;  %v3990_v14 = vld [vmem:[%s11841_s5 + $0x1e8] sm:$0xff]  ;;  %v3997_v23 = vld [vmem:[%s11841_s5 + $0x220] sm:$0xff] }
 0x54a   :  { %v3901_v8 = vld [vmem:[#allocation5 + $0x40] ss:$8 sm:$0xf]  ;;  %3875 = vst [vmem:[#allocation5 + $0xc8] sm:$0xff] %v3843_v11  ;;  %v3743_v21 = vpop.permute.xlu1 %3742  ;;  %v6973_v63 = vpack.c.bf16 %v3990_v14, %v3989_v39  ;;  %v6991_v31 = vpack.c.bf16 %v3998_v17, %v3997_v23  ;;  %v6995_v11 = vpack.c.bf16 %v4000_v27, %v3999_v58 }
 0x54b   :  { %3903 = vst.msk [vmem:[#allocation6 + $0x20] ss:$2 sm:$0xf] %vm10720_vm11, %v3901_v8  ;;  %3876 = vst [vmem:[#allocation5 + $0xd0] sm:$0xff] %v3844_v32  ;;  %v3781_v47 = vsel %vm190_vm0, %v3741_v57, %v3743_v21  ;;  %v3705_v15 = vpop.permute.xlu0 %3704  ;;  %v4017_v2 = vld [vmem:[%s11841_s5 + $0x2c0] sm:$0xff]  ;;  %v4018_v57 = vld [vmem:[%s11841_s5 + $0x2c8] sm:$0xff] }
 0x54c   :  { %v3845_v24 = vmax.f32 %v10587_v60, %v3781_v47  ;;  %6968 = vmatpush3.bf16.msra.mxu0 %v6967_v22  ;;  %v3992_v60 = vld [vmem:[%s11841_s5 + $0x1f8] sm:$0xff]  ;;  %v6997_v12 = vpack.c.bf16 %v4018_v57, %v4017_v2  ;;  %v4001_v22 = vld [vmem:[%s11841_s5 + $0x240] sm:$0xff]  ;;  %v4002_v32 = vld [vmem:[%s11841_s5 + $0x248] sm:$0xff] }
 0x54d   :  { %6970 = vmatprep.subr.bf16.mxu0 %v6969_v48  ;;  %v6977_v13 = vpack.c.bf16 %v3992_v60, %v3991_v34  ;;  %v4019_v48 = vld [vmem:[%s11841_s5 + $0x2d0] sm:$0xff]  ;;  %v6999_v46 = vpack.c.bf16 %v4002_v32, %v4001_v22  ;;  %v4004_v39 = vld [vmem:[%s11841_s5 + $0x258] sm:$0xff]  ;;  %v4021_v14 = vld [vmem:[%s11841_s5 + $0x2e0] sm:$0xff]  ;;  %v7009_v34 = vpack.c.bf16 %v4024_v6, %v4023_v54 }
 0x54e   :  { %3877 = vst [vmem:[#allocation5 + $0xd8] sm:$0xff] %v3845_v24  ;;  %v3707_v51 = vpop.permute.xlu1 %3706  ;;  %v7001_v8 = vpack.c.bf16 %v4020_v52, %v4019_v48  ;;  %v4003_v21 = vld [vmem:[%s11841_s5 + $0x250] sm:$0xff]  ;;  %v4022_v47 = vld [vmem:[%s11841_s5 + $0x2e8] sm:$0xff]  ;;  %v4033_v17 = vld [vmem:[%s11841_s5 + $0x340] sm:$0xff] }
 0x54f   :  { %v3709_v43 = vpop.permute.xlu0 %3708  ;;  %v7003_v15 = vpack.c.bf16 %v4004_v39, %v4003_v21  ;;  %v7005_v24 = vpack.c.bf16 %v4022_v47, %v4021_v14  ;;  %v4007_v60 = vld [vmem:[%s11841_s5 + $0x270] sm:$0xff]  ;;  %v4036_v27 = vld [vmem:[%s11841_s5 + $0x358] sm:$0xff]  ;;  %v4053_v2 = vld [vmem:[%s11841_s5 + $0x3e0] sm:$0xff] }
 0x550   :  { %6972 = vmatpush3.bf16.msra.mxu0 %v6971_v0  ;;  %v4005_v0 = vld [vmem:[%s11841_s5 + $0x260] sm:$0xff]  ;;  %v4008_v43 = vld [vmem:[%s11841_s5 + $0x278] sm:$0xff]  ;;  %v4035_v58 = vld [vmem:[%s11841_s5 + $0x350] sm:$0xff] }
 0x551   :  { %6974 = vmatprep.subr.bf16.mxu0 %v6973_v63  ;;  %v4006_v63 = vld [vmem:[%s11841_s5 + $0x268] sm:$0xff]  ;;  %v7011_v30 = vpack.c.bf16 %v4008_v43, %v4007_v60  ;;  %v4037_v22 = vld [vmem:[%s11841_s5 + $0x360] sm:$0xff]  ;;  %v4055_v48 = vld [vmem:[%s11841_s5 + $0x3f0] sm:$0xff] }
 0x552   :  { %v3711_v42 = vpop.permute.xlu1 %3710  ;;  %v7007_v51 = vpack.c.bf16 %v4006_v63, %v4005_v0  ;;  %v4054_v57 = vld [vmem:[%s11841_s5 + $0x3e8] sm:$0xff]  ;;  %v4056_v52 = vld [vmem:[%s11841_s5 + $0x3f8] sm:$0xff]  ;;  %v4039_v21 = vld [vmem:[%s11841_s5 + $0x370] sm:$0xff] }
 0x553   :  { %v3713_v9 = vpop.permute.xlu0 %3712  ;;  %v4038_v32 = vld [vmem:[%s11841_s5 + $0x368] sm:$0xff]  ;;  %v4040_v39 = vld [vmem:[%s11841_s5 + $0x378] sm:$0xff]  ;;  %v4073_v14 = vld [vmem:[%s11841_s5 + $0x480] sm:$0xff] }
 0x554   :  { %6976 = vmatpush3.bf16.msra.mxu0 %v6975_v10  ;;  %v4041_v10 = vld [vmem:[%s11841_s5 + $0x380] sm:$0xff]  ;;  %v11001_v9 = vrot.slane %v4278_v61, %v10749_v45  ;;  %v4074_v47 = vld [vmem:[%s11841_s5 + $0x488] sm:$0xff] }
 0x555   :  { %v3921_v16 = vld [vmem:[#allocation5 + $0xc0] ss:$8 sm:$0xf]  ;;  %6978 = vmatprep.subr.bf16.mxu0 %v6977_v13  ;;  %v7045_v0 = vpack.c.bf16 %v4074_v47, %v4073_v14 }
 0x556   :  { %3923 = vst.msk [vmem:[#allocation6 + $0x21] ss:$2 sm:$0xf] %vm10720_vm11, %v3921_v16  ;;  %v3745_v29 = vpop.permute.xlu1 %3744  ;;  %v4042_v13 = vld [vmem:[%s11841_s5 + $0x388] sm:$0xff]  ;;  %v7015_v16 = vpack.c.bf16 %v4026_v5, %v4025_v36  ;;  %v4057_v63 = vld [vmem:[%s11841_s5 + $0x400] sm:$0xff]  ;;  %v4091_v14 = vld [vmem:[%s11841_s5 + $0x510] sm:$0xff] }
 0x557   :  { %v3747_v28 = vpop.permute.xlu0 %3746  ;;  %v7013_v42 = vpack.c.bf16 %v4042_v13, %v4041_v10  ;;  %v4294_v29 = vcombine.high %v11001_v9, %v11001_v9  ;;  %v4058_v54 = vld [vmem:[%s11841_s5 + $0x408] sm:$0xff]  ;;  %v4059_v10 = vld [vmem:[%s11841_s5 + $0x410] sm:$0xff]  ;;  %v4060_v13 = vld [vmem:[%s11841_s5 + $0x418] sm:$0xff] }
 0x558   :  { %6980 = vmatpush3.bf16.msra.mxu0 %v6979_v38  ;;  %v4043_v38 = vld [vmem:[%s11841_s5 + $0x390] sm:$0xff]  ;;  %v7019_v28 = vpack.c.bf16 %v4028_v35, %v4027_v7  ;;  %v7047_v60 = vpack.c.bf16 %v4058_v54, %v4057_v63  ;;  %v7051_v36 = vpack.c.bf16 %v4060_v13, %v4059_v10  ;;  %v4092_v47 = vld [vmem:[%s11841_s5 + $0x518] sm:$0xff] }
 0x559   :  { %6982 = vmatprep.subr.bf16.mxu0 %v6981_v33  ;;  %v7017_v33 = vpack.c.bf16 %v4044_v19, %v4043_v38  ;;  %v4061_v38 = vld [vmem:[%s11841_s5 + $0x420] sm:$0xff]  ;;  %v4062_v19 = vld [vmem:[%s11841_s5 + $0x428] sm:$0xff]  ;;  %v4063_v35 = vld [vmem:[%s11841_s5 + $0x430] sm:$0xff]  ;;  %v7083_v63 = vpack.c.bf16 %v4092_v47, %v4091_v14 }
 0x55a   :  { %v3749_v55 = vpop.permute.xlu1 %3748  ;;  %v4095_v13 = vld [vmem:[%s11841_s5 + $0x530] sm:$0xff] }
 0x55b   :  { %4501 = vmatmul.mubr.f32.vlgmr.msra.gmra.mrb[18].mxu0 %v10775_v3  ;;  %v3751_v20 = vpop.permute.xlu0 %3750  ;;  %v4016_v3 = vld [vmem:[%s11841_s5 + $0x2b8] sm:$0xff]  ;;  %v4127_v47 = vld [vmem:[%s11841_s5 + $0x630] sm:$0xff] }
 0x55c   :  { %6984 = vmatpush3.bf16.msra.mxu0 %v6983_v59  ;;  %4570 = vmatprep.mubr.f32.mxu0 %v4293_v53  ;;  %v6993_v44 = vpack.c.bf16 %v4016_v3, %v4015_v49  ;;  %v7021_v59 = vpack.c.bf16 %v4046_v4, %v4045_v18  ;;  %v4049_v20 = vld [vmem:[%s11841_s5 + $0x3c0] sm:$0xff]  ;;  %v4051_v49 = vld [vmem:[%s11841_s5 + $0x3d0] sm:$0xff]  ;;  %v4052_v3 = vld [vmem:[%s11841_s5 + $0x3d8] sm:$0xff] }
 0x55d   :  { %6986 = vmatprep.subr.bf16.mxu0 %v6985_v41  ;;  %v4029_v41 = vld [vmem:[%s11841_s5 + $0x320] sm:$0xff]  ;;  %v4082_v4 = vld [vmem:[%s11841_s5 + $0x4c8] sm:$0xff] }
 0x55e   :  { %v3753_v56 = vpop.permute.xlu1 %3752  ;;  %v7023_v55 = vpack.c.bf16 %v4030_v50, %v4029_v41  ;;  %v4081_v18 = vld [vmem:[%s11841_s5 + $0x4c0] sm:$0xff]  ;;  %v4066_v50 = vld [vmem:[%s11841_s5 + $0x448] sm:$0xff] }
 0x55f   :  { %v4034_v56 = vld [vmem:[%s11841_s5 + $0x348] sm:$0xff]  ;;  %v4065_v41 = vld [vmem:[%s11841_s5 + $0x440] sm:$0xff] }
 0x560   :  { %6988 = vmatpush3.bf16.msra.mxu0 %v6987_v26  ;;  %v4050_v26 = vld [vmem:[%s11841_s5 + $0x3c8] sm:$0xff] }
 0x561   :  { %6990 = vmatprep.subr.bf16.mxu0 %v6989_v37  ;;  %v7027_v37 = vpack.c.bf16 %v4032_v62, %v4031_v25  ;;  %v7029_v23 = vpack.c.bf16 %v4050_v26, %v4049_v20  ;;  %v4067_v25 = vld [vmem:[%s11841_s5 + $0x450] sm:$0xff]  ;;  %v4068_v62 = vld [vmem:[%s11841_s5 + $0x458] sm:$0xff]  ;;  %v4085_v20 = vld [vmem:[%s11841_s5 + $0x4e0] sm:$0xff] }
 0x562   :  { %v4086_v26 = vld [vmem:[%s11841_s5 + $0x4e8] sm:$0xff] }
 0x564   :  { %6992 = vmatpush3.bf16.msra.mxu0 %v6991_v31  ;;  %v7031_v31 = vpack.c.bf16 %v4034_v56, %v4033_v17  ;;  %v4069_v17 = vld [vmem:[%s11841_s5 + $0x460] sm:$0xff]  ;;  %v4070_v56 = vld [vmem:[%s11841_s5 + $0x468] sm:$0xff] }
 0x565   :  { %6994 = vmatprep.subr.bf16.mxu0 %v6993_v44  ;;  %v7033_v44 = vpack.c.bf16 %v4052_v3, %v4051_v49  ;;  %v4087_v49 = vld [vmem:[%s11841_s5 + $0x4f0] sm:$0xff]  ;;  %v4088_v3 = vld [vmem:[%s11841_s5 + $0x4f8] sm:$0xff] }
 0x568   :  { %6996 = vmatpush3.bf16.msra.mxu0 %v6995_v11  ;;  %v7035_v11 = vpack.c.bf16 %v4036_v27, %v4035_v58  ;;  %v4071_v58 = vld [vmem:[%s11841_s5 + $0x470] sm:$0xff]  ;;  %v4072_v27 = vld [vmem:[%s11841_s5 + $0x478] sm:$0xff] }
 0x569   :  { %6998 = vmatprep.subr.bf16.mxu0 %v6997_v12  ;;  %v7037_v12 = vpack.c.bf16 %v4054_v57, %v4053_v2  ;;  %v4105_v2 = vld [vmem:[%s11841_s5 + $0x580] sm:$0xff]  ;;  %v4106_v57 = vld [vmem:[%s11841_s5 + $0x588] sm:$0xff] }
 0x56c   :  { %7000 = vmatpush3.bf16.msra.mxu0 %v6999_v46  ;;  %v7039_v46 = vpack.c.bf16 %v4038_v32, %v4037_v22  ;;  %v7077_v22 = vpack.c.bf16 %v4106_v57, %v4105_v2  ;;  %v4089_v32 = vld [vmem:[%s11841_s5 + $0x500] sm:$0xff]  ;;  %v4123_v2 = vld [vmem:[%s11841_s5 + $0x610] sm:$0xff]  ;;  %v4124_v57 = vld [vmem:[%s11841_s5 + $0x618] sm:$0xff] }
 0x56d   :  { %7002 = vmatprep.subr.bf16.mxu0 %v7001_v8  ;;  %v7041_v8 = vpack.c.bf16 %v4056_v52, %v4055_v48  ;;  %v4090_v48 = vld [vmem:[%s11841_s5 + $0x508] sm:$0xff] }
 0x570   :  { %7004 = vmatpush3.bf16.msra.mxu0 %v7003_v15  ;;  %v11096_v15 = vld [vmem:[#allocation6 + $0x10] sm:$0xff] }
 0x571   :  { %7006 = vmatprep.subr.bf16.mxu0 %v7005_v24  ;;  %v7043_v24 = vpack.c.bf16 %v4040_v39, %v4039_v21  ;;  %v11106_v6 = vrot.slane %v11096_v15, %v10749_v45  ;;  %v7079_v21 = vpack.c.bf16 %v4090_v48, %v4089_v32  ;;  %v7115_v32 = vpack.c.bf16 %v4124_v57, %v4123_v2  ;;  %v4159_v57 = vld [vmem:[%s11841_s5 + $0x730] sm:$0xff] }
 0x573   :  { %v4310_v61 = vcombine.high %v11106_v6, %v11106_v6 }
 0x574   :  { %7008 = vmatpush3.bf16.msra.mxu0 %v7007_v51  ;;  %v4075_v51 = vld [vmem:[%s11841_s5 + $0x490] sm:$0xff] }
 0x575   :  { %7010 = vmatprep.subr.bf16.mxu0 %v7009_v34  ;;  %v4076_v34 = vld [vmem:[%s11841_s5 + $0x498] sm:$0xff] }
 0x576   :  { %v7049_v43 = vpack.c.bf16 %v4076_v34, %v4075_v51  ;;  %v4093_v51 = vld [vmem:[%s11841_s5 + $0x520] sm:$0xff]  ;;  %v4094_v34 = vld [vmem:[%s11841_s5 + $0x528] sm:$0xff] }
 0x578   :  { %7012 = vmatpush3.bf16.msra.mxu0 %v7011_v30  ;;  %v4077_v30 = vld [vmem:[%s11841_s5 + $0x4a0] sm:$0xff] }
 0x579   :  { %7014 = vmatprep.subr.bf16.mxu0 %v7013_v42  ;;  %v4078_v42 = vld [vmem:[%s11841_s5 + $0x4a8] sm:$0xff] }
 0x57a   :  { %v7053_v5 = vpack.c.bf16 %v4078_v42, %v4077_v30  ;;  %v4113_v30 = vld [vmem:[%s11841_s5 + $0x5c0] sm:$0xff]  ;;  %v4114_v42 = vld [vmem:[%s11841_s5 + $0x5c8] sm:$0xff] }
 0x57b   :  { %4571 = vmatmul.mubr.f32.vlgmr.msra.gmra.mrb[20].mxu0 %v10897_v40  ;;  %v4048_v40 = vld [vmem:[%s11841_s5 + $0x3b8] sm:$0xff] }
 0x57c   :  { %7016 = vmatpush3.bf16.msra.mxu0 %v7015_v16  ;;  %4640 = vmatprep.mubr.f32.mxu0 %v4294_v29  ;;  %v7025_v53 = vpack.c.bf16 %v4048_v40, %v4047_v1  ;;  %v4079_v16 = vld [vmem:[%s11841_s5 + $0x4b0] sm:$0xff]  ;;  %v4064_v29 = vld [vmem:[%s11841_s5 + $0x438] sm:$0xff] }
 0x57d   :  { %7018 = vmatprep.subr.bf16.mxu0 %v7017_v33  ;;  %v7055_v33 = vpack.c.bf16 %v4062_v19, %v4061_v38  ;;  %v4083_v1 = vld [vmem:[%s11841_s5 + $0x4d0] sm:$0xff]  ;;  %v4084_v40 = vld [vmem:[%s11841_s5 + $0x4d8] sm:$0xff]  ;;  %v4097_v38 = vld [vmem:[%s11841_s5 + $0x540] sm:$0xff] }
 0x57e   :  { %v4098_v19 = vld [vmem:[%s11841_s5 + $0x548] sm:$0xff] }
 0x580   :  { %7020 = vmatpush3.bf16.msra.mxu0 %v7019_v28  ;;  %v7059_v28 = vpack.c.bf16 %v4064_v29, %v4063_v35  ;;  %v4099_v35 = vld [vmem:[%s11841_s5 + $0x550] sm:$0xff]  ;;  %v4100_v29 = vld [vmem:[%s11841_s5 + $0x558] sm:$0xff] }
 0x581   :  { %7022 = vmatprep.subr.bf16.mxu0 %v7021_v59  ;;  %v7061_v59 = vpack.c.bf16 %v4082_v4, %v4081_v18  ;;  %v4117_v18 = vld [vmem:[%s11841_s5 + $0x5e0] sm:$0xff]  ;;  %v4118_v4 = vld [vmem:[%s11841_s5 + $0x5e8] sm:$0xff] }
 0x584   :  { %7024 = vmatpush3.bf16.msra.mxu0 %v7023_v55  ;;  %v7063_v55 = vpack.c.bf16 %v4066_v50, %v4065_v41  ;;  %v4101_v41 = vld [vmem:[%s11841_s5 + $0x560] sm:$0xff]  ;;  %v4102_v50 = vld [vmem:[%s11841_s5 + $0x568] sm:$0xff] }
 0x585   :  { %7026 = vmatprep.subr.bf16.mxu0 %v7025_v53  ;;  %v7065_v53 = vpack.c.bf16 %v4084_v40, %v4083_v1  ;;  %v4119_v1 = vld [vmem:[%s11841_s5 + $0x5f0] sm:$0xff]  ;;  %v4120_v40 = vld [vmem:[%s11841_s5 + $0x5f8] sm:$0xff] }
 0x588   :  { %7028 = vmatpush3.bf16.msra.mxu0 %v7027_v37  ;;  %v7067_v37 = vpack.c.bf16 %v4068_v62, %v4067_v25  ;;  %v4103_v25 = vld [vmem:[%s11841_s5 + $0x570] sm:$0xff]  ;;  %v4104_v62 = vld [vmem:[%s11841_s5 + $0x578] sm:$0xff] }
 0x589   :  { %7030 = vmatprep.subr.bf16.mxu0 %v7029_v23  ;;  %v7069_v23 = vpack.c.bf16 %v4086_v26, %v4085_v20  ;;  %v4137_v20 = vld [vmem:[%s11841_s5 + $0x680] sm:$0xff]  ;;  %v4138_v26 = vld [vmem:[%s11841_s5 + $0x688] sm:$0xff] }
 0x58c   :  { %7032 = vmatpush3.bf16.msra.mxu0 %v7031_v31  ;;  %v7071_v31 = vpack.c.bf16 %v4070_v56, %v4069_v17  ;;  %v7109_v17 = vpack.c.bf16 %v4138_v26, %v4137_v20  ;;  %v4121_v56 = vld [vmem:[%s11841_s5 + $0x600] sm:$0xff]  ;;  %v4155_v20 = vld [vmem:[%s11841_s5 + $0x710] sm:$0xff]  ;;  %v4156_v26 = vld [vmem:[%s11841_s5 + $0x718] sm:$0xff] }
 0x58d   :  { %7034 = vmatprep.subr.bf16.mxu0 %v7033_v44  ;;  %v7073_v44 = vpack.c.bf16 %v4088_v3, %v4087_v49  ;;  %v4122_v49 = vld [vmem:[%s11841_s5 + $0x608] sm:$0xff] }
 0x590   :  { %7036 = vmatpush3.bf16.msra.mxu0 %v7035_v11  ;;  %v4295_v11 = vcombine.high %v11096_v15, %v11096_v15 }
 0x591   :  { %7038 = vmatprep.subr.bf16.mxu0 %v7037_v12  ;;  %v7075_v12 = vpack.c.bf16 %v4072_v27, %v4071_v58  ;;  %v7111_v58 = vpack.c.bf16 %v4122_v49, %v4121_v56  ;;  %v7147_v56 = vpack.c.bf16 %v4156_v26, %v4155_v20  ;;  %v4190_v20 = vld [vmem:[%s11841_s5 + $0x828] sm:$0xff]  ;;  %v4207_v26 = vld [vmem:[%s11841_s5 + $0x8b0] sm:$0xff] }
 0x592   :  { %v11210_v52 = vrot.slane %v4295_v11, %v10749_v45 }
 0x594   :  { %7040 = vmatpush3.bf16.msra.mxu0 %v7039_v46  ;;  %v4107_v46 = vld [vmem:[%s11841_s5 + $0x590] sm:$0xff]  ;;  %v4311_v15 = vcombine.high %v11210_v52, %v11210_v52 }
 0x595   :  { %7042 = vmatprep.subr.bf16.mxu0 %v7041_v8  ;;  %v4108_v8 = vld [vmem:[%s11841_s5 + $0x598] sm:$0xff] }
 0x596   :  { %v7081_v39 = vpack.c.bf16 %v4108_v8, %v4107_v46  ;;  %v4125_v46 = vld [vmem:[%s11841_s5 + $0x620] sm:$0xff]  ;;  %v4126_v8 = vld [vmem:[%s11841_s5 + $0x628] sm:$0xff] }
 0x598   :  { %7044 = vmatpush3.bf16.msra.mxu0 %v7043_v24  ;;  %v4109_v24 = vld [vmem:[%s11841_s5 + $0x5a0] sm:$0xff] }
 0x599   :  { %7046 = vmatprep.subr.bf16.mxu0 %v7045_v0  ;;  %v4110_v0 = vld [vmem:[%s11841_s5 + $0x5a8] sm:$0xff] }
 0x59a   :  { %v7085_v54 = vpack.c.bf16 %v4110_v0, %v4109_v24  ;;  %v4145_v24 = vld [vmem:[%s11841_s5 + $0x6c0] sm:$0xff]  ;;  %v4146_v0 = vld [vmem:[%s11841_s5 + $0x6c8] sm:$0xff] }
 0x59b   :  { %4641 = vmatmul.mubr.f32.vlgmr.msra.gmra.mrb[22].mxu0 %v11001_v9  ;;  %v4080_v9 = vld [vmem:[%s11841_s5 + $0x4b8] sm:$0xff] }
 0x59c   :  { %7048 = vmatpush3.bf16.msra.mxu0 %v7047_v60  ;;  %4710 = vmatprep.mubr.f32.mxu0 %v4310_v61  ;;  %v7057_v7 = vpack.c.bf16 %v4080_v9, %v4079_v16  ;;  %v4111_v60 = vld [vmem:[%s11841_s5 + $0x5b0] sm:$0xff]  ;;  %v4096_v61 = vld [vmem:[%s11841_s5 + $0x538] sm:$0xff] }
 0x59d   :  { %7050 = vmatprep.subr.bf16.mxu0 %v7049_v43  ;;  %v7087_v43 = vpack.c.bf16 %v4094_v34, %v4093_v51  ;;  %v4115_v16 = vld [vmem:[%s11841_s5 + $0x5d0] sm:$0xff]  ;;  %v4116_v9 = vld [vmem:[%s11841_s5 + $0x5d8] sm:$0xff]  ;;  %v4129_v51 = vld [vmem:[%s11841_s5 + $0x640] sm:$0xff] }
 0x59e   :  { %v4130_v34 = vld [vmem:[%s11841_s5 + $0x648] sm:$0xff] }
 0x5a0   :  { %7052 = vmatpush3.bf16.msra.mxu0 %v7051_v36  ;;  %v7091_v36 = vpack.c.bf16 %v4096_v61, %v4095_v13  ;;  %v4131_v13 = vld [vmem:[%s11841_s5 + $0x650] sm:$0xff]  ;;  %v4132_v61 = vld [vmem:[%s11841_s5 + $0x658] sm:$0xff] }
 0x5a1   :  { %7054 = vmatprep.subr.bf16.mxu0 %v7053_v5  ;;  %v7093_v5 = vpack.c.bf16 %v4114_v42, %v4113_v30  ;;  %v4149_v30 = vld [vmem:[%s11841_s5 + $0x6e0] sm:$0xff]  ;;  %v4150_v42 = vld [vmem:[%s11841_s5 + $0x6e8] sm:$0xff] }
 0x5a4   :  { %7056 = vmatpush3.bf16.msra.mxu0 %v7055_v33  ;;  %v7095_v33 = vpack.c.bf16 %v4098_v19, %v4097_v38  ;;  %v4133_v38 = vld [vmem:[%s11841_s5 + $0x660] sm:$0xff]  ;;  %v4134_v19 = vld [vmem:[%s11841_s5 + $0x668] sm:$0xff] }
 0x5a5   :  { %7058 = vmatprep.subr.bf16.mxu0 %v7057_v7  ;;  %v7097_v7 = vpack.c.bf16 %v4116_v9, %v4115_v16  ;;  %v4151_v16 = vld [vmem:[%s11841_s5 + $0x6f0] sm:$0xff]  ;;  %v4152_v9 = vld [vmem:[%s11841_s5 + $0x6f8] sm:$0xff] }
 0x5a8   :  { %7060 = vmatpush3.bf16.msra.mxu0 %v7059_v28  ;;  %v7099_v28 = vpack.c.bf16 %v4100_v29, %v4099_v35  ;;  %v4135_v35 = vld [vmem:[%s11841_s5 + $0x670] sm:$0xff]  ;;  %v4136_v29 = vld [vmem:[%s11841_s5 + $0x678] sm:$0xff] }
 0x5a9   :  { %7062 = vmatprep.subr.bf16.mxu0 %v7061_v59  ;;  %v7101_v59 = vpack.c.bf16 %v4118_v4, %v4117_v18  ;;  %v4169_v18 = vld [vmem:[%s11841_s5 + $0x780] sm:$0xff]  ;;  %v4170_v4 = vld [vmem:[%s11841_s5 + $0x788] sm:$0xff] }
 0x5ac   :  { %7064 = vmatpush3.bf16.msra.mxu0 %v7063_v55  ;;  %v7103_v55 = vpack.c.bf16 %v4102_v50, %v4101_v41  ;;  %v7141_v41 = vpack.c.bf16 %v4170_v4, %v4169_v18  ;;  %v4153_v50 = vld [vmem:[%s11841_s5 + $0x700] sm:$0xff]  ;;  %v4204_v18 = vld [vmem:[%s11841_s5 + $0x898] sm:$0xff] }
 0x5ad   :  { %7066 = vmatprep.subr.bf16.mxu0 %v7065_v53  ;;  %v7105_v53 = vpack.c.bf16 %v4120_v40, %v4119_v1  ;;  %v4154_v1 = vld [vmem:[%s11841_s5 + $0x708] sm:$0xff] }
 0x5b0   :  { %7068 = vmatpush3.bf16.msra.mxu0 %v7067_v37  ;;  %v11305_v37 = vld [vmem:[#allocation6 + $0x18] sm:$0xff] }
 0x5b1   :  { %7070 = vmatprep.subr.bf16.mxu0 %v7069_v23  ;;  %v7107_v23 = vpack.c.bf16 %v4104_v62, %v4103_v25  ;;  %v11315_v3 = vrot.slane %v11305_v37, %v10749_v45  ;;  %v7143_v25 = vpack.c.bf16 %v4154_v1, %v4153_v50  ;;  %v4205_v1 = vld [vmem:[%s11841_s5 + $0x8a0] sm:$0xff] }
 0x5b3   :  { %v4327_v11 = vcombine.high %v11315_v3, %v11315_v3 }
 0x5b4   :  { %7072 = vmatpush3.bf16.msra.mxu0 %v7071_v31  ;;  %v4139_v31 = vld [vmem:[%s11841_s5 + $0x690] sm:$0xff] }
 0x5b5   :  { %7074 = vmatprep.subr.bf16.mxu0 %v7073_v44  ;;  %v4140_v44 = vld [vmem:[%s11841_s5 + $0x698] sm:$0xff] }
 0x5b6   :  { %v7113_v27 = vpack.c.bf16 %v4140_v44, %v4139_v31  ;;  %v4157_v31 = vld [vmem:[%s11841_s5 + $0x720] sm:$0xff]  ;;  %v4158_v44 = vld [vmem:[%s11841_s5 + $0x728] sm:$0xff] }
 0x5b8   :  { %7076 = vmatpush3.bf16.msra.mxu0 %v7075_v12  ;;  %v4141_v12 = vld [vmem:[%s11841_s5 + $0x6a0] sm:$0xff] }
 0x5b9   :  { %7078 = vmatprep.subr.bf16.mxu0 %v7077_v22  ;;  %v4142_v22 = vld [vmem:[%s11841_s5 + $0x6a8] sm:$0xff] }
 0x5ba   :  { %v7117_v48 = vpack.c.bf16 %v4142_v22, %v4141_v12  ;;  %v4177_v12 = vld [vmem:[%s11841_s5 + $0x7c0] sm:$0xff]  ;;  %v4178_v22 = vld [vmem:[%s11841_s5 + $0x7c8] sm:$0xff] }
 0x5bb   :  { %4711 = vmatmul.mubr.f32.vlgmr.msra.gmra.mrb[24].mxu0 %v11106_v6  ;;  %v4112_v6 = vld [vmem:[%s11841_s5 + $0x5b8] sm:$0xff] }
 0x5bc   :  { %7080 = vmatpush3.bf16.msra.mxu0 %v7079_v21  ;;  %4780 = vmatprep.mubr.f32.mxu0 %v4311_v15  ;;  %v7089_v10 = vpack.c.bf16 %v4112_v6, %v4111_v60  ;;  %v4143_v21 = vld [vmem:[%s11841_s5 + $0x6b0] sm:$0xff]  ;;  %v4128_v15 = vld [vmem:[%s11841_s5 + $0x638] sm:$0xff] }
 0x5bd   :  { %7082 = vmatprep.subr.bf16.mxu0 %v7081_v39  ;;  %v7119_v39 = vpack.c.bf16 %v4126_v8, %v4125_v46  ;;  %v4147_v60 = vld [vmem:[%s11841_s5 + $0x6d0] sm:$0xff]  ;;  %v4148_v6 = vld [vmem:[%s11841_s5 + $0x6d8] sm:$0xff]  ;;  %v4161_v46 = vld [vmem:[%s11841_s5 + $0x740] sm:$0xff] }
 0x5be   :  { %v4162_v8 = vld [vmem:[%s11841_s5 + $0x748] sm:$0xff] }
 0x5c0   :  { %7084 = vmatpush3.bf16.msra.mxu0 %v7083_v63  ;;  %v7123_v63 = vpack.c.bf16 %v4128_v15, %v4127_v47  ;;  %v4163_v47 = vld [vmem:[%s11841_s5 + $0x750] sm:$0xff]  ;;  %v4164_v15 = vld [vmem:[%s11841_s5 + $0x758] sm:$0xff] }
 0x5c1   :  { %7086 = vmatprep.subr.bf16.mxu0 %v7085_v54  ;;  %v7125_v54 = vpack.c.bf16 %v4146_v0, %v4145_v24  ;;  %v4181_v24 = vld [vmem:[%s11841_s5 + $0x7e0] sm:$0xff]  ;;  %v4182_v0 = vld [vmem:[%s11841_s5 + $0x7e8] sm:$0xff] }
 0x5c4   :  { %7088 = vmatpush3.bf16.msra.mxu0 %v7087_v43  ;;  %v7127_v43 = vpack.c.bf16 %v4130_v34, %v4129_v51  ;;  %v4165_v51 = vld [vmem:[%s11841_s5 + $0x760] sm:$0xff]  ;;  %v4166_v34 = vld [vmem:[%s11841_s5 + $0x768] sm:$0xff] }
 0x5c5   :  { %7090 = vmatprep.subr.bf16.mxu0 %v7089_v10  ;;  %v7129_v10 = vpack.c.bf16 %v4148_v6, %v4147_v60  ;;  %v4183_v6 = vld [vmem:[%s11841_s5 + $0x7f0] sm:$0xff] }
 0x5c8   :  { %7092 = vmatpush3.bf16.msra.mxu0 %v7091_v36  ;;  %v7131_v36 = vpack.c.bf16 %v4132_v61, %v4131_v13  ;;  %v7167_v61 = vpack.c.bf16 %v4166_v34, %v4165_v51 }
 0x5c9   :  { %7094 = vmatprep.subr.bf16.mxu0 %v7093_v5  ;;  %v7133_v5 = vpack.c.bf16 %v4150_v42, %v4149_v30  ;;  %v4167_v42 = vld [vmem:[%s11841_s5 + $0x770] sm:$0xff] }
 0x5cc   :  { %7096 = vmatpush3.bf16.msra.mxu0 %v7095_v33  ;;  %v7135_v33 = vpack.c.bf16 %v4134_v19, %v4133_v38  ;;  %v4202_v38 = vld [vmem:[%s11841_s5 + $0x888] sm:$0xff] }
 0x5cd   :  { %7098 = vmatprep.subr.bf16.mxu0 %v7097_v7  ;;  %v7137_v7 = vpack.c.bf16 %v4152_v9, %v4151_v16  ;;  %v11516_v19 = vld [vmem:[#allocation6 + $0x20] sm:$0xff] }
 0x5d0   :  { %7100 = vmatpush3.bf16.msra.mxu0 %v7099_v28  ;;  %v4312_v28 = vcombine.high %v11305_v37, %v11305_v37 }
 0x5d1   :  { %7102 = vmatprep.subr.bf16.mxu0 %v7101_v59  ;;  %v7139_v59 = vpack.c.bf16 %v4136_v29, %v4135_v35  ;;  %v11526_v35 = vrot.slane %v11516_v19, %v10749_v45  ;;  %v4203_v29 = vld [vmem:[%s11841_s5 + $0x890] sm:$0xff] }
 0x5d2   :  { %v11419_v40 = vrot.slane %v4312_v28, %v10749_v45  ;;  %v7177_v28 = vpack.c.bf16 %v4204_v18, %v4203_v29  ;;  %v4237_v18 = vld [vmem:[%s11841_s5 + $0x9a0] sm:$0xff] }
 0x5d3   :  { %v4344_v50 = vcombine.high %v11526_v35, %v11526_v35 }
 0x5d4   :  { %7104 = vmatpush3.bf16.msra.mxu0 %v7103_v55  ;;  %v4171_v55 = vld [vmem:[%s11841_s5 + $0x790] sm:$0xff]  ;;  %v4328_v37 = vcombine.high %v11419_v40, %v11419_v40 }
 0x5d5   :  { %7106 = vmatprep.subr.bf16.mxu0 %v7105_v53  ;;  %v4172_v53 = vld [vmem:[%s11841_s5 + $0x798] sm:$0xff] }
 0x5d6   :  { %v7145_v62 = vpack.c.bf16 %v4172_v53, %v4171_v55  ;;  %v4206_v55 = vld [vmem:[%s11841_s5 + $0x8a8] sm:$0xff] }
 0x5d8   :  { %7108 = vmatpush3.bf16.msra.mxu0 %v7107_v23  ;;  %v4173_v23 = vld [vmem:[%s11841_s5 + $0x7a0] sm:$0xff] }
 0x5d9   :  { %7110 = vmatprep.subr.bf16.mxu0 %v7109_v17  ;;  %v4174_v17 = vld [vmem:[%s11841_s5 + $0x7a8] sm:$0xff] }
 0x5da   :  { %v7149_v49 = vpack.c.bf16 %v4174_v17, %v4173_v23  ;;  %v4191_v17 = vld [vmem:[%s11841_s5 + $0x830] sm:$0xff] }
 0x5db   :  { %4781 = vmatmul.mubr.f32.vlgmr.msra.gmra.mrb[26].mxu0 %v11210_v52  ;;  %v4144_v52 = vld [vmem:[%s11841_s5 + $0x6b8] sm:$0xff] }
 0x5dc   :  { %7112 = vmatpush3.bf16.msra.mxu0 %v7111_v58  ;;  %4850 = vmatprep.mubr.f32.mxu0 %v4327_v11  ;;  %v7121_v14 = vpack.c.bf16 %v4144_v52, %v4143_v21  ;;  %v4175_v58 = vld [vmem:[%s11841_s5 + $0x7b0] sm:$0xff]  ;;  %v4160_v11 = vld [vmem:[%s11841_s5 + $0x738] sm:$0xff] }
 0x5dd   :  { %7114 = vmatprep.subr.bf16.mxu0 %v7113_v27  ;;  %v7151_v27 = vpack.c.bf16 %v4158_v44, %v4157_v31  ;;  %v4179_v21 = vld [vmem:[%s11841_s5 + $0x7d0] sm:$0xff]  ;;  %v4180_v52 = vld [vmem:[%s11841_s5 + $0x7d8] sm:$0xff]  ;;  %v4210_v31 = vld [vmem:[%s11841_s5 + $0x8c8] sm:$0xff] }
 0x5e0   :  { %7116 = vmatpush3.bf16.msra.mxu0 %v7115_v32  ;;  %v7155_v32 = vpack.c.bf16 %v4160_v11, %v4159_v57  ;;  %v4212_v57 = vld [vmem:[%s11841_s5 + $0x8d8] sm:$0xff] }
 0x5e1   :  { %7118 = vmatprep.subr.bf16.mxu0 %v7117_v48  ;;  %v7157_v48 = vpack.c.bf16 %v4178_v22, %v4177_v12  ;;  %v4195_v22 = vld [vmem:[%s11841_s5 + $0x850] sm:$0xff] }
 0x5e4   :  { %7120 = vmatpush3.bf16.msra.mxu0 %v7119_v39  ;;  %v7159_v39 = vpack.c.bf16 %v4162_v8, %v4161_v46  ;;  %v4214_v46 = vld [vmem:[%s11841_s5 + $0x8e8] sm:$0xff] }
 0x5e5   :  { %7122 = vmatprep.subr.bf16.mxu0 %v7121_v14  ;;  %v7161_v14 = vpack.c.bf16 %v4180_v52, %v4179_v21  ;;  %v5875_v21 = vld [vmem:[%s11842_s6] ss:$0 sm:$0xff] }
 0x5e8   :  { %7124 = vmatpush3.bf16.msra.mxu0 %v7123_v63  ;;  %v7163_v63 = vpack.c.bf16 %v4164_v15, %v4163_v47  ;;  %v4215_v15 = vld [vmem:[%s11841_s5 + $0x8f0] sm:$0xff] }
 0x5e9   :  { %7126 = vmatprep.subr.bf16.mxu0 %v7125_v54  ;;  %v7165_v54 = vpack.c.bf16 %v4182_v0, %v4181_v24  ;;  %v4216_v24 = vld [vmem:[%s11841_s5 + $0x8f8] sm:$0xff] }
 0x5ea   :  { %v7201_v34 = vpack.c.bf16 %v4216_v24, %v4215_v15 }
 0x5ec   :  { %7128 = vmatpush3.bf16.msra.mxu0 %v7127_v43  ;;  %v4184_v43 = vld [vmem:[%s11841_s5 + $0x7f8] sm:$0xff] }
 0x5ed   :  { %7130 = vmatprep.subr.bf16.mxu0 %v7129_v10  ;;  %v7169_v30 = vpack.c.bf16 %v4184_v43, %v4183_v6  ;;  %v4200_v6 = vld [vmem:[%s11841_s5 + $0x878] sm:$0xff] }
 0x5f0   :  { %7132 = vmatpush3.bf16.msra.mxu0 %v7131_v36  ;;  %v4168_v36 = vld [vmem:[%s11841_s5 + $0x778] sm:$0xff] }
 0x5f1   :  { %7134 = vmatprep.subr.bf16.mxu0 %v7133_v5  ;;  %v4201_v5 = vld [vmem:[%s11841_s5 + $0x880] sm:$0xff]  ;;  %v7171_v16 = vpack.c.bf16 %v4168_v36, %v4167_v42 }
 0x5f2   :  { %v7173_v9 = vpack.c.bf16 %v4202_v38, %v4201_v5  ;;  %v4217_v36 = vld [vmem:[%s11841_s5 + $0x900] sm:$0xff]  ;;  %v4218_v5 = vld [vmem:[%s11841_s5 + $0x908] sm:$0xff] }
 0x5f4   :  { %7136 = vmatpush3.bf16.msra.mxu0 %v7135_v33  ;;  %v4185_v33 = vld [vmem:[%s11841_s5 + $0x800] sm:$0xff] }
 0x5f5   :  { %7138 = vmatprep.subr.bf16.mxu0 %v7137_v7  ;;  %v4186_v7 = vld [vmem:[%s11841_s5 + $0x808] sm:$0xff] }
 0x5f6   :  { %v7175_v4 = vpack.c.bf16 %v4186_v7, %v4185_v33  ;;  %v4219_v7 = vld [vmem:[%s11841_s5 + $0x910] sm:$0xff] }
 0x5f8   :  { %7140 = vmatpush3.bf16.msra.mxu0 %v7139_v59  ;;  %v4187_v59 = vld [vmem:[%s11841_s5 + $0x810] sm:$0xff] }
 0x5f9   :  { %7142 = vmatprep.subr.bf16.mxu0 %v7141_v41  ;;  %v4188_v41 = vld [vmem:[%s11841_s5 + $0x818] sm:$0xff] }
 0x5fa   :  { %v7179_v53 = vpack.c.bf16 %v4188_v41, %v4187_v59  ;;  %v4221_v41 = vld [vmem:[%s11841_s5 + $0x920] sm:$0xff] }
 0x5fb   :  { %4851 = vmatmul.mubr.f32.vlgmr.msra.gmra.mrb[28].mxu0 %v11315_v3  ;;  %v4176_v3 = vld [vmem:[%s11841_s5 + $0x7b8] sm:$0xff] }
 0x5fc   :  { %7144 = vmatpush3.bf16.msra.mxu0 %v7143_v25  ;;  %4920 = vmatprep.mubr.f32.mxu0 %v4328_v37  ;;  %v7153_v2 = vpack.c.bf16 %v4176_v3, %v4175_v58  ;;  %v7181_v25 = vpack.c.bf16 %v4206_v55, %v4205_v1  ;;  %v4193_v3 = vld [vmem:[%s11841_s5 + $0x840] sm:$0xff]  ;;  %v4239_v1 = vld [vmem:[%s11841_s5 + $0x9b0] sm:$0xff] }
 0x5fd   :  { %7146 = vmatprep.subr.bf16.mxu0 %v7145_v62  ;;  %v4189_v62 = vld [vmem:[%s11841_s5 + $0x820] sm:$0xff] }
 0x5fe   :  { %v7183_v37 = vpack.c.bf16 %v4190_v20, %v4189_v62  ;;  %v4224_v62 = vld [vmem:[%s11841_s5 + $0x938] sm:$0xff]  ;;  %v4241_v20 = vld [vmem:[%s11841_s5 + $0x9c0] sm:$0xff] }
 0x600   :  { %7148 = vmatpush3.bf16.msra.mxu0 %v7147_v56  ;;  %v4192_v56 = vld [vmem:[%s11841_s5 + $0x838] sm:$0xff] }
 0x601   :  { %7150 = vmatprep.subr.bf16.mxu0 %v7149_v49  ;;  %v4209_v49 = vld [vmem:[%s11841_s5 + $0x8c0] sm:$0xff]  ;;  %v7187_v44 = vpack.c.bf16 %v4192_v56, %v4191_v17  ;;  %v4226_v17 = vld [vmem:[%s11841_s5 + $0x948] sm:$0xff]  ;;  %v4243_v56 = vld [vmem:[%s11841_s5 + $0x9d0] sm:$0xff] }
 0x602   :  { %v7189_v58 = vpack.c.bf16 %v4210_v31, %v4209_v49  ;;  %v4244_v49 = vld [vmem:[%s11841_s5 + $0x9d8] sm:$0xff] }
 0x604   :  { %7152 = vmatpush3.bf16.msra.mxu0 %v7151_v27  ;;  %v4194_v27 = vld [vmem:[%s11841_s5 + $0x848] sm:$0xff] }
 0x605   :  { %7154 = vmatprep.subr.bf16.mxu0 %v7153_v2  ;;  %v4211_v2 = vld [vmem:[%s11841_s5 + $0x8d0] sm:$0xff]  ;;  %v7191_v11 = vpack.c.bf16 %v4194_v27, %v4193_v3  ;;  %v4228_v3 = vld [vmem:[%s11841_s5 + $0x958] sm:$0xff]  ;;  %v4245_v27 = vld [vmem:[%s11841_s5 + $0x9e0] sm:$0xff] }
 0x606   :  { %v7193_v12 = vpack.c.bf16 %v4212_v57, %v4211_v2  ;;  %v4246_v2 = vld [vmem:[%s11841_s5 + $0x9e8] sm:$0xff] }
 0x608   :  { %7156 = vmatpush3.bf16.msra.mxu0 %v7155_v32  ;;  %v4196_v32 = vld [vmem:[%s11841_s5 + $0x858] sm:$0xff] }
 0x609   :  { %7158 = vmatprep.subr.bf16.mxu0 %v7157_v48  ;;  %v4213_v48 = vld [vmem:[%s11841_s5 + $0x8e0] sm:$0xff]  ;;  %v7195_v8 = vpack.c.bf16 %v4196_v32, %v4195_v22  ;;  %v4230_v22 = vld [vmem:[%s11841_s5 + $0x968] sm:$0xff] }
 0x60a   :  { %v7197_v52 = vpack.c.bf16 %v4214_v46, %v4213_v48  ;;  %v4247_v48 = vld [vmem:[%s11841_s5 + $0x9f0] sm:$0xff]  ;;  %v4248_v46 = vld [vmem:[%s11841_s5 + $0x9f8] sm:$0xff] }
 0x60c   :  { %7160 = vmatpush3.bf16.msra.mxu0 %v7159_v39  ;;  %v4197_v39 = vld [vmem:[%s11841_s5 + $0x860] sm:$0xff] }
 0x60d   :  { %7162 = vmatprep.subr.bf16.mxu0 %v7161_v14  ;;  %v4198_v14 = vld [vmem:[%s11841_s5 + $0x868] sm:$0xff] }
 0x60e   :  { %v5913_v60 = vpop.f32.mrb[16].mxu0  ;;  %v7199_v51 = vpack.c.bf16 %v4198_v14, %v4197_v39  ;;  %v7233_v39 = vpack.c.bf16 %v4248_v46, %v4247_v48  ;;  %v4231_v14 = vld [vmem:[%s11841_s5 + $0x970] sm:$0xff] }
 0x60f   :  { %v5914_v10 = vpop.f32.mrb[17].mxu0 }
 0x610   :  { %v11502_v13 = vadd.f32 %v5914_v10, %v5913_v60  ;;  %7164 = vmatpush3.bf16.msra.mxu0 %v7163_v63  ;;  %v4199_v60 = vld [vmem:[%s11841_s5 + $0x870] sm:$0xff]  ;;  %v4233_v10 = vld [vmem:[%s11841_s5 + $0x980] sm:$0xff] }
 0x611   :  { %7166 = vmatprep.subr.bf16.mxu0 %v7165_v54 }
 0x612   :  { %v4433_v63 = vadd.f32 %v11502_v13, %v5875_v21  ;;  %v4234_v13 = vld [vmem:[%s11841_s5 + $0x988] sm:$0xff] }
 0x613   :  { %v7205_v42 = vpack.c.bf16 %v4234_v13, %v4233_v10  ;;  %v5067_v13 = vld [vmem:[%s11843_s7] sm:$0xff] }
 0x614   :  { %7168 = vmatpush3.bf16.msra.mxu0 %v7167_v61  ;;  %v4329_v61 = vcombine.high %v11516_v19, %v11516_v19  ;;  %v4236_v19 = vld [vmem:[%s11841_s5 + $0x998] sm:$0xff] }
 0x615   :  { %7170 = vmatprep.subr.bf16.mxu0 %v7169_v30  ;;  %v7203_v30 = vpack.c.bf16 %v4200_v6, %v4199_v60 }
 0x616   :  { %v11636_v38 = vrot.slane %v4329_v61, %v10749_v45  ;;  %v4220_v45 = vld [vmem:[%s11841_s5 + $0x918] sm:$0xff]  ;;  %v5069_v61 = vld [vmem:[%s11843_s7 + $0x10] sm:$0xff] }
 0x618   :  { %7172 = vmatpush3.bf16.msra.mxu0 %v7171_v16  ;;  %v4235_v16 = vld [vmem:[%s11841_s5 + $0x990] sm:$0xff]  ;;  %v4345_v29 = vcombine.high %v11636_v38, %v11636_v38 }
 0x619   :  { %7174 = vmatprep.subr.bf16.mxu0 %v7173_v9  ;;  %v7207_v9 = vpack.c.bf16 %v4218_v5, %v4217_v36  ;;  %v7209_v33 = vpack.c.bf16 %v4236_v19, %v4235_v16  ;;  %v5070_v36 = vld [vmem:[%s11843_s7 + $0x18] sm:$0xff]  ;;  %v5072_v16 = vld [vmem:[%s11843_s7 + $0x28] sm:$0xff] }
 0x61a   :  { %v7241_v5 = vpack.c.bf16 %v5070_v36, %v5069_v61  ;;  %v5878_v61 = vld [vmem:[%s11846_s10] ss:$0 sm:$0xff] }
 0x61b   :  { %4921 = vmatmul.mubr.f32.vlgmr.msra.gmra.mrb[30].mxu0 %v11419_v40  ;;  %v4208_v40 = vld [vmem:[%s11841_s5 + $0x8b8] sm:$0xff] }
 0x61c   :  { %7176 = vmatpush3.bf16.msra.mxu0 %v7175_v4  ;;  %4990 = vmatprep.mubr.f32.mxu0 %v4344_v50  ;;  %v7185_v23 = vpack.c.bf16 %v4208_v40, %v4207_v26  ;;  %v4238_v4 = vld [vmem:[%s11841_s5 + $0x9a8] sm:$0xff] }
 0x61d   :  { %7178 = vmatprep.subr.bf16.mxu0 %v7177_v28  ;;  %v7211_v28 = vpack.c.bf16 %v4220_v45, %v4219_v7  ;;  %v7213_v59 = vpack.c.bf16 %v4238_v4, %v4237_v18  ;;  %v4222_v50 = vld [vmem:[%s11841_s5 + $0x928] sm:$0xff]  ;;  %v5075_v45 = vld [vmem:[%s11843_s7 + $0x40] sm:$0xff]  ;;  %v5077_v4 = vld [vmem:[%s11843_s7 + $0x50] sm:$0xff] }
 0x61e   :  { %v7215_v55 = vpack.c.bf16 %v4222_v50, %v4221_v41  ;;  %v4242_v26 = vld [vmem:[%s11841_s5 + $0x9c8] sm:$0xff] }
 0x620   :  { %7180 = vmatpush3.bf16.msra.mxu0 %v7179_v53 }
 0x621   :  { %7182 = vmatprep.subr.bf16.mxu0 %v7181_v25  ;;  %v4223_v25 = vld [vmem:[%s11841_s5 + $0x930] sm:$0xff] }
 0x622   :  { %v7219_v40 = vpack.c.bf16 %v4224_v62, %v4223_v25  ;;  %v7499_v62 = vld [vmem:[#allocation3 + $0x80] sm:$0xff] }
 0x623   :  { %6314 = vmatprep.mubr.msk.f32.mxu1 %vm7529_vm12, %v7499_v62 }
 0x624   :  { %7184 = vmatpush3.bf16.msra.mxu0 %v7183_v37  ;;  %v7221_v37 = vpack.c.bf16 %v4242_v26, %v4241_v20  ;;  %v5164_v20 = vld [vmem:[%s11845_s9] sm:$0xff]  ;;  %v5165_v26 = vld [vmem:[%s11845_s9 + $0x8] sm:$0xff] }
 0x625   :  { %7186 = vmatprep.subr.bf16.mxu0 %v7185_v23  ;;  %v4225_v23 = vld [vmem:[%s11841_s5 + $0x940] sm:$0xff] }
 0x626   :  { %v7223_v31 = vpack.c.bf16 %v4226_v17, %v4225_v23  ;;  %v5167_v23 = vld [vmem:[%s11845_s9 + $0x18] sm:$0xff]  ;;  %v5081_v17 = vld [vmem:[%s11843_s7 + $0x70] sm:$0xff] }
 0x628   :  { %7188 = vmatpush3.bf16.msra.mxu0 %v7187_v44  ;;  %v7225_v44 = vpack.c.bf16 %v4244_v49, %v4243_v56  ;;  %v5168_v49 = vld [vmem:[%s11845_s9 + $0x20] sm:$0xff] }
 0x629   :  { %7190 = vmatprep.subr.bf16.mxu0 %v7189_v58  ;;  %v4227_v58 = vld [vmem:[%s11841_s5 + $0x950] sm:$0xff] }
 0x62a   :  { %v7227_v57 = vpack.c.bf16 %v4228_v3, %v4227_v58  ;;  %v5170_v58 = vld [vmem:[%s11845_s9 + $0x30] sm:$0xff]  ;;  %v5171_v3 = vld [vmem:[%s11845_s9 + $0x38] sm:$0xff] }
 0x62c   :  { %7192 = vmatpush3.bf16.msra.mxu0 %v7191_v11  ;;  %v7229_v11 = vpack.c.bf16 %v4246_v2, %v4245_v27  ;;  %v7268_v27 = vpack.c.bf16 %v5171_v3, %v5170_v58  ;;  %v5172_v2 = vld [vmem:[%s11845_s9 + $0x40] sm:$0xff] }
 0x62d   :  { %7194 = vmatprep.subr.bf16.mxu0 %v7193_v12  ;;  %v4229_v12 = vld [vmem:[%s11841_s5 + $0x960] sm:$0xff] }
 0x62e   :  { %v5948_v47 = vpop.f32.mrb[18].mxu0 }
 0x62f   :  { %v5949_v0 = vpop.f32.mrb[19].mxu0 }
 0x630   :  { %v5950_v54 = vadd.f32 %v5949_v0, %v5948_v47  ;;  %7196 = vmatpush3.bf16.msra.mxu0 %v7195_v8  ;;  %v4232_v47 = vld [vmem:[%s11841_s5 + $0x978] sm:$0xff] }
 0x631   :  { %7198 = vmatprep.subr.bf16.mxu0 %v7197_v52  ;;  %v7231_v52 = vpack.c.bf16 %v4230_v22, %v4229_v12  ;;  %v7235_v24 = vpack.c.bf16 %v4232_v47, %v4231_v14 }
 0x632   :  { %v11619_v43 = vadd.f32 %v5950_v54, %v4433_v63 }
 0x634   :  { %7200 = vmatpush3.bf16.msra.mxu0 %v7199_v51 }
 0x635   :  { %7202 = vmatprep.subr.bf16.mxu0 %v7201_v34 }
 0x638   :  { %7204 = vmatpush3.bf16.msra.mxu0 %v7203_v30  ;;  %v7528_v30 = vmov 0.0|0.0  }
 0x639   :  { %7206 = vmatprep.subr.bf16.mxu0 %v7205_v42  ;;  %7258 = vmatprep.subr.bf16.mxu1 %v7528_v30 }
 0x63b   :  { %4991 = vmatmul.mubr.f32.vlgmr.msra.gmra.mrb[32].mxu0 %v11526_v35  ;;  %v4240_v35 = vld [vmem:[%s11841_s5 + $0x9b8] sm:$0xff] }
 0x63c   :  { %7208 = vmatpush3.bf16.msra.mxu0 %v7207_v9  ;;  %5060 = vmatprep.mubr.f32.mxu0 %v4345_v29  ;;  %v7217_v53 = vpack.c.bf16 %v4240_v35, %v4239_v1  ;;  %v5073_v9 = vld [vmem:[%s11843_s7 + $0x30] sm:$0xff]  ;;  %v5076_v29 = vld [vmem:[%s11843_s7 + $0x48] sm:$0xff] }
 0x63d   :  { %7210 = vmatprep.subr.bf16.mxu0 %v7209_v33  ;;  %v5074_v33 = vld [vmem:[%s11843_s7 + $0x38] sm:$0xff]  ;;  %v7250_v18 = vpack.c.bf16 %v5076_v29, %v5075_v45 }
 0x63e   :  { %v7247_v7 = vpack.c.bf16 %v5074_v33, %v5073_v9 }
 0x640   :  { %7212 = vmatpush3.bf16.msra.mxu0 %v7211_v28  ;;  %v5078_v28 = vld [vmem:[%s11843_s7 + $0x58] sm:$0xff] }
 0x641   :  { %7214 = vmatprep.subr.bf16.mxu0 %v7213_v59  ;;  %v7253_v59 = vpack.c.bf16 %v5078_v28, %v5077_v4 }
 0x644   :  { %7216 = vmatpush3.bf16.msra.mxu0 %v7215_v55  ;;  %v5079_v55 = vld [vmem:[%s11843_s7 + $0x60] sm:$0xff] }
 0x645   :  { %7218 = vmatprep.subr.bf16.mxu0 %v7217_v53  ;;  %v5080_v53 = vld [vmem:[%s11843_s7 + $0x68] sm:$0xff] }
 0x646   :  { %v7256_v25 = vpack.c.bf16 %v5080_v53, %v5079_v55 }
 0x648   :  { %7220 = vmatpush3.bf16.msra.mxu0 %v7219_v40  ;;  %v5166_v40 = vld [vmem:[%s11845_s9 + $0x10] sm:$0xff] }
 0x649   :  { %7222 = vmatprep.subr.bf16.mxu0 %v7221_v37  ;;  %v7259_v37 = vpack.c.bf16 %v5165_v26, %v5164_v20  ;;  %v7262_v56 = vpack.c.bf16 %v5167_v23, %v5166_v40 }
 0x64b   :  { %7260 = vmatpush3.bf16.msra.mxu1 %v7259_v37 }
 0x64c   :  { %7224 = vmatpush3.bf16.msra.mxu0 %v7223_v31  ;;  %7261 = vmatprep.subr.bf16.mxu1 %v7528_v30  ;;  %v5169_v31 = vld [vmem:[%s11845_s9 + $0x28] sm:$0xff] }
 0x64d   :  { %7226 = vmatprep.subr.bf16.mxu0 %v7225_v44  ;;  %v7265_v44 = vpack.c.bf16 %v5169_v31, %v5168_v49 }
 0x64e   :  { %v5983_v32 = vpop.f32.mrb[20].mxu0 }
 0x64f   :  { %v5984_v8 = vpop.f32.mrb[21].mxu0  ;;  %7263 = vmatpush3.bf16.msra.mxu1 %v7262_v56 }
 0x650   :  { %v5985_v21 = vadd.f32 %v5984_v8, %v5983_v32  ;;  %7228 = vmatpush3.bf16.msra.mxu0 %v7227_v57  ;;  %7264 = vmatprep.subr.bf16.mxu1 %v7528_v30  ;;  %v5173_v57 = vld [vmem:[%s11845_s9 + $0x48] sm:$0xff] }
 0x651   :  { %7230 = vmatprep.subr.bf16.mxu0 %v7229_v11  ;;  %v7271_v11 = vpack.c.bf16 %v5173_v57, %v5172_v2 }
 0x652   :  { %v4573_v15 = vadd.f32 %v5985_v21, %v11619_v43  ;;  %v5068_v43 = vld [vmem:[%s11843_s7 + $0x8] sm:$0xff] }
 0x653   :  { %v7238_v42 = vpack.c.bf16 %v5068_v43, %v5067_v13  ;;  %7266 = vmatpush3.bf16.msra.mxu1 %v7265_v44 }
 0x654   :  { %7232 = vmatpush3.bf16.msra.mxu0 %v7231_v52  ;;  %7267 = vmatprep.subr.bf16.mxu1 %v7528_v30 }
 0x655   :  { %7234 = vmatprep.subr.bf16.mxu0 %v7233_v39 }
 0x657   :  { %7269 = vmatpush3.bf16.msra.mxu1 %v7268_v27 }
 0x658   :  { %7236 = vmatpush3.bf16.msra.mxu0 %v7235_v24  ;;  %7270 = vmatprep.subr.bf16.mxu1 %v7528_v30 }
 0x659   :  { %7237 = vmatprep.subr.bf16.mxu0 %v7528_v30 }
 0x65b   :  { %5061 = vmatmul.mubr.f32.vlgmr.msra.gmra.mrb[34].mxu0 %v11636_v38  ;;  %v5071_v38 = vld [vmem:[%s11843_s7 + $0x20] sm:$0xff]  ;;  %7272 = vmatpush3.bf16.msra.mxu1 %v7271_v11 }
 0x65c   :  { %7239 = vmatpush3.bf16.msra.mxu0 %v7238_v42  ;;  %v7244_v19 = vpack.c.bf16 %v5072_v16, %v5071_v38  ;;  %6289 = vmatprep.mubr.msk.f32.mxu0 %vm7529_vm12, %v7499_v62 }
 0x65d   :  { %7240 = vmatprep.subr.bf16.mxu0 %v7528_v30  ;;  %6312 = vmatprep.subr.mxu1 %v7499_v62 }
 0x660   :  { %7242 = vmatpush3.bf16.msra.mxu0 %v7241_v5 }
 0x661   :  { %7243 = vmatprep.subr.bf16.mxu0 %v7528_v30 }
 0x664   :  { %7245 = vmatpush3.bf16.msra.mxu0 %v7244_v19 }
 0x665   :  { %7246 = vmatprep.subr.bf16.mxu0 %v7528_v30 }
 0x668   :  { %7248 = vmatpush3.bf16.msra.mxu0 %v7247_v7 }
 0x669   :  { %7249 = vmatprep.subr.bf16.mxu0 %v7528_v30 }
 0x66c   :  { %7251 = vmatpush3.bf16.msra.mxu0 %v7250_v18 }
 0x66d   :  { %7252 = vmatprep.subr.bf16.mxu0 %v7528_v30 }
 0x66e   :  { %v6018_v0 = vpop.f32.mrb[22].mxu0 }
 0x66f   :  { %v6019_v63 = vpop.f32.mrb[23].mxu0 }
 0x670   :  { %v6020_v54 = vadd.f32 %v6019_v63, %v6018_v0  ;;  %7254 = vmatpush3.bf16.msra.mxu0 %v7253_v59 }
 0x671   :  { %7255 = vmatprep.subr.bf16.mxu0 %v7528_v30 }
 0x672   :  { %v4643_v51 = vadd.f32 %v6020_v54, %v4573_v15 }
 0x674   :  { %7257 = vmatpush3.bf16.msra.mxu0 %v7256_v25 }
 0x675   :  { %6287 = vmatprep.subr.mxu0 %v7499_v62 }
 0x678   :  { %6288 = vmatpush3.msra.mxu0 %v5081_v17 }
 0x68e   :  { %v6053_v34 = vpop.f32.mrb[24].mxu0 }
 0x68f   :  { %v6054_v60 = vpop.f32.mrb[25].mxu0 }
 0x690   :  { %v6055_v6 = vadd.f32 %v6054_v60, %v6053_v34  ;;  %v5174_v34 = vld [vmem:[%s11845_s9 + $0x50] sm:$0xf]  ;;  %v5876_v60 = vld [vmem:[%s11844_s8] ss:$0 sm:$0xff]  ;;  %s7500_s9 = scalar_lea.vmem %s5268_s28, 32 }
 0x691   :  { %6313 = vmatpush3.msk.msra.mxu1 %vm2157_vm7, %v5174_v34  ;;  %p7501_p0 = scmp.ne.s32.totalorder %s5268_s28, %s7500_s9  ;;  %p7506_p2 = scmp.lt.s32.totalorder %s7500_s9, %s7500_s9 }
 0x692   :  { %v4713_v10 = vadd.f32 %v6055_v6, %v4643_v51 }
 0x693   :  { %p7507_p3 = por %p7506_p2, %p7505_p1 }
 0x695   :  { %p7508_p4 = pnand %p7507_p3, %p7501_p0 }
 0x6ae   :  { %v6088_v41 = vpop.f32.mrb[26].mxu0 }
 0x6af   :  { %v6089_v50 = vpop.f32.mrb[27].mxu0 }
 0x6b0   :  { %v6090_v1 = vadd.f32 %v6089_v50, %v6088_v41 }
 0x6b2   :  { %v4783_v35 = vadd.f32 %v6090_v1, %v4713_v10 }
 0x6ce   :  { %v6123_v12 = vpop.f32.mrb[28].mxu0 }
 0x6cf   :  { %v6124_v22 = vpop.f32.mrb[29].mxu0 }
 0x6d0   :  { %v6125_v32 = vadd.f32 %v6124_v22, %v6123_v12 }
 0x6d2   :  { %v4853_v48 = vadd.f32 %v6125_v32, %v4783_v35 }
 0x6ee   :  { %v6158_v46 = vpop.f32.mrb[30].mxu0 }
 0x6ef   :  { %v6159_v8 = vpop.f32.mrb[31].mxu0 }
 0x6f0   :  { %v6160_v21 = vadd.f32 %v6159_v8, %v6158_v46 }
 0x6f2   :  { %v4923_v52 = vadd.f32 %v6160_v21, %v4853_v48 }
 0x70e   :  { %v6193_v39 = vpop.f32.mrb[32].mxu0 }
 0x70f   :  { %v6194_v14 = vpop.f32.mrb[33].mxu0 }
 0x710   :  { %v6195_v47 = vadd.f32 %v6194_v14, %v6193_v39 }
 0x712   :  { %v4993_v15 = vadd.f32 %v6195_v47, %v4923_v52 }
 0x72e   :  { %v6228_v24 = vpop.f32.mrb[34].mxu0 }
 0x72f   :  { %v6229_v0 = vpop.f32.mrb[35].mxu0 }
 0x730   :  { %v6230_v63 = vadd.f32 %v6229_v0, %v6228_v24 }
 0x732   :  { %v5063_v54 = vadd.f32 %v6230_v63, %v4993_v15 }
 0x734   :  { %v5066_v51 = vmax.f32 %v5063_v54, 0.0 }
 0x736   :  { %6290 = vmatmul.mubr.msk.f32.vlgmr.msra.gmra.mrb[36].mxu0 %vm5089_vm13, %v5066_v51 }
 0x809   :  { %v5159_v6 = vpop.f32.mrb[36].mxu0 }
 0x80a   :  { %v5160_v10 = vadd.f32 %v5876_v60, %v5159_v6  ;;  %v6291_v13 = vpop.f32.mrb[37].mxu0 }
 0x80c   :  { %v5163_v43 = vmax.f32 %v5160_v10, 0.0 }
 0x80e   :  { %6315 = vmatmul.mubr.msk.f32.vlgmr.msra.gmra.mrb[32].mxu1 %vm5182_vm14, %v5163_v43 }
 0x8e1   :  { %v5255_v30 = vpop.f32.mrb[32].mxu1 }
 0x8e2   :  { %v5256_v42 = vadd.f32 %v5878_v61, %v5255_v30  ;;  %v6316_v36 = vpop.f32.mrb[33].mxu1 }
 0x8e4   :  { %5260 = vst.msk [vmem:[#allocation7] sm:$0x3] %vm5259_vm15, %v5256_v42 }
 0x8e5   :  { %7511 = shalt.err (!%p7508_p4)
}
 0x8e6   :  { %s7512_s3 = scalar_lea.hbm %s11847_s11, 32 }
 0x8e7   :  { %p7513_p5 = scmp.ne.s32.totalorder %s11847_s11, %s7512_s3  ;;  %p7516_p6 = scmp.lt.u32.totalorder %s7512_s3, %s11847_s11 }
 0x8e9   :  { %p7518_p7 = pnand %p7516_p6, %p7513_p5 }
 0x8eb   :  { %7521 = shalt.err (!%p7518_p7)
}
 0x8ec   :  { %5270 = dma.vmem_to_hbm [thread:$0]  %s5268_s28, 32, %s11847_s11, [#allocation8]  }
 0x8ed   :  { %7522 = dma.done.wait [#allocation8], 32  }
 0x8ee   :  { %7523 = vsyncadd [#allocation8], 4294967264 }
 0x8ef   :  { %5274 = vsyncpa [#allocation8], 1 }

</bundles_post_ra>
